<compile_context>
chip_gen: v6e
topology: v6e:2x2x1
jax: 0.10.0
libtpu: 0.0.40
codegen_flags: <defaults>
</compile_context>

<pallas_src>
import jax
import jax.numpy as jnp
from jax.experimental import pallas as pl
from jax.experimental.pallas import tpu as pltpu

IN_DIM = 256
HIDDEN_DIM = 1024


def _mlp_embedder_kernel(x_ref, w1_ref, b1_ref, w2_ref, b2_ref, o_ref):
    # In-kernel downcast of the LHS tile (hidden under the MXU).
    x = x_ref[...].astype(w1_ref.dtype)
    # First linear: bf16 MXU matmul, f32 accumulation, f32 bias add.
    h = jnp.dot(x, w1_ref[...], preferred_element_type=jnp.float32)
    h = h + b1_ref[...]                      # b1_ref is (1, hidden), broadcasts over rows
    # SiLU in f32 (EUP sigmoid + VPU mul) — free filler under MXU slack on all gens.
    h = h * jax.nn.sigmoid(h)
    # Second linear: downcast LHS to the weight compute dtype, f32 accumulation.
    y = jnp.dot(h.astype(w2_ref.dtype), w2_ref[...],
                preferred_element_type=jnp.float32)
    y = y + b2_ref[...]
    o_ref[...] = y.astype(o_ref.dtype)


def _round_up(n, m):
    return ((n + m - 1) // m) * m


def prepare_mlp_embedder_params(w1, b1, w2, b2, *, compute_dtype=jnp.bfloat16):
    """One-time cast/reshape of the parameters. Reuse the result across calls so the
    f32->bf16 weight pass is not paid per forward."""
    assert w1.shape == (IN_DIM, HIDDEN_DIM)
    assert w2.shape == (HIDDEN_DIM, HIDDEN_DIM)
    return (
        w1.astype(compute_dtype),
        b1.reshape(1, HIDDEN_DIM).astype(jnp.float32),
        w2.astype(compute_dtype),
        b2.reshape(1, HIDDEN_DIM).astype(jnp.float32),
    )


def mlp_embedder(x, params, *, tm=1024):
    """x: [..., IN_DIM] -> [..., HIDDEN_DIM]. params from prepare_mlp_embedder_params().

    W1/W2 are fully resident (single-buffered) in VMEM; the kernel tiles over rows."""
    w1_c, b1_2d, w2_c, b2_2d = params

    lead_shape = x.shape[:-1]
    K = x.shape[-1]
    assert K == IN_DIM
    x2d = x.reshape(-1, IN_DIM)
    M = x2d.shape[0]
    out_dtype = x.dtype

    # Row tile: large for MXU occupancy / grid-step amortization, shrunk for small M,
    # multiple of 16 so bf16/f32 tiles satisfy the sublane-tiling minimum.
    tm_eff = min(tm, _round_up(M, 16))
    tm_eff = _round_up(tm_eff, 16)
    # For large M, keep at least 2 grid steps so the "parallel" row axis can be split
    # across both TensorCores on v7x (megacore).
    if M >= 512:
        tm_eff = min(tm_eff, _round_up(-(-M // 2), 16))
    m_pad = _round_up(M, tm_eff)

    # Pad rows only when needed (f32 pad, no dtype change; the cast happens in-kernel).
    x_in = x2d if m_pad == M else jnp.pad(x2d, ((0, m_pad - M), (0, 0)))

    grid = (m_pad // tm_eff,)

    w_itemsize = jnp.dtype(w1_c.dtype).itemsize
    x_itemsize = jnp.dtype(x.dtype).itemsize
    out_itemsize = jnp.dtype(out_dtype).itemsize
    flops = 2 * m_pad * (IN_DIM + HIDDEN_DIM) * HIDDEN_DIM
    bytes_accessed = (
        m_pad * IN_DIM * x_itemsize               # x
        + IN_DIM * HIDDEN_DIM * w_itemsize        # W1
        + HIDDEN_DIM * HIDDEN_DIM * w_itemsize    # W2
        + 2 * HIDDEN_DIM * 4                      # b1, b2
        + m_pad * HIDDEN_DIM * out_itemsize       # output
    )

    resident = pl.Buffered(1)  # constant index_map -> no point double-buffering

    out = pl.pallas_call(
        _mlp_embedder_kernel,
        out_shape=jax.ShapeDtypeStruct((m_pad, HIDDEN_DIM), out_dtype),
        grid_spec=pltpu.PrefetchScalarGridSpec(
            num_scalar_prefetch=0,
            grid=grid,
            in_specs=[
                # x row tile (default double-buffering for pipelining over the grid)
                pl.BlockSpec((tm_eff, IN_DIM), lambda i: (i, 0)),
                # Resident, single-buffered weights / biases
                pl.BlockSpec((IN_DIM, HIDDEN_DIM), lambda i: (0, 0),
                             pipeline_mode=resident),
                pl.BlockSpec((1, HIDDEN_DIM), lambda i: (0, 0),
                             pipeline_mode=resident),
                pl.BlockSpec((HIDDEN_DIM, HIDDEN_DIM), lambda i: (0, 0),
                             pipeline_mode=resident),
                pl.BlockSpec((1, HIDDEN_DIM), lambda i: (0, 0),
                             pipeline_mode=resident),
            ],
            out_specs=pl.BlockSpec((tm_eff, HIDDEN_DIM), lambda i: (i, 0)),  # lane-dense
        ),
        compiler_params=pltpu.CompilerParams(
            dimension_semantics=("parallel",),
            # ~17 MiB actually used at tm=1024 (bf16 W1+W2 single-buffered, f32 x/out
            # tiles double-buffered, f32 h scratch); 32 MiB is safe on v5e/v6e/v7x.
            vmem_limit_bytes=32 << 20,
        ),
        cost_estimate=pl.CostEstimate(
            flops=flops,
            transcendentals=m_pad * HIDDEN_DIM,
            bytes_accessed=bytes_accessed,
        ),
    )(x_in, w1_c, b1_2d, w2_c, b2_2d)

    if m_pad != M:
        out = out[:M]
    return out.reshape(*lead_shape, HIDDEN_DIM)


def reference_mlp_embedder(x, w1, b1, w2, b2):
    h = x @ w1 + b1
    h = h * jax.nn.sigmoid(h)
    return h @ w2 + b2


if __name__ == "__main__":
    key = jax.random.PRNGKey(0)
    kx, kw1, kb1, kw2, kb2 = jax.random.split(key, 5)

    # Deterministic parameter init mimicking nn.Linear's uniform(-1/sqrt(fan_in), ...)
    bound1 = 1.0 / (IN_DIM ** 0.5)
    bound2 = 1.0 / (HIDDEN_DIM ** 0.5)
    w1 = jax.random.uniform(kw1, (IN_DIM, HIDDEN_DIM), jnp.float32, -bound1, bound1)
    b1 = jax.random.uniform(kb1, (HIDDEN_DIM,), jnp.float32, -bound1, bound1)
    w2 = jax.random.uniform(kw2, (HIDDEN_DIM, HIDDEN_DIM), jnp.float32, -bound2, bound2)
    b2 = jax.random.uniform(kb2, (HIDDEN_DIM,), jnp.float32, -bound2, bound2)

    # Cast/layout the parameters ONCE; reused across both calls below.
    params = prepare_mlp_embedder_params(w1, b1, w2, b2)

    # Case 1: small "batch": 2 samples x 8 tokens of in_dim=256 (3-D input, like the
    # PyTorch module sees), M = 16 rows.
    batch, seq = 2, 8
    x = jax.random.normal(kx, (batch, seq, IN_DIM), dtype=jnp.float32)

    out = jax.block_until_ready(mlp_embedder(x, params))
    ref = reference_mlp_embedder(x.reshape(-1, IN_DIM), w1, b1, w2, b2).reshape(
        batch, seq, HIDDEN_DIM)
    assert out.shape == (batch, seq, HIDDEN_DIM)
    # bf16 matmul operands (f32 accumulation) vs. f32 reference -> loosened tolerance.
    assert jnp.allclose(out, ref, atol=3e-2, rtol=3e-2)

    # Case 2: 2-D input with M not a multiple of the tile -> exercises the padding path.
    M2 = 40
    x2 = jax.random.normal(jax.random.PRNGKey(1), (M2, IN_DIM), dtype=jnp.float32)
    out2 = jax.block_until_ready(mlp_embedder(x2, params))
    ref2 = reference_mlp_embedder(x2, w1, b1, w2, b2)
    assert out2.shape == (M2, HIDDEN_DIM)
    assert jnp.allclose(out2, ref2, atol=3e-2, rtol=3e-2)

    print("KERNEL_OK")
</pallas_src>

<mosaic_0001>
module attributes {stable_mosaic.version = 11 : i64} {
  func.func @_mlp_embedder_kernel(%arg0: i32, %arg1: memref<16x256xf32, #tpu.memory_space<vmem>>, %arg2: memref<256x1024xbf16, #tpu.memory_space<vmem>>, %arg3: memref<1x1024xf32, #tpu.memory_space<vmem>>, %arg4: memref<1024x1024xbf16, #tpu.memory_space<vmem>>, %arg5: memref<1x1024xf32, #tpu.memory_space<vmem>>, %arg6: memref<16x1024xf32, #tpu.memory_space<vmem>>) attributes {dimension_semantics = [#tpu.dimension_semantics<parallel>], iteration_bounds = array<i64: 1>, scalar_prefetch = 0 : i64, scratch_operands = 0 : i64, tpu.core_type = #tpu.core_type<tc>, window_params = [{transform_indices = @transform_0, window_bounds = array<i64: 16, 256>}, {pipeline_mode = #tpu.pipeline_mode<synchronous>, transform_indices = @transform_1, window_bounds = array<i64: 256, 1024>}, {pipeline_mode = #tpu.pipeline_mode<synchronous>, transform_indices = @transform_2, window_bounds = array<i64: 1, 1024>}, {pipeline_mode = #tpu.pipeline_mode<synchronous>, transform_indices = @transform_3, window_bounds = array<i64: 1024, 1024>}, {pipeline_mode = #tpu.pipeline_mode<synchronous>, transform_indices = @transform_4, window_bounds = array<i64: 1, 1024>}, {transform_indices = @transform_5, window_bounds = array<i64: 16, 1024>}]} {
    %c0 = arith.constant 0 : index
    %c0_0 = arith.constant 0 : index
    %0 = vector.load %arg1[%c0, %c0_0] : memref<16x256xf32, #tpu.memory_space<vmem>>, vector<16x256xf32>
    %1 = arith.truncf %0 : vector<16x256xf32> to vector<16x256xbf16>
    %c0_1 = arith.constant 0 : index
    %c0_2 = arith.constant 0 : index
    %2 = vector.load %arg2[%c0_1, %c0_2] : memref<256x1024xbf16, #tpu.memory_space<vmem>>, vector<256x1024xbf16>
    %cst = arith.constant dense<0.000000e+00> : vector<16x1024xf32>
    %3 = tpu.matmul %1, %2, %cst {dimension_numbers = #tpu.dot_dimension_numbers<[1], [0], [0], [1], [0, 0, 1, 1], [], []>} : vector<16x256xbf16>, vector<256x1024xbf16>, vector<16x1024xf32> -> vector<16x1024xf32>
    %c0_3 = arith.constant 0 : index
    %c0_4 = arith.constant 0 : index
    %4 = vector.load %arg3[%c0_3, %c0_4] : memref<1x1024xf32, #tpu.memory_space<vmem>>, vector<1x1024xf32>
    %5 = vector.broadcast %4 : vector<1x1024xf32> to vector<16x1024xf32>
    %6 = arith.addf %3, %5 : vector<16x1024xf32>
    %7 = arith.negf %6 : vector<16x1024xf32>
    %8 = math.exp %7 : vector<16x1024xf32>
    %cst_5 = arith.constant 1.000000e+00 : f32
    %9 = vector.broadcast %cst_5 : f32 to vector<16x1024xf32>
    %10 = arith.addf %9, %8 : vector<16x1024xf32>
    %11 = arith.divf %9, %10 : vector<16x1024xf32>
    %12 = arith.mulf %6, %11 : vector<16x1024xf32>
    %13 = arith.truncf %12 : vector<16x1024xf32> to vector<16x1024xbf16>
    %c0_6 = arith.constant 0 : index
    %c0_7 = arith.constant 0 : index
    %14 = vector.load %arg4[%c0_6, %c0_7] : memref<1024x1024xbf16, #tpu.memory_space<vmem>>, vector<1024x1024xbf16>
    %cst_8 = arith.constant dense<0.000000e+00> : vector<16x1024xf32>
    %15 = tpu.matmul %13, %14, %cst_8 {dimension_numbers = #tpu.dot_dimension_numbers<[1], [0], [0], [1], [0, 0, 1, 1], [], []>} : vector<16x1024xbf16>, vector<1024x1024xbf16>, vector<16x1024xf32> -> vector<16x1024xf32>
    %c0_9 = arith.constant 0 : index
    %c0_10 = arith.constant 0 : index
    %16 = vector.load %arg5[%c0_9, %c0_10] : memref<1x1024xf32, #tpu.memory_space<vmem>>, vector<1x1024xf32>
    %17 = vector.broadcast %16 : vector<1x1024xf32> to vector<16x1024xf32>
    %18 = arith.addf %15, %17 : vector<16x1024xf32>
    %c0_11 = arith.constant 0 : index
    %c0_12 = arith.constant 0 : index
    %19 = vector.load %arg6[%c0_11, %c0_12] : memref<16x1024xf32, #tpu.memory_space<vmem>>, vector<16x1024xf32>
    tpu.vector_store %arg6[%c0_11, %c0_12], %18 {strides = array<i32>} : memref<16x1024xf32, #tpu.memory_space<vmem>>, vector<16x1024xf32>,
    return
  }
  func.func @transform_0(%arg0: i32) -> (i32, i32) {
    %c0_i32 = arith.constant 0 : i32
    %c0_i32_0 = arith.constant 0 : i32
    return %arg0, %c0_i32 : i32, i32
  }
  func.func @transform_1(%arg0: i32) -> (i32, i32) {
    %c0_i32 = arith.constant 0 : i32
    %c0_i32_0 = arith.constant 0 : i32
    %c0_i32_1 = arith.constant 0 : i32
    return %c0_i32, %c0_i32_0 : i32, i32
  }
  func.func @transform_2(%arg0: i32) -> (i32, i32) {
    %c0_i32 = arith.constant 0 : i32
    %c0_i32_0 = arith.constant 0 : i32
    %c0_i32_1 = arith.constant 0 : i32
    return %c0_i32, %c0_i32_0 : i32, i32
  }
  func.func @transform_3(%arg0: i32) -> (i32, i32) {
    %c0_i32 = arith.constant 0 : i32
    %c0_i32_0 = arith.constant 0 : i32
    %c0_i32_1 = arith.constant 0 : i32
    return %c0_i32, %c0_i32_0 : i32, i32
  }
  func.func @transform_4(%arg0: i32) -> (i32, i32) {
    %c0_i32 = arith.constant 0 : i32
    %c0_i32_0 = arith.constant 0 : i32
    %c0_i32_1 = arith.constant 0 : i32
    return %c0_i32, %c0_i32_0 : i32, i32
  }
  func.func @transform_5(%arg0: i32) -> (i32, i32) {
    %c0_i32 = arith.constant 0 : i32
    %c0_i32_0 = arith.constant 0 : i32
    return %arg0, %c0_i32 : i32, i32
  }
}

</mosaic_0001>

<bundles_post_ra>
// kernel: tpu_custom_call.1
= control target key start
LH: loop header
LB: loop body
LE: loop exit
PB: predicated region body
PF: predicated region fallthrough
CT: control target
= control target key end

     0   :  { %10 = vsyncpa [#allocation3], 0  ;;  %s6131_s0 = inlined_call_operand.hbm [shape: f32[16,256], index: 0, kind: input, shape index: {}]   ;;  %s6132_s1 = inlined_call_operand.hbm [shape: bf16[256,1024], index: 1, kind: input, shape index: {}]   ;;  %s6133_s2 = inlined_call_operand.hbm [shape: f32[1,1024], index: 2, kind: input, shape index: {}]   ;;  %s6134_s3 = inlined_call_operand.hbm [shape: bf16[1024,1024], index: 3, kind: input, shape index: {}]   ;;  %s6135_s4 = inlined_call_operand.hbm [shape: f32[1,1024], index: 4, kind: input, shape index: {}]   ;;  %s6136_s5 = inlined_call_operand.hbm [shape: f32[16,1024], index: 5, kind: output, shape index: {}]  }
   0x1   :  { %11 = vsyncpa [#allocation6], 0 }
   0x2   :  { %12 = vsyncpa [#allocation9], 0 }
   0x3   :  { %13 = vsyncpa [#allocation4], 0  ;;  %s5891_s18 = smov [#allocation5]  }
   0x4   :  { %s31_s19 = sshll.u32 %s5891_s18, 4  ;;  %s32_s19 = int_to_ptr.vmem [resolvable:$true] %s31_s19 }
   0x5   :  { %s5771_s20 = scalar_lea.vmem %s32_s19, 16384  ;;  %p5776_p1 = scmp.lt.s32.totalorder %s32_s19, %s32_s19 }
   0x6   :  { %p5772_p0 = scmp.ne.s32.totalorder %s32_s19, %s5771_s20  ;;  %p5777_p2 = scmp.lt.s32.totalorder %s5771_s20, %s5771_s20 }
   0x8   :  { %p5778_p3 = por %p5777_p2, %p5776_p1 }
   0xa   :  { %p5779_p4 = pnand %p5778_p3, %p5772_p0 }
   0xc   :  { %5782 = shalt.err (!%p5779_p4)
}
   0xd   :  { %s5892_s21 = smov 512   ;;  %s5893_s22 = smov 32  }
   0xe   :  { %37 = dma.hbm_to_vmem [thread:$0]  %s6132_s1, 16384, %s32_s19, [#allocation6], %s5892_s21, %s5892_s21, %s5893_s22  }
   0xf   :  { %s5894_s25 = smov [#allocation8]   ;;  %s5895_s27 = smov [#allocation2]  }
  0x10   :  { %s53_s26 = sshll.u32 %s5894_s25, 4  ;;  %s19_s28 = sshll.u32 %s5895_s27, 4  ;;  %s54_s26 = int_to_ptr.vmem [resolvable:$true] %s53_s26  ;;  %s20_s28 = int_to_ptr.vmem [resolvable:$true] %s19_s28 }
  0x11   :  { %s5791_s29 = scalar_lea.vmem %s54_s26, 65536  ;;  %p5796_p6 = scmp.lt.s32.totalorder %s54_s26, %s54_s26 }
  0x12   :  { %p5792_p5 = scmp.ne.s32.totalorder %s54_s26, %s5791_s29  ;;  %p5797_p7 = scmp.lt.s32.totalorder %s5791_s29, %s5791_s29 }
  0x14   :  { %p5798_p8 = por %p5797_p7, %p5796_p6 }
  0x16   :  { %p5799_p9 = pnand %p5798_p8, %p5792_p5 }
  0x18   :  { %5802 = shalt.err (!%p5799_p9)
}
  0x19   :  { %59 = dma.hbm_to_vmem [thread:$0]  %s6134_s3, 65536, %s54_s26, [#allocation9], %s5892_s21, %s5892_s21, %s5893_s22  }
  0x1a   :  { %s5811_s7 = scalar_lea.vmem %s20_s28, 512  ;;  %p5816_p11 = scmp.lt.s32.totalorder %s20_s28, %s20_s28 }
  0x1b   :  { %p5812_p10 = scmp.ne.s32.totalorder %s20_s28, %s5811_s7  ;;  %p5817_p12 = scmp.lt.s32.totalorder %s5811_s7, %s5811_s7 }
  0x1d   :  { %p5818_p13 = por %p5817_p12, %p5816_p11 }
  0x1f   :  { %p5819_p0 = pnand %p5818_p13, %p5812_p10 }
  0x21   :  { %5822 = shalt.err (!%p5819_p0)
}
  0x22   :  { %s5896_s1 = smov 256   ;;  %s5897_s8 = smov 16  }
  0x23   :  { %25 = dma.hbm_to_vmem [thread:$0]  %s6131_s0, 512, %s20_s28, [#allocation3], %s5896_s1, %s5896_s1, %s5897_s8  }
  0x24   :  { %s5898_s11 = smov [#allocation7]   ;;  %s5899_s13 = smov [#allocation10]  }
  0x25   :  { %s44_s12 = sshll.u32 %s5898_s11, 4  ;;  %s66_s14 = sshll.u32 %s5899_s13, 4  ;;  %s45_s12 = int_to_ptr.vmem [resolvable:$true] %s44_s12  ;;  %s67_s14 = int_to_ptr.vmem [resolvable:$true] %s66_s14 }
  0x26   :  { %s5831_s3 = scalar_lea.vmem %s45_s12, 128  ;;  %p5836_p2 = scmp.lt.s32.totalorder %s45_s12, %s45_s12 }
  0x27   :  { %p5832_p1 = scmp.ne.s32.totalorder %s45_s12, %s5831_s3  ;;  %p5837_p3 = scmp.lt.s32.totalorder %s5831_s3, %s5831_s3 }
  0x29   :  { %p5838_p4 = por %p5837_p3, %p5836_p2 }
  0x2b   :  { %p5839_p5 = pnand %p5838_p4, %p5832_p1 }
  0x2d   :  { %5842 = shalt.err (!%p5839_p5)
}
  0x2e   :  { %47 = dma.hbm_to_vmem [thread:$0]  %s6133_s2, 128, %s45_s12, [#allocation6]  }
  0x2f   :  { %s5851_s17 = scalar_lea.vmem %s67_s14, 128  ;;  %p5856_p7 = scmp.lt.s32.totalorder %s67_s14, %s67_s14 }
  0x30   :  { %p5852_p6 = scmp.ne.s32.totalorder %s67_s14, %s5851_s17  ;;  %p5857_p8 = scmp.lt.s32.totalorder %s5851_s17, %s5851_s17 }
  0x32   :  { %p5858_p9 = por %p5857_p8, %p5856_p7 }
  0x34   :  { %p5859_p10 = pnand %p5858_p9, %p5852_p6 }
  0x36   :  { %5862 = shalt.err (!%p5859_p10)
}
  0x37   :  { %69 = dma.hbm_to_vmem [thread:$0]  %s6135_s4, 128, %s67_s14, [#allocation9]  }
  0x38   :  { %5883 = dma.done.wait [#allocation3], 512  }
  0x39   :  { %5884 = vsyncadd [#allocation3], 4294966784 }
  0x3a   :  { %5885 = dma.done.wait [#allocation6], 16512  }
  0x3b   :  { %5886 = vsyncadd [#allocation6], 4294950784 }
  0x3c   :  { %5887 = dma.done.wait [#allocation9], 65664  }
  0x3d   :  { %5888 = vsyncadd [#allocation9], 4294901632  ;;  %v147_v0 = vld [vmem:[#allocation5 + $0x1c0] sm:$0xff]  ;;  %v148_v2 = vld [vmem:[#allocation5 + $0x1c8] sm:$0xff]  ;;  %s5900_s2 = smov [#allocation11]  }
  0x3e   :  { %v151_v1 = vld [vmem:[#allocation5 + $0x1e0] sm:$0xff]  ;;  %v152_v4 = vld [vmem:[#allocation5 + $0x1e8] sm:$0xff]  ;;  %v88_v54 = vld [vmem:[#allocation2 + $0x18] sm:$0xff]  ;;  %s5016_s4 = sshll.u32 %s5900_s2, 4  ;;  %s5017_s4 = int_to_ptr.vmem [resolvable:$true] %s5016_s4 }
  0x3f   :  { %v5087_v3 = vcombine.high %v147_v0, %v151_v1  ;;  %v5086_v5 = vcombine.low %v147_v0, %v151_v1  ;;  %v139_v6 = vld [vmem:[#allocation5 + $0x180] sm:$0xff]  ;;  %v5089_v8 = vcombine.high %v148_v2, %v152_v4  ;;  %v5088_v9 = vcombine.low %v148_v2, %v152_v4  ;;  %v140_v11 = vld [vmem:[#allocation5 + $0x188] sm:$0xff]  ;;  %s5863_s19 = scalar_lea.vmem %s5017_s4, 2048  ;;  %p5868_p12 = scmp.lt.s32.totalorder %s5017_s4, %s5017_s4 }
  0x40   :  { %v143_v7 = vld [vmem:[#allocation5 + $0x1a0] sm:$0xff]  ;;  %v144_v12 = vld [vmem:[#allocation5 + $0x1a8] sm:$0xff]  ;;  %p5864_p11 = scmp.ne.s32.totalorder %s5017_s4, %s5863_s19  ;;  %p5869_p13 = scmp.lt.s32.totalorder %s5863_s19, %s5863_s19 }
  0x41   :  { %v5079_v10 = vcombine.high %v139_v6, %v143_v7  ;;  %v131_v13 = vld [vmem:[#allocation5 + $0x140] sm:$0xff]  ;;  %901 = vmatprep.subr.bf16.mxu0 %v5087_v3  ;;  %v5081_v14 = vcombine.high %v140_v11, %v144_v12  ;;  %v132_v16 = vld [vmem:[#allocation5 + $0x148] sm:$0xff]  ;;  %944 = vmatprep.subr.bf16.mxu1 %v5089_v8  ;;  %v5078_v18 = vcombine.low %v139_v6, %v143_v7 }
  0x42   :  { %v135_v15 = vld [vmem:[#allocation5 + $0x160] sm:$0xff]  ;;  %v136_v17 = vld [vmem:[#allocation5 + $0x168] sm:$0xff]  ;;  %902 = vmatpush1.bf16.msra.mxu0 %v5086_v5  ;;  %945 = vmatpush1.bf16.msra.mxu1 %v5088_v9  ;;  %v5080_v19 = vcombine.low %v140_v11, %v144_v12  ;;  %p5870_p0 = por %p5869_p13, %p5868_p12 }
  0x43   :  { %903 = vmatprep.subr.bf16.mxu0 %v5079_v10  ;;  %v5071_v20 = vcombine.high %v131_v13, %v135_v15  ;;  %946 = vmatprep.subr.bf16.mxu1 %v5081_v14  ;;  %v5073_v21 = vcombine.high %v132_v16, %v136_v17  ;;  %v123_v22 = vld [vmem:[#allocation5 + $0x100] sm:$0xff]  ;;  %v124_v24 = vld [vmem:[#allocation5 + $0x108] sm:$0xff]  ;;  %v5070_v26 = vcombine.low %v131_v13, %v135_v15 }
  0x44   :  { %v127_v23 = vld [vmem:[#allocation5 + $0x120] sm:$0xff]  ;;  %v128_v25 = vld [vmem:[#allocation5 + $0x128] sm:$0xff]  ;;  %v5072_v27 = vcombine.low %v132_v16, %v136_v17  ;;  %p5871_p1 = pnand %p5870_p0, %p5864_p11 }
  0x45   :  { %v5063_v28 = vcombine.high %v123_v22, %v127_v23  ;;  %v5065_v29 = vcombine.high %v124_v24, %v128_v25  ;;  %v115_v30 = vld [vmem:[#allocation5 + $0xc0] sm:$0xff]  ;;  %v116_v32 = vld [vmem:[#allocation5 + $0xc8] sm:$0xff]  ;;  %v5062_v34 = vcombine.low %v123_v22, %v127_v23  ;;  %v5064_v35 = vcombine.low %v124_v24, %v128_v25 }
  0x46   :  { %904 = vmatpush1.bf16.msra.mxu0 %v5078_v18  ;;  %947 = vmatpush1.bf16.msra.mxu1 %v5080_v19  ;;  %v119_v31 = vld [vmem:[#allocation5 + $0xe0] sm:$0xff]  ;;  %v120_v33 = vld [vmem:[#allocation5 + $0xe8] sm:$0xff] }
  0x47   :  { %905 = vmatprep.subr.bf16.mxu0 %v5071_v20  ;;  %948 = vmatprep.subr.bf16.mxu1 %v5073_v21  ;;  %v5055_v36 = vcombine.high %v115_v30, %v119_v31  ;;  %v5057_v37 = vcombine.high %v116_v32, %v120_v33  ;;  %v107_v38 = vld [vmem:[#allocation5 + $0x80] sm:$0xff]  ;;  %v108_v40 = vld [vmem:[#allocation5 + $0x88] sm:$0xff]  ;;  %v5054_v42 = vcombine.low %v115_v30, %v119_v31 }
  0x48   :  { %v111_v39 = vld [vmem:[#allocation5 + $0xa0] sm:$0xff]  ;;  %v112_v41 = vld [vmem:[#allocation5 + $0xa8] sm:$0xff]  ;;  %v5056_v43 = vcombine.low %v116_v32, %v120_v33 }
  0x49   :  { %v5047_v44 = vcombine.high %v107_v38, %v111_v39  ;;  %v5049_v45 = vcombine.high %v108_v40, %v112_v41  ;;  %v99_v46 = vld [vmem:[#allocation5 + $0x40] sm:$0xff]  ;;  %v100_v48 = vld [vmem:[#allocation5 + $0x48] sm:$0xff]  ;;  %v5046_v50 = vcombine.low %v107_v38, %v111_v39  ;;  %v5048_v51 = vcombine.low %v108_v40, %v112_v41 }
  0x4a   :  { %906 = vmatpush1.bf16.msra.mxu0 %v5070_v26  ;;  %949 = vmatpush1.bf16.msra.mxu1 %v5072_v27  ;;  %v103_v47 = vld [vmem:[#allocation5 + $0x60] sm:$0xff]  ;;  %v104_v49 = vld [vmem:[#allocation5 + $0x68] sm:$0xff] }
  0x4b   :  { %907 = vmatprep.subr.bf16.mxu0 %v5063_v28  ;;  %950 = vmatprep.subr.bf16.mxu1 %v5065_v29  ;;  %v5039_v52 = vcombine.high %v99_v46, %v103_v47  ;;  %v86_v53 = vld [vmem:[#allocation2 + $0x8] sm:$0xff]  ;;  %v5041_v55 = vcombine.high %v100_v48, %v104_v49  ;;  %v91_v56 = vld [vmem:[#allocation5] sm:$0xff]  ;;  %v5038_v61 = vcombine.low %v99_v46, %v103_v47 }
  0x4c   :  { %v95_v57 = vld [vmem:[#allocation5 + $0x20] sm:$0xff]  ;;  %v5948_v58 = vpack.c.bf16 %v88_v54, %v86_v53  ;;  %v92_v59 = vld [vmem:[#allocation5 + $0x8] sm:$0xff]  ;;  %v5040_v62 = vcombine.low %v100_v48, %v104_v49 }
  0x4d   :  { %v96_v60 = vld [vmem:[#allocation5 + $0x28] sm:$0xff]  ;;  %v5031_v63 = vcombine.high %v91_v56, %v95_v57  ;;  %v211_v1 = vld [vmem:[#allocation5 + $0x3c0] sm:$0xff]  ;;  %v5030_v5 = vcombine.low %v91_v56, %v95_v57 }
  0x4e   :  { %908 = vmatpush1.bf16.msra.mxu0 %v5062_v34  ;;  %951 = vmatpush1.bf16.msra.mxu1 %v5064_v35  ;;  %v5033_v0 = vcombine.high %v92_v59, %v96_v60  ;;  %v215_v2 = vld [vmem:[#allocation5 + $0x3e0] sm:$0xff]  ;;  %v212_v3 = vld [vmem:[#allocation5 + $0x3c8] sm:$0xff]  ;;  %v5032_v6 = vcombine.low %v92_v59, %v96_v60 }
  0x4f   :  { %909 = vmatprep.subr.bf16.mxu0 %v5055_v36  ;;  %952 = vmatprep.subr.bf16.mxu1 %v5057_v37  ;;  %v216_v4 = vld [vmem:[#allocation5 + $0x3e8] sm:$0xff]  ;;  %v5151_v7 = vcombine.high %v211_v1, %v215_v2  ;;  %v203_v9 = vld [vmem:[#allocation5 + $0x380] sm:$0xff]  ;;  %v5150_v13 = vcombine.low %v211_v1, %v215_v2  ;;  %v149_v2 = vld [vmem:[#allocation5 + $0x1d0] sm:$0xff] }
  0x50   :  { %933 = vmatprep.mubr.bf16.mxu0 %v5948_v58  ;;  %976 = vmatprep.mubr.bf16.mxu1 %v5948_v58  ;;  %v5153_v8 = vcombine.high %v212_v3, %v216_v4  ;;  %v207_v10 = vld [vmem:[#allocation5 + $0x3a0] sm:$0xff]  ;;  %v204_v11 = vld [vmem:[#allocation5 + $0x388] sm:$0xff]  ;;  %v5152_v14 = vcombine.low %v212_v3, %v216_v4  ;;  %v153_v3 = vld [vmem:[#allocation5 + $0x1f0] sm:$0xff] }
  0x51   :  { %v208_v12 = vld [vmem:[#allocation5 + $0x3a8] sm:$0xff]  ;;  %v5143_v15 = vcombine.high %v203_v9, %v207_v10  ;;  %v195_v17 = vld [vmem:[#allocation5 + $0x340] sm:$0xff]  ;;  %v5142_v21 = vcombine.low %v203_v9, %v207_v10  ;;  %v150_v4 = vld [vmem:[#allocation5 + $0x1d8] sm:$0xff]  ;;  %v5091_v10 = vcombine.high %v149_v2, %v153_v3 }
  0x52   :  { %910 = vmatpush1.bf16.msra.mxu0 %v5054_v42  ;;  %953 = vmatpush1.bf16.msra.mxu1 %v5056_v43  ;;  %v5145_v16 = vcombine.high %v204_v11, %v208_v12  ;;  %v199_v18 = vld [vmem:[#allocation5 + $0x360] sm:$0xff]  ;;  %v196_v19 = vld [vmem:[#allocation5 + $0x348] sm:$0xff]  ;;  %v5144_v22 = vcombine.low %v204_v11, %v208_v12  ;;  %v141_v12 = vld [vmem:[#allocation5 + $0x190] sm:$0xff] }
  0x53   :  { %911 = vmatprep.subr.bf16.mxu0 %v5047_v44  ;;  %954 = vmatprep.subr.bf16.mxu1 %v5049_v45  ;;  %v200_v20 = vld [vmem:[#allocation5 + $0x368] sm:$0xff]  ;;  %v5135_v23 = vcombine.high %v195_v17, %v199_v18  ;;  %v187_v25 = vld [vmem:[#allocation5 + $0x300] sm:$0xff]  ;;  %v5134_v29 = vcombine.low %v195_v17, %v199_v18  ;;  %v5090_v17 = vcombine.low %v149_v2, %v153_v3 }
  0x54   :  { %v5137_v24 = vcombine.high %v196_v19, %v200_v20  ;;  %v191_v26 = vld [vmem:[#allocation5 + $0x320] sm:$0xff]  ;;  %v188_v27 = vld [vmem:[#allocation5 + $0x308] sm:$0xff]  ;;  %v5136_v30 = vcombine.low %v196_v19, %v200_v20 }
  0x55   :  { %v192_v28 = vld [vmem:[#allocation5 + $0x328] sm:$0xff]  ;;  %v5127_v31 = vcombine.high %v187_v25, %v191_v26  ;;  %v179_v33 = vld [vmem:[#allocation5 + $0x2c0] sm:$0xff]  ;;  %v5126_v37 = vcombine.low %v187_v25, %v191_v26 }
  0x56   :  { %912 = vmatpush1.bf16.msra.mxu0 %v5046_v50  ;;  %955 = vmatpush1.bf16.msra.mxu1 %v5048_v51  ;;  %v5129_v32 = vcombine.high %v188_v27, %v192_v28  ;;  %v183_v34 = vld [vmem:[#allocation5 + $0x2e0] sm:$0xff]  ;;  %v180_v35 = vld [vmem:[#allocation5 + $0x2c8] sm:$0xff]  ;;  %v5128_v38 = vcombine.low %v188_v27, %v192_v28 }
  0x57   :  { %913 = vmatprep.subr.bf16.mxu0 %v5039_v52  ;;  %956 = vmatprep.subr.bf16.mxu1 %v5041_v55  ;;  %v184_v36 = vld [vmem:[#allocation5 + $0x2e8] sm:$0xff]  ;;  %v5119_v39 = vcombine.high %v179_v33, %v183_v34  ;;  %v171_v41 = vld [vmem:[#allocation5 + $0x280] sm:$0xff]  ;;  %v5118_v45 = vcombine.low %v179_v33, %v183_v34 }
  0x58   :  { %v5121_v40 = vcombine.high %v180_v35, %v184_v36  ;;  %v175_v42 = vld [vmem:[#allocation5 + $0x2a0] sm:$0xff]  ;;  %v172_v43 = vld [vmem:[#allocation5 + $0x288] sm:$0xff]  ;;  %v5120_v46 = vcombine.low %v180_v35, %v184_v36 }
  0x59   :  { %v176_v44 = vld [vmem:[#allocation5 + $0x2a8] sm:$0xff]  ;;  %v5111_v47 = vcombine.high %v171_v41, %v175_v42  ;;  %v163_v49 = vld [vmem:[#allocation5 + $0x240] sm:$0xff]  ;;  %v5110_v53 = vcombine.low %v171_v41, %v175_v42 }
  0x5a   :  { %914 = vmatpush1.bf16.msra.mxu0 %v5038_v61  ;;  %957 = vmatpush1.bf16.msra.mxu1 %v5040_v62  ;;  %v5113_v48 = vcombine.high %v172_v43, %v176_v44  ;;  %v167_v50 = vld [vmem:[#allocation5 + $0x260] sm:$0xff]  ;;  %v164_v51 = vld [vmem:[#allocation5 + $0x248] sm:$0xff]  ;;  %v5112_v54 = vcombine.low %v172_v43, %v176_v44  ;;  %v109_v44 = vld [vmem:[#allocation5 + $0x90] sm:$0xff] }
  0x5b   :  { %915 = vmatprep.subr.bf16.mxu0 %v5031_v63  ;;  %958 = vmatprep.subr.bf16.mxu1 %v5033_v0  ;;  %v168_v52 = vld [vmem:[#allocation5 + $0x268] sm:$0xff]  ;;  %v5103_v55 = vcombine.high %v163_v49, %v167_v50  ;;  %v155_v57 = vld [vmem:[#allocation5 + $0x200] sm:$0xff]  ;;  %v5102_v62 = vcombine.low %v163_v49, %v167_v50 }
  0x5c   :  { %v5105_v56 = vcombine.high %v164_v51, %v168_v52  ;;  %v159_v59 = vld [vmem:[#allocation5 + $0x220] sm:$0xff]  ;;  %v156_v60 = vld [vmem:[#allocation5 + $0x208] sm:$0xff]  ;;  %v5104_v63 = vcombine.low %v164_v51, %v168_v52  ;;  %v101_v52 = vld [vmem:[#allocation5 + $0x50] sm:$0xff] }
  0x5d   :  { %v160_v61 = vld [vmem:[#allocation5 + $0x228] sm:$0xff]  ;;  %v5095_v0 = vcombine.high %v155_v57, %v159_v59 }
  0x5e   :  { %916 = vmatpush1.bf16.msra.mxu0 %v5030_v5  ;;  %959 = vmatpush1.bf16.msra.mxu1 %v5032_v6  ;;  %v5097_v1 = vcombine.high %v156_v60, %v160_v61  ;;  %v154_v5 = vld [vmem:[#allocation5 + $0x1f8] sm:$0xff]  ;;  %v5094_v6 = vcombine.low %v155_v57, %v159_v59  ;;  %v5096_v9 = vcombine.low %v156_v60, %v160_v61  ;;  %v93_v61 = vld [vmem:[#allocation5 + $0x10] sm:$0xff] }
  0x5f   :  { %917 = vmatprep.subr.bf16.mxu0 %v5151_v7  ;;  %960 = vmatprep.subr.bf16.mxu1 %v5153_v8  ;;  %v85_v7 = vld [vmem:[#allocation2] sm:$0xff]  ;;  %v87_v8 = vld [vmem:[#allocation2 + $0x10] sm:$0xff]  ;;  %v5093_v11 = vcombine.high %v150_v4, %v154_v5  ;;  %v5092_v18 = vcombine.low %v150_v4, %v154_v5 }
  0x60   :  { %v213_v5 = vld [vmem:[#allocation5 + $0x3d0] sm:$0xff] }
  0x62   :  { %918 = vmatpush2.bf16.msra.mxu0 %v5150_v13  ;;  %961 = vmatpush2.bf16.msra.mxu1 %v5152_v14  ;;  %v145_v13 = vld [vmem:[#allocation5 + $0x1b0] sm:$0xff]  ;;  %v5952_v14 = vpack.c.bf16 %v87_v8, %v85_v7  ;;  %v214_v7 = vld [vmem:[#allocation5 + $0x3d8] sm:$0xff] }
  0x63   :  { %919 = vmatprep.subr.bf16.mxu0 %v5143_v15  ;;  %962 = vmatprep.subr.bf16.mxu1 %v5145_v16  ;;  %v142_v15 = vld [vmem:[#allocation5 + $0x198] sm:$0xff]  ;;  %v5083_v19 = vcombine.high %v141_v12, %v145_v13  ;;  %v5082_v25 = vcombine.low %v141_v12, %v145_v13  ;;  %v205_v13 = vld [vmem:[#allocation5 + $0x390] sm:$0xff] }
  0x64   :  { %v146_v16 = vld [vmem:[#allocation5 + $0x1b8] sm:$0xff] }
  0x65   :  { %v5085_v20 = vcombine.high %v142_v15, %v146_v16  ;;  %v5084_v26 = vcombine.low %v142_v15, %v146_v16  ;;  %v218_v8 = vld [vmem:[#allocation5 + $0x3f8] sm:$0xff]  ;;  %v209_v15 = vld [vmem:[#allocation5 + $0x3b0] sm:$0xff] }
  0x66   :  { %920 = vmatpush2.bf16.msra.mxu0 %v5142_v21  ;;  %963 = vmatpush2.bf16.msra.mxu1 %v5144_v22  ;;  %v133_v21 = vld [vmem:[#allocation5 + $0x150] sm:$0xff]  ;;  %v5157_v12 = vcombine.high %v214_v7, %v218_v8  ;;  %v206_v16 = vld [vmem:[#allocation5 + $0x398] sm:$0xff] }
  0x67   :  { %921 = vmatprep.subr.bf16.mxu0 %v5135_v23  ;;  %964 = vmatprep.subr.bf16.mxu1 %v5137_v24  ;;  %v137_v22 = vld [vmem:[#allocation5 + $0x170] sm:$0xff]  ;;  %v134_v23 = vld [vmem:[#allocation5 + $0x158] sm:$0xff] }
  0x68   :  { %v138_v24 = vld [vmem:[#allocation5 + $0x178] sm:$0xff]  ;;  %v5075_v27 = vcombine.high %v133_v21, %v137_v22  ;;  %v5074_v33 = vcombine.low %v133_v21, %v137_v22  ;;  %v197_v22 = vld [vmem:[#allocation5 + $0x350] sm:$0xff] }
  0x69   :  { %v5077_v28 = vcombine.high %v134_v23, %v138_v24  ;;  %v5076_v34 = vcombine.low %v134_v23, %v138_v24  ;;  %v201_v23 = vld [vmem:[#allocation5 + $0x370] sm:$0xff]  ;;  %v198_v24 = vld [vmem:[#allocation5 + $0x358] sm:$0xff] }
  0x6a   :  { %922 = vmatpush2.bf16.msra.mxu0 %v5134_v29  ;;  %965 = vmatpush2.bf16.msra.mxu1 %v5136_v30  ;;  %v125_v29 = vld [vmem:[#allocation5 + $0x110] sm:$0xff] }
  0x6b   :  { %923 = vmatprep.subr.bf16.mxu0 %v5127_v31  ;;  %966 = vmatprep.subr.bf16.mxu1 %v5129_v32  ;;  %v129_v30 = vld [vmem:[#allocation5 + $0x130] sm:$0xff]  ;;  %v126_v31 = vld [vmem:[#allocation5 + $0x118] sm:$0xff] }
  0x6c   :  { %v130_v32 = vld [vmem:[#allocation5 + $0x138] sm:$0xff]  ;;  %v5067_v35 = vcombine.high %v125_v29, %v129_v30  ;;  %v5066_v41 = vcombine.low %v125_v29, %v129_v30  ;;  %v189_v30 = vld [vmem:[#allocation5 + $0x310] sm:$0xff] }
  0x6d   :  { %v5069_v36 = vcombine.high %v126_v31, %v130_v32  ;;  %v5068_v42 = vcombine.low %v126_v31, %v130_v32  ;;  %v193_v31 = vld [vmem:[#allocation5 + $0x330] sm:$0xff]  ;;  %v190_v32 = vld [vmem:[#allocation5 + $0x318] sm:$0xff] }
  0x6e   :  { %924 = vmatpush2.bf16.msra.mxu0 %v5126_v37  ;;  %967 = vmatpush2.bf16.msra.mxu1 %v5128_v38  ;;  %v117_v37 = vld [vmem:[#allocation5 + $0xd0] sm:$0xff] }
  0x6f   :  { %925 = vmatprep.subr.bf16.mxu0 %v5119_v39  ;;  %968 = vmatprep.subr.bf16.mxu1 %v5121_v40  ;;  %v121_v38 = vld [vmem:[#allocation5 + $0xf0] sm:$0xff]  ;;  %v118_v39 = vld [vmem:[#allocation5 + $0xd8] sm:$0xff] }
  0x70   :  { %v122_v40 = vld [vmem:[#allocation5 + $0xf8] sm:$0xff]  ;;  %v5059_v43 = vcombine.high %v117_v37, %v121_v38 }
  0x71   :  { %v5060_v49 = vcombine.low %v118_v39, %v122_v40 }
  0x72   :  { %926 = vmatpush2.bf16.msra.mxu0 %v5118_v45  ;;  %969 = vmatpush2.bf16.msra.mxu1 %v5120_v46  ;;  %v113_v45 = vld [vmem:[#allocation5 + $0xb0] sm:$0xff]  ;;  %v110_v46 = vld [vmem:[#allocation5 + $0x98] sm:$0xff] }
  0x73   :  { %927 = vmatprep.subr.bf16.mxu0 %v5111_v47  ;;  %970 = vmatprep.subr.bf16.mxu1 %v5113_v48  ;;  %v114_v47 = vld [vmem:[#allocation5 + $0xb8] sm:$0xff]  ;;  %v5058_v48 = vcombine.low %v117_v37, %v121_v38  ;;  %v5051_v50 = vcombine.high %v109_v44, %v113_v45  ;;  %v181_v38 = vld [vmem:[#allocation5 + $0x2d0] sm:$0xff] }
  0x74   :  { %v5053_v51 = vcombine.high %v110_v46, %v114_v47  ;;  %v5052_v57 = vcombine.low %v110_v46, %v114_v47  ;;  %v177_v46 = vld [vmem:[#allocation5 + $0x2b0] sm:$0xff]  ;;  %v174_v47 = vld [vmem:[#allocation5 + $0x298] sm:$0xff] }
  0x76   :  { %928 = vmatpush2.bf16.msra.mxu0 %v5110_v53  ;;  %971 = vmatpush2.bf16.msra.mxu1 %v5112_v54  ;;  %v105_v53 = vld [vmem:[#allocation5 + $0x70] sm:$0xff]  ;;  %v102_v54 = vld [vmem:[#allocation5 + $0x58] sm:$0xff] }
  0x77   :  { %929 = vmatprep.subr.bf16.mxu0 %v5103_v55  ;;  %972 = vmatprep.subr.bf16.mxu1 %v5105_v56  ;;  %v106_v55 = vld [vmem:[#allocation5 + $0x78] sm:$0xff]  ;;  %v5050_v56 = vcombine.low %v109_v44, %v113_v45  ;;  %v5043_v59 = vcombine.high %v101_v52, %v105_v53  ;;  %v173_v45 = vld [vmem:[#allocation5 + $0x290] sm:$0xff] }
  0x78   :  { %v5045_v60 = vcombine.high %v102_v54, %v106_v55  ;;  %v5044_v2 = vcombine.low %v102_v54, %v106_v55  ;;  %v169_v54 = vld [vmem:[#allocation5 + $0x270] sm:$0xff]  ;;  %v166_v55 = vld [vmem:[#allocation5 + $0x258] sm:$0xff] }
  0x7a   :  { %930 = vmatpush2.bf16.msra.mxu0 %v5102_v62  ;;  %973 = vmatpush2.bf16.msra.mxu1 %v5104_v63  ;;  %v97_v62 = vld [vmem:[#allocation5 + $0x30] sm:$0xff]  ;;  %v94_v63 = vld [vmem:[#allocation5 + $0x18] sm:$0xff] }
  0x7b   :  { %931 = vmatprep.subr.bf16.mxu0 %v5095_v0  ;;  %974 = vmatprep.subr.bf16.mxu1 %v5097_v1  ;;  %v98_v0 = vld [vmem:[#allocation5 + $0x38] sm:$0xff]  ;;  %v5042_v1 = vcombine.low %v101_v52, %v105_v53  ;;  %v5035_v3 = vcombine.high %v93_v61, %v97_v62  ;;  %v165_v53 = vld [vmem:[#allocation5 + $0x250] sm:$0xff] }
  0x7c   :  { %v5037_v4 = vcombine.high %v94_v63, %v98_v0 }
  0x7e   :  { %932 = vmatpush2.bf16.msra.mxu0 %v5094_v6  ;;  %975 = vmatpush2.bf16.msra.mxu1 %v5096_v9  ;;  %v217_v6 = vld [vmem:[#allocation5 + $0x3f0] sm:$0xff]  ;;  %v5034_v9 = vcombine.low %v93_v61, %v97_v62 }
  0x7f   :  { %987 = vmatprep.subr.bf16.mxu0 %v5091_v10  ;;  %1030 = vmatprep.subr.bf16.mxu1 %v5093_v11  ;;  %v5036_v10 = vcombine.low %v94_v63, %v98_v0  ;;  %v5155_v11 = vcombine.high %v213_v5, %v217_v6  ;;  %v157_v62 = vld [vmem:[#allocation5 + $0x210] sm:$0xff]  ;;  %v158_v0 = vld [vmem:[#allocation5 + $0x218] sm:$0xff] }
  0x80   :  { %v161_v63 = vld [vmem:[#allocation5 + $0x230] sm:$0xff] }
  0x81   :  { %934 = vmatmul.mubr.bf16.vlgmr.msra.gmra.mxu0 %v5952_v14  ;;  %977 = vmatmul.mubr.bf16.vlgmr.msra.gmra.mxu1 %v5952_v14 }
  0x82   :  { %988 = vmatpush1.bf16.msra.mxu0 %v5090_v17  ;;  %1031 = vmatpush1.bf16.msra.mxu1 %v5092_v18  ;;  %v210_v17 = vld [vmem:[#allocation5 + $0x3b8] sm:$0xff]  ;;  %v5154_v18 = vcombine.low %v213_v5, %v217_v6  ;;  %v1249_v6 = vld [vmem:[#allocation8 + $0x1c0] sm:$0xff] }
  0x83   :  { %989 = vmatprep.subr.bf16.mxu0 %v5083_v19  ;;  %1032 = vmatprep.subr.bf16.mxu1 %v5085_v20  ;;  %v5156_v19 = vcombine.low %v214_v7, %v218_v8  ;;  %v5147_v20 = vcombine.high %v205_v13, %v209_v15  ;;  %v5149_v21 = vcombine.high %v206_v16, %v210_v17  ;;  %v1253_v7 = vld [vmem:[#allocation8 + $0x1e0] sm:$0xff] }
  0x84   :  { %1019 = vmatprep.mubr.bf16.mxu0 %v5948_v58  ;;  %1062 = vmatprep.mubr.bf16.mxu1 %v5948_v58  ;;  %v5061_v58 = vcombine.high %v118_v39, %v122_v40  ;;  %v185_v39 = vld [vmem:[#allocation5 + $0x2f0] sm:$0xff]  ;;  %v182_v40 = vld [vmem:[#allocation5 + $0x2d8] sm:$0xff]  ;;  %v1377_v8 = vld [vmem:[#allocation8 + $0x5c0] sm:$0xff] }
  0x86   :  { %990 = vmatpush1.bf16.msra.mxu0 %v5082_v25  ;;  %1033 = vmatpush1.bf16.msra.mxu1 %v5084_v26  ;;  %v202_v25 = vld [vmem:[#allocation5 + $0x378] sm:$0xff]  ;;  %v5146_v26 = vcombine.low %v205_v13, %v209_v15  ;;  %v1241_v15 = vld [vmem:[#allocation8 + $0x180] sm:$0xff] }
  0x87   :  { %991 = vmatprep.subr.bf16.mxu0 %v5075_v27  ;;  %1034 = vmatprep.subr.bf16.mxu1 %v5077_v28  ;;  %v5148_v27 = vcombine.low %v206_v16, %v210_v17  ;;  %v5139_v28 = vcombine.high %v197_v22, %v201_v23  ;;  %v5141_v29 = vcombine.high %v198_v24, %v202_v25  ;;  %v1245_v16 = vld [vmem:[#allocation8 + $0x1a0] sm:$0xff] }
  0x88   :  { %v1369_v17 = vld [vmem:[#allocation8 + $0x580] sm:$0xff] }
  0x8a   :  { %992 = vmatpush1.bf16.msra.mxu0 %v5074_v33  ;;  %1035 = vmatpush1.bf16.msra.mxu1 %v5076_v34  ;;  %v194_v33 = vld [vmem:[#allocation5 + $0x338] sm:$0xff]  ;;  %v5138_v34 = vcombine.low %v197_v22, %v201_v23  ;;  %v1233_v23 = vld [vmem:[#allocation8 + $0x140] sm:$0xff] }
  0x8b   :  { %993 = vmatprep.subr.bf16.mxu0 %v5067_v35  ;;  %1036 = vmatprep.subr.bf16.mxu1 %v5069_v36  ;;  %v5140_v35 = vcombine.low %v198_v24, %v202_v25  ;;  %v5131_v36 = vcombine.high %v189_v30, %v193_v31  ;;  %v5133_v37 = vcombine.high %v190_v32, %v194_v33  ;;  %v1237_v24 = vld [vmem:[#allocation8 + $0x160] sm:$0xff] }
  0x8c   :  { %v1361_v25 = vld [vmem:[#allocation8 + $0x540] sm:$0xff] }
  0x8e   :  { %994 = vmatpush1.bf16.msra.mxu0 %v5066_v41  ;;  %1037 = vmatpush1.bf16.msra.mxu1 %v5068_v42  ;;  %v186_v41 = vld [vmem:[#allocation5 + $0x2f8] sm:$0xff]  ;;  %v5130_v42 = vcombine.low %v189_v30, %v193_v31  ;;  %v1225_v31 = vld [vmem:[#allocation8 + $0x100] sm:$0xff] }
  0x8f   :  { %995 = vmatprep.subr.bf16.mxu0 %v5059_v43  ;;  %1038 = vmatprep.subr.bf16.mxu1 %v5061_v58  ;;  %v5132_v43 = vcombine.low %v190_v32, %v194_v33  ;;  %v5123_v58 = vcombine.high %v181_v38, %v185_v39  ;;  %v5125_v44 = vcombine.high %v182_v40, %v186_v41  ;;  %v1229_v32 = vld [vmem:[#allocation8 + $0x120] sm:$0xff] }
  0x90   :  { %v1353_v33 = vld [vmem:[#allocation8 + $0x500] sm:$0xff] }
  0x92   :  { %996 = vmatpush1.bf16.msra.mxu0 %v5058_v48  ;;  %1039 = vmatpush1.bf16.msra.mxu1 %v5060_v49  ;;  %v178_v48 = vld [vmem:[#allocation5 + $0x2b8] sm:$0xff]  ;;  %v5122_v49 = vcombine.low %v181_v38, %v185_v39  ;;  %v1217_v38 = vld [vmem:[#allocation8 + $0xc0] sm:$0xff] }
  0x93   :  { %997 = vmatprep.subr.bf16.mxu0 %v5051_v50  ;;  %1040 = vmatprep.subr.bf16.mxu1 %v5053_v51  ;;  %v5124_v50 = vcombine.low %v182_v40, %v186_v41  ;;  %v5115_v51 = vcombine.high %v173_v45, %v177_v46  ;;  %v5117_v52 = vcombine.high %v174_v47, %v178_v48  ;;  %v1221_v39 = vld [vmem:[#allocation8 + $0xe0] sm:$0xff] }
  0x94   :  { %v1345_v40 = vld [vmem:[#allocation8 + $0x4c0] sm:$0xff] }
  0x95   :  { %v1349_v41 = vld [vmem:[#allocation8 + $0x4e0] sm:$0xff] }
  0x96   :  { %998 = vmatpush1.bf16.msra.mxu0 %v5050_v56  ;;  %1041 = vmatpush1.bf16.msra.mxu1 %v5052_v57  ;;  %v170_v56 = vld [vmem:[#allocation5 + $0x278] sm:$0xff]  ;;  %v5114_v57 = vcombine.low %v173_v45, %v177_v46  ;;  %v1209_v45 = vld [vmem:[#allocation8 + $0x80] sm:$0xff] }
  0x97   :  { %999 = vmatprep.subr.bf16.mxu0 %v5043_v59  ;;  %1042 = vmatprep.subr.bf16.mxu1 %v5045_v60  ;;  %v5116_v59 = vcombine.low %v174_v47, %v178_v48  ;;  %v5107_v60 = vcombine.high %v165_v53, %v169_v54  ;;  %v5109_v61 = vcombine.high %v166_v55, %v170_v56  ;;  %v1213_v46 = vld [vmem:[#allocation8 + $0xa0] sm:$0xff] }
  0x98   :  { %v1337_v47 = vld [vmem:[#allocation8 + $0x480] sm:$0xff] }
  0x99   :  { %v1341_v48 = vld [vmem:[#allocation8 + $0x4a0] sm:$0xff] }
  0x9a   :  { %1000 = vmatpush1.bf16.msra.mxu0 %v5042_v1  ;;  %1043 = vmatpush1.bf16.msra.mxu1 %v5044_v2  ;;  %v162_v1 = vld [vmem:[#allocation5 + $0x238] sm:$0xff]  ;;  %v5106_v2 = vcombine.low %v165_v53, %v169_v54  ;;  %v1201_v53 = vld [vmem:[#allocation8 + $0x40] sm:$0xff] }
  0x9b   :  { %1001 = vmatprep.subr.bf16.mxu0 %v5035_v3  ;;  %1044 = vmatprep.subr.bf16.mxu1 %v5037_v4  ;;  %v5108_v3 = vcombine.low %v166_v55, %v170_v56  ;;  %v5099_v4 = vcombine.high %v157_v62, %v161_v63  ;;  %v5101_v5 = vcombine.high %v158_v0, %v162_v1  ;;  %v1205_v54 = vld [vmem:[#allocation8 + $0x60] sm:$0xff] }
  0x9c   :  { %v1329_v55 = vld [vmem:[#allocation8 + $0x440] sm:$0xff] }
  0x9d   :  { %v1333_v56 = vld [vmem:[#allocation8 + $0x460] sm:$0xff] }
  0x9e   :  { %1002 = vmatpush1.bf16.msra.mxu0 %v5034_v9  ;;  %1045 = vmatpush1.bf16.msra.mxu1 %v5036_v10  ;;  %v1381_v9 = vld [vmem:[#allocation8 + $0x5e0] sm:$0xff]  ;;  %v5098_v10 = vcombine.low %v157_v62, %v161_v63 }
  0x9f   :  { %1003 = vmatprep.subr.bf16.mxu0 %v5155_v11  ;;  %1046 = vmatprep.subr.bf16.mxu1 %v5157_v12  ;;  %v5100_v11 = vcombine.low %v158_v0, %v162_v1  ;;  %v5231_v12 = vcombine.high %v1249_v6, %v1253_v7  ;;  %v5359_v13 = vcombine.high %v1377_v8, %v1381_v9  ;;  %v1193_v62 = vld [vmem:[#allocation8] sm:$0xff] }
  0xa0   :  { %v1197_v63 = vld [vmem:[#allocation8 + $0x20] sm:$0xff] }
  0xa1   :  { %v1321_v0 = vld [vmem:[#allocation8 + $0x400] sm:$0xff] }
  0xa2   :  { %1004 = vmatpush2.bf16.msra.mxu0 %v5154_v18  ;;  %1047 = vmatpush2.bf16.msra.mxu1 %v5156_v19  ;;  %v1373_v18 = vld [vmem:[#allocation8 + $0x5a0] sm:$0xff]  ;;  %v5230_v19 = vcombine.low %v1249_v6, %v1253_v7 }
  0xa3   :  { %1005 = vmatprep.subr.bf16.mxu0 %v5147_v20  ;;  %1048 = vmatprep.subr.bf16.mxu1 %v5149_v21  ;;  %v5358_v20 = vcombine.low %v1377_v8, %v1381_v9  ;;  %v5223_v21 = vcombine.high %v1241_v15, %v1245_v16  ;;  %v5351_v22 = vcombine.high %v1369_v17, %v1373_v18  ;;  %v1325_v1 = vld [vmem:[#allocation8 + $0x420] sm:$0xff] }
  0xa4   :  { %v1313_v6 = vld [vmem:[#allocation8 + $0x3c0] sm:$0xff] }
  0xa5   :  { %v1317_v7 = vld [vmem:[#allocation8 + $0x3e0] sm:$0xff] }
  0xa6   :  { %1006 = vmatpush2.bf16.msra.mxu0 %v5146_v26  ;;  %1049 = vmatpush2.bf16.msra.mxu1 %v5148_v27  ;;  %v1365_v26 = vld [vmem:[#allocation8 + $0x560] sm:$0xff]  ;;  %v5222_v27 = vcombine.low %v1241_v15, %v1245_v16 }
  0xa7   :  { %1007 = vmatprep.subr.bf16.mxu0 %v5139_v28  ;;  %1050 = vmatprep.subr.bf16.mxu1 %v5141_v29  ;;  %v5350_v28 = vcombine.low %v1369_v17, %v1373_v18  ;;  %v5215_v29 = vcombine.high %v1233_v23, %v1237_v24  ;;  %v5343_v30 = vcombine.high %v1361_v25, %v1365_v26  ;;  %v1441_v8 = vld [vmem:[#allocation8 + $0x7c0] sm:$0xff] }
  0xa8   :  { %v1445_v9 = vld [vmem:[#allocation8 + $0x7e0] sm:$0xff] }
  0xa9   :  { %v1305_v15 = vld [vmem:[#allocation8 + $0x380] sm:$0xff] }
  0xaa   :  { %1008 = vmatpush2.bf16.msra.mxu0 %v5138_v34  ;;  %1051 = vmatpush2.bf16.msra.mxu1 %v5140_v35  ;;  %v1357_v34 = vld [vmem:[#allocation8 + $0x520] sm:$0xff]  ;;  %v5214_v35 = vcombine.low %v1233_v23, %v1237_v24 }
  0xab   :  { %1009 = vmatprep.subr.bf16.mxu0 %v5131_v36  ;;  %1052 = vmatprep.subr.bf16.mxu1 %v5133_v37  ;;  %v5342_v36 = vcombine.low %v1361_v25, %v1365_v26  ;;  %v5207_v37 = vcombine.high %v1225_v31, %v1229_v32  ;;  %v1309_v16 = vld [vmem:[#allocation8 + $0x3a0] sm:$0xff] }
  0xac   :  { %v1433_v17 = vld [vmem:[#allocation8 + $0x780] sm:$0xff] }
  0xad   :  { %v1437_v18 = vld [vmem:[#allocation8 + $0x7a0] sm:$0xff] }
  0xae   :  { %1010 = vmatpush2.bf16.msra.mxu0 %v5130_v42  ;;  %1053 = vmatpush2.bf16.msra.mxu1 %v5132_v43  ;;  %v5206_v42 = vcombine.low %v1225_v31, %v1229_v32  ;;  %v5334_v43 = vcombine.low %v1353_v33, %v1357_v34  ;;  %v1297_v23 = vld [vmem:[#allocation8 + $0x340] sm:$0xff] }
  0xaf   :  { %1011 = vmatprep.subr.bf16.mxu0 %v5123_v58  ;;  %1054 = vmatprep.subr.bf16.mxu1 %v5125_v44  ;;  %v5199_v58 = vcombine.high %v1217_v38, %v1221_v39  ;;  %v5327_v44 = vcombine.high %v1345_v40, %v1349_v41  ;;  %v1301_v24 = vld [vmem:[#allocation8 + $0x360] sm:$0xff] }
  0xb0   :  { %v1425_v25 = vld [vmem:[#allocation8 + $0x740] sm:$0xff] }
  0xb1   :  { %v1429_v26 = vld [vmem:[#allocation8 + $0x760] sm:$0xff] }
  0xb2   :  { %1012 = vmatpush2.bf16.msra.mxu0 %v5122_v49  ;;  %1055 = vmatpush2.bf16.msra.mxu1 %v5124_v50  ;;  %v5198_v49 = vcombine.low %v1217_v38, %v1221_v39  ;;  %v5326_v50 = vcombine.low %v1345_v40, %v1349_v41  ;;  %v1289_v31 = vld [vmem:[#allocation8 + $0x300] sm:$0xff] }
  0xb3   :  { %1013 = vmatprep.subr.bf16.mxu0 %v5115_v51  ;;  %1056 = vmatprep.subr.bf16.mxu1 %v5117_v52  ;;  %v5191_v51 = vcombine.high %v1209_v45, %v1213_v46  ;;  %v5319_v52 = vcombine.high %v1337_v47, %v1341_v48  ;;  %v1293_v32 = vld [vmem:[#allocation8 + $0x320] sm:$0xff] }
  0xb4   :  { %v1281_v38 = vld [vmem:[#allocation8 + $0x2c0] sm:$0xff] }
  0xb5   :  { %v1285_v39 = vld [vmem:[#allocation8 + $0x2e0] sm:$0xff] }
  0xb6   :  { %1014 = vmatpush2.bf16.msra.mxu0 %v5114_v57  ;;  %1057 = vmatpush2.bf16.msra.mxu1 %v5116_v59  ;;  %v5190_v57 = vcombine.low %v1209_v45, %v1213_v46  ;;  %v5318_v59 = vcombine.low %v1337_v47, %v1341_v48  ;;  %v1409_v40 = vld [vmem:[#allocation8 + $0x6c0] sm:$0xff] }
  0xb7   :  { %1015 = vmatprep.subr.bf16.mxu0 %v5107_v60  ;;  %1058 = vmatprep.subr.bf16.mxu1 %v5109_v61  ;;  %v5183_v60 = vcombine.high %v1201_v53, %v1205_v54  ;;  %v5311_v61 = vcombine.high %v1329_v55, %v1333_v56  ;;  %v1413_v41 = vld [vmem:[#allocation8 + $0x6e0] sm:$0xff] }
  0xb8   :  { %v1277_v45 = vld [vmem:[#allocation8 + $0x2a0] sm:$0xff]  ;;  %v5391_v46 = vcombine.high %v1409_v40, %v1413_v41 }
  0xb9   :  { %v5960_v47 = vld [vmem:[#allocation8 + $0x9c0] sm:$0xff] }
  0xba   :  { %1016 = vmatpush2.bf16.msra.mxu0 %v5106_v2  ;;  %1059 = vmatpush2.bf16.msra.mxu1 %v5108_v3  ;;  %v5182_v2 = vcombine.low %v1201_v53, %v1205_v54  ;;  %v5310_v3 = vcombine.low %v1329_v55, %v1333_v56  ;;  %v5962_v48 = vld [vmem:[#allocation8 + $0x9e0] sm:$0xff]  ;;  %v5262_v53 = vcombine.low %v1281_v38, %v1285_v39 }
  0xbb   :  { %1017 = vmatprep.subr.bf16.mxu0 %v5099_v4  ;;  %1060 = vmatprep.subr.bf16.mxu1 %v5101_v5  ;;  %v5175_v4 = vcombine.high %v1193_v62, %v1197_v63  ;;  %v5303_v5 = vcombine.high %v1321_v0, %v1325_v1  ;;  %v5486_v54 = vcombine.low %v5960_v47, %v5962_v48 }
  0xbc   :  { %v5390_v56 = vcombine.low %v1409_v40, %v1413_v41 }
  0xbe   :  { %1018 = vmatpush2.bf16.msra.mxu0 %v5098_v10  ;;  %1061 = vmatpush2.bf16.msra.mxu1 %v5100_v11  ;;  %v5174_v10 = vcombine.low %v1193_v62, %v1197_v63  ;;  %v5302_v11 = vcombine.low %v1321_v0, %v1325_v1  ;;  %v1393_v62 = vld [vmem:[#allocation8 + $0x640] sm:$0xff] }
  0xbf   :  { %4307 = vmatprep.subr.bf16.mxu0 %v5231_v12  ;;  %4350 = vmatprep.subr.bf16.mxu1 %v5359_v13  ;;  %v5295_v12 = vcombine.high %v1313_v6, %v1317_v7  ;;  %v5423_v13 = vcombine.high %v1441_v8, %v1445_v9  ;;  %v1397_v63 = vld [vmem:[#allocation8 + $0x660] sm:$0xff] }
  0xc1   :  { %1020 = vmatmul.mubr.bf16.vlgmr.msra.gmra.mxu0 %v5952_v14  ;;  %1063 = vmatmul.mubr.bf16.vlgmr.msra.gmra.mxu1 %v5952_v14  ;;  %v5335_v14 = vcombine.high %v1353_v33, %v1357_v34  ;;  %v1417_v33 = vld [vmem:[#allocation8 + $0x700] sm:$0xff] }
  0xc2   :  { %4308 = vmatpush1.bf16.msra.mxu0 %v5230_v19  ;;  %4351 = vmatpush1.bf16.msra.mxu1 %v5358_v20  ;;  %v5294_v19 = vcombine.low %v1313_v6, %v1317_v7  ;;  %v5422_v20 = vcombine.low %v1441_v8, %v1445_v9  ;;  %v1421_v34 = vld [vmem:[#allocation8 + $0x720] sm:$0xff]  ;;  %v5374_v9 = vcombine.low %v1393_v62, %v1397_v63 }
  0xc3   :  { %4309 = vmatprep.subr.bf16.mxu0 %v5223_v21  ;;  %4352 = vmatprep.subr.bf16.mxu1 %v5351_v22  ;;  %v5287_v21 = vcombine.high %v1305_v15, %v1309_v16  ;;  %v5415_v22 = vcombine.high %v1433_v17, %v1437_v18  ;;  %v1385_v6 = vld [vmem:[#allocation8 + $0x600] sm:$0xff] }
  0xc4   :  { %v1389_v7 = vld [vmem:[#allocation8 + $0x620] sm:$0xff] }
  0xc6   :  { %4310 = vmatpush1.bf16.msra.mxu0 %v5222_v27  ;;  %4353 = vmatpush1.bf16.msra.mxu1 %v5350_v28  ;;  %v5286_v27 = vcombine.low %v1305_v15, %v1309_v16  ;;  %v5414_v28 = vcombine.low %v1433_v17, %v1437_v18  ;;  %v5487_v15 = vcombine.high %v5960_v47, %v5962_v48  ;;  %v221_v17 = vlaneseq }
  0xc7   :  { %4311 = vmatprep.subr.bf16.mxu0 %v5215_v29  ;;  %4354 = vmatprep.subr.bf16.mxu1 %v5343_v30  ;;  %v5279_v29 = vcombine.high %v1297_v23, %v1301_v24  ;;  %v5407_v30 = vcombine.high %v1425_v25, %v1429_v26 }
  0xc8   :  { %v5976_v18 = vshrl.u32 %v221_v17, 7 }
  0xca   :  { %4312 = vmatpush1.bf16.msra.mxu0 %v5214_v35  ;;  %4355 = vmatpush1.bf16.msra.mxu1 %v5342_v36  ;;  %v5278_v35 = vcombine.low %v1297_v23, %v1301_v24  ;;  %v5406_v36 = vcombine.low %v1425_v25, %v1429_v26  ;;  %v235_v23 = vsub.s32 3, %v5976_v18 }
  0xcb   :  { %4313 = vmatprep.subr.bf16.mxu0 %v5207_v37  ;;  %4356 = vmatprep.subr.bf16.mxu1 %v5335_v14  ;;  %v5271_v37 = vcombine.high %v1289_v31, %v1293_v32  ;;  %v5399_v14 = vcombine.high %v1417_v33, %v1421_v34 }
  0xce   :  { %4314 = vmatpush1.bf16.msra.mxu0 %v5206_v42  ;;  %4357 = vmatpush1.bf16.msra.mxu1 %v5334_v43  ;;  %v5270_v42 = vcombine.low %v1289_v31, %v1293_v32  ;;  %v5398_v43 = vcombine.low %v1417_v33, %v1421_v34 }
  0xcf   :  { %4315 = vmatprep.subr.bf16.mxu0 %v5199_v58  ;;  %4358 = vmatprep.subr.bf16.mxu1 %v5327_v44  ;;  %v5263_v58 = vcombine.high %v1281_v38, %v1285_v39  ;;  %v1273_v44 = vld [vmem:[#allocation8 + $0x280] sm:$0xff] }
  0xd0   :  { %v5254_v0 = vcombine.low %v1273_v44, %v1277_v45 }
  0xd2   :  { %4316 = vmatpush1.bf16.msra.mxu0 %v5198_v49  ;;  %4359 = vmatpush1.bf16.msra.mxu1 %v5326_v50  ;;  %v5964_v49 = vld [vmem:[#allocation8 + $0xdc0] sm:$0xff] }
  0xd3   :  { %4317 = vmatprep.subr.bf16.mxu0 %v5191_v51  ;;  %4360 = vmatprep.subr.bf16.mxu1 %v5319_v52  ;;  %v1401_v50 = vld [vmem:[#allocation8 + $0x680] sm:$0xff] }
  0xd4   :  { %v1405_v51 = vld [vmem:[#allocation8 + $0x6a0] sm:$0xff] }
  0xd5   :  { %v5966_v52 = vld [vmem:[#allocation8 + $0xde0] sm:$0xff]  ;;  %v5382_v1 = vcombine.low %v1401_v50, %v1405_v51 }
  0xd6   :  { %4318 = vmatpush1.bf16.msra.mxu0 %v5190_v57  ;;  %4361 = vmatpush1.bf16.msra.mxu1 %v5318_v59  ;;  %v5614_v55 = vcombine.low %v5964_v49, %v5966_v52  ;;  %v5255_v57 = vcombine.high %v1273_v44, %v1277_v45  ;;  %v5383_v59 = vcombine.high %v1401_v50, %v1405_v51 }
  0xd7   :  { %4319 = vmatprep.subr.bf16.mxu0 %v5183_v60  ;;  %4362 = vmatprep.subr.bf16.mxu1 %v5311_v61  ;;  %v1265_v60 = vld [vmem:[#allocation8 + $0x240] sm:$0xff]  ;;  %v5615_v16 = vcombine.high %v5964_v49, %v5966_v52 }
  0xd8   :  { %v1269_v61 = vld [vmem:[#allocation8 + $0x260] sm:$0xff] }
  0xd9   :  { %v5246_v8 = vcombine.low %v1265_v60, %v1269_v61  ;;  %v1477_v49 = vld [vmem:[#allocation8 + $0x8e0] sm:$0xff] }
  0xda   :  { %4320 = vmatpush1.bf16.msra.mxu0 %v5182_v2  ;;  %4363 = vmatpush1.bf16.msra.mxu1 %v5310_v3  ;;  %v5247_v2 = vcombine.high %v1265_v60, %v1269_v61  ;;  %v5375_v3 = vcombine.high %v1393_v62, %v1397_v63  ;;  %v1601_v52 = vld [vmem:[#allocation8 + $0xcc0] sm:$0xff] }
  0xdb   :  { %4321 = vmatprep.subr.bf16.mxu0 %v5175_v4  ;;  %4364 = vmatprep.subr.bf16.mxu1 %v5303_v5  ;;  %v1257_v4 = vld [vmem:[#allocation8 + $0x200] sm:$0xff] }
  0xdc   :  { %v1261_v5 = vld [vmem:[#allocation8 + $0x220] sm:$0xff] }
  0xde   :  { %4322 = vmatpush1.bf16.msra.mxu0 %v5174_v10  ;;  %4365 = vmatpush1.bf16.msra.mxu1 %v5302_v11  ;;  %v5239_v10 = vcombine.high %v1257_v4, %v1261_v5  ;;  %v5367_v11 = vcombine.high %v1385_v6, %v1389_v7 }
  0xdf   :  { %4323 = vmatprep.subr.bf16.mxu0 %v5295_v12  ;;  %4366 = vmatprep.subr.bf16.mxu1 %v5423_v13  ;;  %v5238_v12 = vcombine.low %v1257_v4, %v1261_v5  ;;  %v5366_v13 = vcombine.low %v1385_v6, %v1389_v7 }
  0xe2   :  { %4324 = vmatpush2.bf16.msra.mxu0 %v5294_v19  ;;  %4367 = vmatpush2.bf16.msra.mxu1 %v5422_v20  ;;  %v223_v19 = vsub.s32 0, %v5976_v18  ;;  %v5979_v20 = vld [vmem:[#allocation7] sm:$0xff] }
  0xe3   :  { %4325 = vmatprep.subr.bf16.mxu0 %v5287_v21  ;;  %4368 = vmatprep.subr.bf16.mxu1 %v5415_v22  ;;  %v231_v21 = vsub.s32 2, %v5976_v18  ;;  %v227_v22 = vsub.s32 1, %v5976_v18 }
  0xe4   :  { %v224_v24 = vrot.slane %v5979_v20, %v223_v19 }
  0xe5   :  { %v232_v25 = vrot.slane %v5979_v20, %v231_v21  ;;  %v228_v26 = vrot.slane %v5979_v20, %v227_v22 }
  0xe6   :  { %4326 = vmatpush2.bf16.msra.mxu0 %v5286_v27  ;;  %4369 = vmatpush2.bf16.msra.mxu1 %v5414_v28  ;;  %v236_v28 = vrot.slane %v5979_v20, %v235_v23 }
  0xe7   :  { %4327 = vmatprep.subr.bf16.mxu0 %v5279_v29  ;;  %4370 = vmatprep.subr.bf16.mxu1 %v5407_v30 }
  0xea   :  { %4328 = vmatpush2.bf16.msra.mxu0 %v5278_v35  ;;  %4371 = vmatpush2.bf16.msra.mxu1 %v5406_v36 }
  0xeb   :  { %4329 = vmatprep.subr.bf16.mxu0 %v5271_v37  ;;  %4372 = vmatprep.subr.bf16.mxu1 %v5399_v14 }
  0xee   :  { %4330 = vmatpush2.bf16.msra.mxu0 %v5270_v42  ;;  %4373 = vmatpush2.bf16.msra.mxu1 %v5398_v43 }
  0xef   :  { %4331 = vmatprep.subr.bf16.mxu0 %v5263_v58  ;;  %4374 = vmatprep.subr.bf16.mxu1 %v5391_v46 }
  0xf2   :  { %4332 = vmatpush2.bf16.msra.mxu0 %v5262_v53  ;;  %4375 = vmatpush2.bf16.msra.mxu1 %v5390_v56 }
  0xf3   :  { %4333 = vmatprep.subr.bf16.mxu0 %v5255_v57  ;;  %4376 = vmatprep.subr.bf16.mxu1 %v5383_v59 }
  0xf6   :  { %4334 = vmatpush2.bf16.msra.mxu0 %v5254_v0  ;;  %4377 = vmatpush2.bf16.msra.mxu1 %v5382_v1 }
  0xf7   :  { %4335 = vmatprep.subr.bf16.mxu0 %v5247_v2  ;;  %4378 = vmatprep.subr.bf16.mxu1 %v5375_v3 }
  0xfa   :  { %4336 = vmatpush2.bf16.msra.mxu0 %v5246_v8  ;;  %4379 = vmatpush2.bf16.msra.mxu1 %v5374_v9 }
  0xfb   :  { %4337 = vmatprep.subr.bf16.mxu0 %v5239_v10  ;;  %4380 = vmatprep.subr.bf16.mxu1 %v5367_v11 }
  0xfe   :  { %4338 = vmatpush2.bf16.msra.mxu0 %v5238_v12  ;;  %4381 = vmatpush2.bf16.msra.mxu1 %v5366_v13 }
  0xff   :  { %4393 = vmatprep.subr.bf16.mxu0 %v5487_v15  ;;  %4436 = vmatprep.subr.bf16.mxu1 %v5615_v16 }
 0x141   :  { %v935_v27 = vpop.f32.mrf.mxu0  ;;  %v978_v30 = vpop.f32.mrf.mxu1 }
 0x142   :  { %v5996_v29 = vadd.f32 %v935_v27, %v224_v24  ;;  %v5998_v31 = vadd.f32 %v978_v30, %v232_v25  ;;  %v1501_v30 = vld [vmem:[#allocation8 + $0x9a0] sm:$0xff] }
 0x143   :  { %v937_v32 = vpop.f32.mrf.mxu0  ;;  %v980_v35 = vpop.f32.mrf.mxu1 }
 0x144   :  { %v5158_v33 = vmul.f32 -1.442695, %v5996_v29  ;;  %v938_v34 = vadd.f32 %v937_v32, %v228_v26  ;;  %v5160_v36 = vmul.f32 -1.442695, %v5998_v31  ;;  %v981_v37 = vadd.f32 %v980_v35, %v236_v28 }
 0x145   :  { %v939_v14 = vpop.f32.mrf.mxu0  ;;  %v982_v40 = vpop.f32.mrf.mxu1 }
 0x146   :  { %5698 = vpow2.f32 %v5158_v33  ;;  %v5159_v38 = vmul.f32 -1.442695, %v938_v34  ;;  %v940_v39 = vadd.f32 %v939_v14, %v224_v24  ;;  %v5161_v41 = vmul.f32 -1.442695, %v981_v37  ;;  %v1629_v14 = vld [vmem:[#allocation8 + $0xda0] sm:$0xff] }
 0x147   :  { %5700 = vpow2.f32 %v5160_v36  ;;  %v983_v42 = vadd.f32 %v982_v40, %v232_v25  ;;  %v941_v43 = vpop.f32.mrf.mxu0  ;;  %v984_v45 = vpop.f32.mrf.mxu1  ;;  %v1625_v36 = vld [vmem:[#allocation8 + $0xd80] sm:$0xff] }
 0x148   :  { %5702 = vpow2.f32 %v5159_v38  ;;  %v5166_v58 = vmul.f32 -1.442695, %v940_v39  ;;  %v942_v44 = vadd.f32 %v941_v43, %v228_v26  ;;  %v985_v50 = vadd.f32 %v984_v45, %v236_v28  ;;  %v1497_v28 = vld [vmem:[#allocation8 + $0x980] sm:$0xff] }
 0x149   :  { %5704 = vpow2.f32 %v5161_v41  ;;  %v5168_v46 = vmul.f32 -1.442695, %v983_v42  ;;  %v5606_v45 = vcombine.low %v1625_v36, %v1629_v14 }
 0x14a   :  { %5706 = vpow2.f32 %v5166_v58  ;;  %v5167_v51 = vmul.f32 -1.442695, %v942_v44  ;;  %v5169_v53 = vmul.f32 -1.442695, %v985_v50  ;;  %v1489_v58 = vld [vmem:[#allocation8 + $0x940] sm:$0xff] }
 0x14b   :  { %5708 = vpow2.f32 %v5168_v46 }
 0x14c   :  { %5710 = vpow2.f32 %v5167_v51  ;;  %v1481_v51 = vld [vmem:[#allocation8 + $0x900] sm:$0xff] }
 0x14d   :  { %5712 = vpow2.f32 %v5169_v53  ;;  %v1485_v53 = vld [vmem:[#allocation8 + $0x920] sm:$0xff] }
 0x14e   :  { %v5463_v48 = vcombine.high %v1481_v51, %v1485_v53 }
 0x153   :  { %v5699_v56 = vpop.eup %5698 }
 0x154   :  { %v5701_v57 = vpop.eup %5700  ;;  %v1121_v59 = vadd.f32 1.0, %v5699_v56  ;;  %v1609_v56 = vld [vmem:[#allocation8 + $0xd00] sm:$0xff] }
 0x155   :  { %v5703_v60 = vpop.eup %5702  ;;  %v1123_v61 = vadd.f32 1.0, %v5701_v57  ;;  %v1613_v57 = vld [vmem:[#allocation8 + $0xd20] sm:$0xff] }
 0x156   :  { %v5705_v62 = vpop.eup %5704  ;;  %5714 = vrcp.f32 %v1121_v59  ;;  %v1122_v63 = vadd.f32 1.0, %v5703_v60  ;;  %v1473_v60 = vld [vmem:[#allocation8 + $0x8c0] sm:$0xff] }
 0x157   :  { %v5707_v0 = vpop.eup %5706  ;;  %5716 = vrcp.f32 %v1123_v61  ;;  %v1124_v1 = vadd.f32 1.0, %v5705_v62  ;;  %v5462_v61 = vcombine.low %v1481_v51, %v1485_v53  ;;  %v5590_v62 = vcombine.low %v1609_v56, %v1613_v57 }
 0x158   :  { %v5709_v2 = vpop.eup %5708  ;;  %5718 = vrcp.f32 %v1122_v63  ;;  %v1129_v3 = vadd.f32 1.0, %v5707_v0  ;;  %v5455_v63 = vcombine.high %v1473_v60, %v1477_v49 }
 0x159   :  { %v5711_v4 = vpop.eup %5710  ;;  %5720 = vrcp.f32 %v1124_v1  ;;  %v1131_v5 = vadd.f32 1.0, %v5709_v2  ;;  %v239_v1 = vsub.s32 4, %v5976_v18  ;;  %v1465_v2 = vld [vmem:[#allocation8 + $0x880] sm:$0xff] }
 0x15a   :  { %v5713_v6 = vpop.eup %5712  ;;  %5722 = vrcp.f32 %v1129_v3  ;;  %v1130_v7 = vadd.f32 1.0, %v5711_v4  ;;  %v1469_v3 = vld [vmem:[#allocation8 + $0x8a0] sm:$0xff]  ;;  %v247_v4 = vsub.s32 6, %v5976_v18 }
 0x15b   :  { %5724 = vrcp.f32 %v1131_v5  ;;  %v1132_v8 = vadd.f32 1.0, %v5713_v6  ;;  %v1593_v5 = vld [vmem:[#allocation8 + $0xc80] sm:$0xff] }
 0x15c   :  { %5726 = vrcp.f32 %v1130_v7  ;;  %v1597_v6 = vld [vmem:[#allocation8 + $0xca0] sm:$0xff]  ;;  %v5454_v7 = vcombine.low %v1473_v60, %v1477_v49 }
 0x15d   :  { %5728 = vrcp.f32 %v1132_v8  ;;  %v243_v8 = vsub.s32 5, %v5976_v18  ;;  %v1573_v60 = vld [vmem:[#allocation8 + $0xbe0] sm:$0xff] }
 0x163   :  { %v5715_v9 = vpop.eup %5714 }
 0x164   :  { %v5717_v10 = vpop.eup %5716  ;;  %v1169_v32 = vmul.f32 %v5715_v9, %v5996_v29  ;;  %v1493_v29 = vld [vmem:[#allocation8 + $0x960] sm:$0xff] }
 0x165   :  { %v5719_v11 = vpop.eup %5718  ;;  %v1171_v38 = vmul.f32 %v5717_v10, %v5998_v31  ;;  %v1621_v31 = vld [vmem:[#allocation8 + $0xd60] sm:$0xff]  ;;  %v5471_v46 = vcombine.high %v1489_v58, %v1493_v29  ;;  %v5470_v59 = vcombine.low %v1489_v58, %v1493_v29  ;;  %v5447_v10 = vcombine.high %v1465_v2, %v1469_v3 }
 0x166   :  { %v5721_v12 = vpop.eup %5720  ;;  %v1170_v25 = vmul.f32 %v5719_v11, %v938_v34  ;;  %v251_v11 = vsub.s32 7, %v5976_v18  ;;  %v1577_v29 = vld [vmem:[#allocation8 + $0xc00] sm:$0xff] }
 0x167   :  { %v5723_v13 = vpop.eup %5722  ;;  %v1172_v33 = vmul.f32 %v5721_v12, %v981_v37  ;;  %v1617_v37 = vld [vmem:[#allocation8 + $0xd40] sm:$0xff]  ;;  %v240_v12 = vrot.slane %v5979_v20, %v239_v1 }
 0x168   :  { %v5725_v15 = vpop.eup %5724  ;;  %v1177_v17 = vmul.f32 %v5723_v13, %v940_v39  ;;  %v5479_v39 = vcombine.high %v1497_v28, %v1501_v30  ;;  %v5598_v47 = vcombine.low %v1617_v37, %v1621_v31  ;;  %v5575_v13 = vcombine.high %v1593_v5, %v1597_v6 }
 0x169   :  { %v5727_v16 = vpop.eup %5726  ;;  %v1179_v26 = vmul.f32 %v5725_v15, %v983_v42  ;;  %v5607_v42 = vcombine.high %v1625_v36, %v1629_v14  ;;  %v1457_v15 = vld [vmem:[#allocation8 + $0x840] sm:$0xff] }
 0x16a   :  { %v5729_v24 = vpop.eup %5728  ;;  %v1178_v27 = vmul.f32 %v5727_v16, %v942_v44  ;;  %v6006_v41 = vpack.c.bf16 %v1177_v17, %v1169_v32  ;;  %v5478_v44 = vcombine.low %v1497_v28, %v1501_v30  ;;  %v1461_v16 = vld [vmem:[#allocation8 + $0x860] sm:$0xff]  ;;  %v248_v17 = vrot.slane %v5979_v20, %v247_v4 }
 0x16b   :  { %v1180_v35 = vmul.f32 %v5729_v24, %v985_v50  ;;  %v6010_v34 = vpack.c.bf16 %v1179_v26, %v1171_v38  ;;  %v5599_v50 = vcombine.high %v1617_v37, %v1621_v31  ;;  %v1585_v24 = vld [vmem:[#allocation8 + $0xc40] sm:$0xff]  ;;  %v5446_v26 = vcombine.low %v1465_v2, %v1469_v3 }
 0x16c   :  { %v6004_v40 = vpack.c.bf16 %v1178_v27, %v1170_v25  ;;  %v1589_v25 = vld [vmem:[#allocation8 + $0xc60] sm:$0xff]  ;;  %v244_v27 = vrot.slane %v5979_v20, %v243_v8  ;;  %v5574_v30 = vcombine.low %v1593_v5, %v1597_v6  ;;  %v252_v32 = vrot.slane %v5979_v20, %v251_v11 }
 0x16d   :  { %v6008_v43 = vpack.c.bf16 %v1180_v35, %v1172_v33  ;;  %v5439_v33 = vcombine.high %v1457_v15, %v1461_v16  ;;  %v5567_v14 = vcombine.high %v1585_v24, %v1589_v25  ;;  %v1449_v38 = vld [vmem:[#allocation8 + $0x800] sm:$0xff]  ;;  %v5438_v20 = vcombine.low %v1457_v15, %v1461_v16 }
 0x16e   :  { %4339 = vmatprep.mubr.bf16.mxu0 %v6004_v40  ;;  %v1581_v37 = vld [vmem:[#allocation8 + $0xc20] sm:$0xff]  ;;  %v5566_v53 = vcombine.low %v1585_v24, %v1589_v25 }
 0x16f   :  { %4382 = vmatprep.mubr.bf16.mxu1 %v6008_v43  ;;  %4340 = vmatmul.mubr.bf16.vlgmr.msra.gmra.mxu0 %v6006_v41  ;;  %v5558_v5 = vcombine.low %v1577_v29, %v1581_v37  ;;  %v1565_v15 = vld [vmem:[#allocation8 + $0xba0] sm:$0xff] }
 0x170   :  { %4383 = vmatmul.mubr.bf16.vlgmr.msra.gmra.mxu1 %v6010_v34  ;;  %4394 = vmatpush1.bf16.msra.mxu0 %v5486_v54  ;;  %v5591_v54 = vcombine.high %v1609_v56, %v1613_v57  ;;  %v1693_v24 = vld [vmem:[#allocation8 + $0xfa0] sm:$0xff] }
 0x171   :  { %4437 = vmatpush1.bf16.msra.mxu1 %v5614_v55  ;;  %4395 = vmatprep.subr.bf16.mxu0 %v5479_v39  ;;  %v1605_v55 = vld [vmem:[#allocation8 + $0xce0] sm:$0xff] }
 0x172   :  { %4438 = vmatprep.subr.bf16.mxu1 %v5607_v42  ;;  %v5583_v0 = vcombine.high %v1601_v52, %v1605_v55  ;;  %v5582_v9 = vcombine.low %v1601_v52, %v1605_v55  ;;  %v1453_v39 = vld [vmem:[#allocation8 + $0x820] sm:$0xff] }
 0x173   :  { %v5431_v56 = vcombine.high %v1449_v38, %v1453_v39 }
 0x174   :  { %4396 = vmatpush1.bf16.msra.mxu0 %v5478_v44 }
 0x175   :  { %4439 = vmatpush1.bf16.msra.mxu1 %v5606_v45  ;;  %4397 = vmatprep.subr.bf16.mxu0 %v5471_v46 }
 0x176   :  { %4440 = vmatprep.subr.bf16.mxu1 %v5599_v50 }
 0x178   :  { %4398 = vmatpush1.bf16.msra.mxu0 %v5470_v59 }
 0x179   :  { %4441 = vmatpush1.bf16.msra.mxu1 %v5598_v47  ;;  %4399 = vmatprep.subr.bf16.mxu0 %v5463_v48  ;;  %v5559_v48 = vcombine.high %v1577_v29, %v1581_v37  ;;  %v1545_v29 = vld [vmem:[#allocation8 + $0xb00] sm:$0xff] }
 0x17a   :  { %4442 = vmatprep.subr.bf16.mxu1 %v5591_v54  ;;  %v1569_v54 = vld [vmem:[#allocation8 + $0xbc0] sm:$0xff] }
 0x17b   :  { %v5550_v25 = vcombine.low %v1569_v54, %v1573_v60  ;;  %v1549_v37 = vld [vmem:[#allocation8 + $0xb20] sm:$0xff] }
 0x17c   :  { %4400 = vmatpush1.bf16.msra.mxu0 %v5462_v61  ;;  %v5430_v61 = vcombine.low %v1449_v38, %v1453_v39 }
 0x17d   :  { %4443 = vmatpush1.bf16.msra.mxu1 %v5590_v62  ;;  %4401 = vmatprep.subr.bf16.mxu0 %v5455_v63  ;;  %v1697_v62 = vld [vmem:[#allocation8 + $0xfc0] sm:$0xff] }
 0x17e   :  { %4444 = vmatprep.subr.bf16.mxu1 %v5583_v0  ;;  %v1701_v63 = vld [vmem:[#allocation8 + $0xfe0] sm:$0xff] }
 0x180   :  { %4402 = vmatpush1.bf16.msra.mxu0 %v5454_v7 }
 0x181   :  { %4445 = vmatpush1.bf16.msra.mxu1 %v5582_v9  ;;  %v1021_v28 = vpop.f32.mrf.mxu0  ;;  %4403 = vmatprep.subr.bf16.mxu0 %v5447_v10  ;;  %v1064_v36 = vpop.f32.mrf.mxu1  ;;  %v5551_v9 = vcombine.high %v1569_v54, %v1573_v60 }
 0x182   :  { %v6038_v35 = vadd.f32 %v1021_v28, %v240_v12  ;;  %4446 = vmatprep.subr.bf16.mxu1 %v5575_v13  ;;  %v6040_v42 = vadd.f32 %v1064_v36, %v248_v17  ;;  %v1561_v13 = vld [vmem:[#allocation8 + $0xb80] sm:$0xff] }
 0x183   :  { %v1023_v58 = vpop.f32.mrf.mxu0  ;;  %v1066_v45 = vpop.f32.mrf.mxu1  ;;  %v1685_v36 = vld [vmem:[#allocation8 + $0xf60] sm:$0xff] }
 0x184   :  { %v5162_v31 = vmul.f32 -1.442695, %v6038_v35  ;;  %v6043_v44 = vadd.f32 %v1023_v58, %v244_v27  ;;  %4404 = vmatpush1.bf16.msra.mxu0 %v5446_v26  ;;  %v5164_v46 = vmul.f32 -1.442695, %v6040_v42  ;;  %v6046_v50 = vadd.f32 %v1066_v45, %v252_v32  ;;  %v1673_v45 = vld [vmem:[#allocation8 + $0xf00] sm:$0xff] }
 0x185   :  { %4447 = vmatpush1.bf16.msra.mxu1 %v5574_v30  ;;  %v1025_v51 = vpop.f32.mrf.mxu0  ;;  %4405 = vmatprep.subr.bf16.mxu0 %v5439_v33  ;;  %v1068_v47 = vpop.f32.mrf.mxu1  ;;  %v5678_v26 = vcombine.low %v1697_v62, %v1701_v63  ;;  %v1553_v30 = vld [vmem:[#allocation8 + $0xb40] sm:$0xff] }
 0x186   :  { %5730 = vpow2.f32 %v5162_v31  ;;  %v5163_v57 = vmul.f32 -1.442695, %v6043_v44  ;;  %v6049_v59 = vadd.f32 %v1025_v51, %v240_v12  ;;  %4448 = vmatprep.subr.bf16.mxu1 %v5567_v14  ;;  %v5165_v49 = vmul.f32 -1.442695, %v6046_v50  ;;  %v1681_v33 = vld [vmem:[#allocation8 + $0xf40] sm:$0xff] }
 0x187   :  { %5732 = vpow2.f32 %v5164_v46  ;;  %v6052_v52 = vadd.f32 %v1068_v47, %v248_v17  ;;  %v1027_v55 = vpop.f32.mrf.mxu0  ;;  %v1070_v3 = vpop.f32.mrf.mxu1  ;;  %v5679_v12 = vcombine.high %v1697_v62, %v1701_v63  ;;  %v1689_v17 = vld [vmem:[#allocation8 + $0xf80] sm:$0xff]  ;;  %v5542_v14 = vcombine.low %v1561_v13, %v1565_v15 }
 0x188   :  { %5734 = vpow2.f32 %v5163_v57  ;;  %v5170_v0 = vmul.f32 -1.442695, %v6049_v59  ;;  %v6055_v2 = vadd.f32 %v1027_v55, %v244_v27  ;;  %4406 = vmatpush1.bf16.msra.mxu0 %v5438_v20  ;;  %v6058_v7 = vadd.f32 %v1070_v3, %v252_v32  ;;  %v1557_v32 = vld [vmem:[#allocation8 + $0xb60] sm:$0xff] }
 0x189   :  { %5736 = vpow2.f32 %v5165_v49  ;;  %v5172_v6 = vmul.f32 -1.442695, %v6052_v52  ;;  %4449 = vmatpush1.bf16.msra.mxu1 %v5566_v53  ;;  %4407 = vmatprep.subr.bf16.mxu0 %v5431_v56  ;;  %v5543_v27 = vcombine.high %v1561_v13, %v1565_v15  ;;  %v5671_v28 = vcombine.high %v1689_v17, %v1693_v24  ;;  %v1677_v20 = vld [vmem:[#allocation8 + $0xf20] sm:$0xff] }
 0x18a   :  { %5738 = vpow2.f32 %v5170_v0  ;;  %v5171_v10 = vmul.f32 -1.442695, %v6055_v2  ;;  %4450 = vmatprep.subr.bf16.mxu1 %v5559_v48  ;;  %v5173_v16 = vmul.f32 -1.442695, %v6058_v7  ;;  %v5670_v38 = vcombine.low %v1689_v17, %v1693_v24  ;;  %v1537_v55 = vld [vmem:[#allocation8 + $0xac0] sm:$0xff] }
 0x18b   :  { %5740 = vpow2.f32 %v5172_v6  ;;  %v5535_v39 = vcombine.high %v1553_v30, %v1557_v32  ;;  %v5663_v58 = vcombine.high %v1681_v33, %v1685_v36  ;;  %v5534_v53 = vcombine.low %v1553_v30, %v1557_v32  ;;  %v1665_v0 = vld [vmem:[#allocation8 + $0xec0] sm:$0xff] }
 0x18c   :  { %5742 = vpow2.f32 %v5171_v10  ;;  %4408 = vmatpush1.bf16.msra.mxu0 %v5430_v61  ;;  %v5662_v47 = vcombine.low %v1681_v33, %v1685_v36  ;;  %v5527_v48 = vcombine.high %v1545_v29, %v1549_v37  ;;  %v5655_v49 = vcombine.high %v1673_v45, %v1677_v20  ;;  %v1541_v61 = vld [vmem:[#allocation8 + $0xae0] sm:$0xff] }
 0x18d   :  { %5744 = vpow2.f32 %v5173_v16  ;;  %4451 = vmatpush1.bf16.msra.mxu1 %v5558_v5  ;;  %4409 = vmatprep.subr.bf16.mxu0 %v5551_v9  ;;  %v1669_v3 = vld [vmem:[#allocation8 + $0xee0] sm:$0xff]  ;;  %v5526_v9 = vcombine.low %v1545_v29, %v1549_v37  ;;  %v5654_v13 = vcombine.low %v1673_v45, %v1677_v20  ;;  %v5519_v15 = vcombine.high %v1537_v55, %v1541_v61 }
 0x18e   :  { %4452 = vmatprep.subr.bf16.mxu1 %v5679_v12  ;;  %v5647_v24 = vcombine.high %v1665_v0, %v1669_v3  ;;  %v1661_v30 = vld [vmem:[#allocation8 + $0xea0] sm:$0xff]  ;;  %v5518_v32 = vcombine.low %v1537_v55, %v1541_v61  ;;  %v5646_v33 = vcombine.low %v1665_v0, %v1669_v3  ;;  %v1378_v3 = vld [vmem:[#allocation8 + $0x5c8] sm:$0xff] }
 0x18f   :  { %v1653_v29 = vld [vmem:[#allocation8 + $0xe60] sm:$0xff] }
 0x190   :  { %4410 = vmatpush2.bf16.msra.mxu0 %v5550_v25  ;;  %v1529_v25 = vld [vmem:[#allocation8 + $0xa80] sm:$0xff] }
 0x191   :  { %4453 = vmatpush2.bf16.msra.mxu1 %v5678_v26  ;;  %4411 = vmatprep.subr.bf16.mxu0 %v5543_v27  ;;  %v1533_v26 = vld [vmem:[#allocation8 + $0xaa0] sm:$0xff] }
 0x192   :  { %4454 = vmatprep.subr.bf16.mxu1 %v5671_v28  ;;  %v1657_v28 = vld [vmem:[#allocation8 + $0xe80] sm:$0xff]  ;;  %v5511_v36 = vcombine.high %v1529_v25, %v1533_v26  ;;  %v5510_v37 = vcombine.low %v1529_v25, %v1533_v26 }
 0x193   :  { %v5731_v31 = vpop.eup %5730 }
 0x194   :  { %v5733_v46 = vpop.eup %5732  ;;  %v1125_v51 = vadd.f32 1.0, %v5731_v31  ;;  %4412 = vmatpush2.bf16.msra.mxu0 %v5542_v14  ;;  %v5639_v14 = vcombine.high %v1657_v28, %v1661_v30  ;;  %v5638_v31 = vcombine.low %v1657_v28, %v1661_v30 }
 0x195   :  { %v5735_v56 = vpop.eup %5734  ;;  %v1127_v57 = vadd.f32 1.0, %v5733_v46  ;;  %4455 = vmatpush2.bf16.msra.mxu1 %v5670_v38  ;;  %4413 = vmatprep.subr.bf16.mxu0 %v5535_v39  ;;  %v1521_v38 = vld [vmem:[#allocation8 + $0xa40] sm:$0xff] }
 0x196   :  { %v5737_v54 = vpop.eup %5736  ;;  %5746 = vrcp.f32 %v1125_v51  ;;  %v1126_v60 = vadd.f32 1.0, %v5735_v56  ;;  %4456 = vmatprep.subr.bf16.mxu1 %v5663_v58  ;;  %v1525_v39 = vld [vmem:[#allocation8 + $0xa60] sm:$0xff] }
 0x197   :  { %v5739_v62 = vpop.eup %5738  ;;  %5748 = vrcp.f32 %v1127_v57  ;;  %v1128_v63 = vadd.f32 1.0, %v5737_v54  ;;  %v1649_v58 = vld [vmem:[#allocation8 + $0xe40] sm:$0xff]  ;;  %v5503_v45 = vcombine.high %v1521_v38, %v1525_v39 }
 0x198   :  { %v5741_v5 = vpop.eup %5740  ;;  %5750 = vrcp.f32 %v1126_v60  ;;  %v1133_v6 = vadd.f32 1.0, %v5739_v62  ;;  %4414 = vmatpush2.bf16.msra.mxu0 %v5534_v53  ;;  %v5631_v20 = vcombine.high %v1649_v58, %v1653_v29  ;;  %v1513_v46 = vld [vmem:[#allocation8 + $0xa00] sm:$0xff]  ;;  %v5630_v60 = vcombine.low %v1649_v58, %v1653_v29  ;;  %v1250_v62 = vld [vmem:[#allocation8 + $0x1c8] sm:$0xff] }
 0x199   :  { %v5743_v10 = vpop.eup %5742  ;;  %5752 = vrcp.f32 %v1128_v63  ;;  %v1135_v12 = vadd.f32 1.0, %v5741_v5  ;;  %4457 = vmatpush2.bf16.msra.mxu1 %v5662_v47  ;;  %4415 = vmatprep.subr.bf16.mxu0 %v5527_v48  ;;  %v1517_v51 = vld [vmem:[#allocation8 + $0xa20] sm:$0xff]  ;;  %v5502_v48 = vcombine.low %v1521_v38, %v1525_v39  ;;  %v1254_v63 = vld [vmem:[#allocation8 + $0x1e8] sm:$0xff] }
 0x19a   :  { %v5745_v16 = vpop.eup %5744  ;;  %5754 = vrcp.f32 %v1133_v6  ;;  %v1134_v17 = vadd.f32 1.0, %v5743_v10  ;;  %4458 = vmatprep.subr.bf16.mxu1 %v5655_v49  ;;  %v1641_v56 = vld [vmem:[#allocation8 + $0xe00] sm:$0xff]  ;;  %v5495_v49 = vcombine.high %v1513_v46, %v1517_v51  ;;  %v1382_v5 = vld [vmem:[#allocation8 + $0x5e8] sm:$0xff] }
 0x19b   :  { %5756 = vrcp.f32 %v1135_v12  ;;  %v1136_v27 = vadd.f32 1.0, %v5745_v16  ;;  %v1645_v57 = vld [vmem:[#allocation8 + $0xe20] sm:$0xff]  ;;  %v5361_v26 = vcombine.high %v1378_v3, %v1382_v5  ;;  %v1238_v39 = vld [vmem:[#allocation8 + $0x168] sm:$0xff] }
 0x19c   :  { %5758 = vrcp.f32 %v1134_v17  ;;  %4416 = vmatpush2.bf16.msra.mxu0 %v5526_v9  ;;  %v5623_v61 = vcombine.high %v1641_v56, %v1645_v57  ;;  %v5494_v9 = vcombine.low %v1513_v46, %v1517_v51  ;;  %v1362_v29 = vld [vmem:[#allocation8 + $0x548] sm:$0xff] }
 0x19d   :  { %5760 = vrcp.f32 %v1136_v27  ;;  %4459 = vmatpush2.bf16.msra.mxu1 %v5654_v13  ;;  %4417 = vmatprep.subr.bf16.mxu0 %v5519_v15  ;;  %v5622_v13 = vcombine.low %v1641_v56, %v1645_v57  ;;  %v5233_v15 = vcombine.high %v1250_v62, %v1254_v63  ;;  %v1226_v51 = vld [vmem:[#allocation8 + $0x108] sm:$0xff] }
 0x19e   :  { %4460 = vmatprep.subr.bf16.mxu1 %v5647_v24  ;;  %v1354_v56 = vld [vmem:[#allocation8 + $0x508] sm:$0xff] }
 0x19f   :  { %v1358_v57 = vld [vmem:[#allocation8 + $0x528] sm:$0xff] }
 0x1a0   :  { %4418 = vmatpush2.bf16.msra.mxu0 %v5518_v32  ;;  %v1246_v32 = vld [vmem:[#allocation8 + $0x1a8] sm:$0xff] }
 0x1a1   :  { %4461 = vmatpush2.bf16.msra.mxu1 %v5646_v33  ;;  %4419 = vmatprep.subr.bf16.mxu0 %v5511_v36 }
 0x1a2   :  { %4462 = vmatprep.subr.bf16.mxu1 %v5639_v14  ;;  %v1370_v14 = vld [vmem:[#allocation8 + $0x588] sm:$0xff] }
 0x1a3   :  { %v5747_v53 = vpop.eup %5746 }
 0x1a4   :  { %v5749_v47 = vpop.eup %5748  ;;  %4420 = vmatpush2.bf16.msra.mxu0 %v5510_v37  ;;  %v1173_v27 = vmul.f32 %v5747_v53, %v6038_v35  ;;  %v5360_v35 = vcombine.low %v1378_v3, %v1382_v5  ;;  %v1366_v37 = vld [vmem:[#allocation8 + $0x568] sm:$0xff] }
 0x1a5   :  { %v5751_v54 = vpop.eup %5750  ;;  %4463 = vmatpush2.bf16.msra.mxu1 %v5638_v31  ;;  %4421 = vmatprep.subr.bf16.mxu0 %v5503_v45  ;;  %v1175_v33 = vmul.f32 %v5749_v47, %v6040_v42  ;;  %v1234_v42 = vld [vmem:[#allocation8 + $0x148] sm:$0xff]  ;;  %v5345_v46 = vcombine.high %v1362_v29, %v1366_v37 }
 0x1a6   :  { %v5753_v55 = vpop.eup %5752  ;;  %4464 = vmatprep.subr.bf16.mxu1 %v5631_v20  ;;  %v1174_v17 = vmul.f32 %v5751_v54, %v6043_v44  ;;  %v5232_v44 = vcombine.low %v1250_v62, %v1254_v63  ;;  %v5217_v20 = vcombine.high %v1234_v42, %v1238_v39  ;;  %v1230_v53 = vld [vmem:[#allocation8 + $0x128] sm:$0xff]  ;;  %v5216_v47 = vcombine.low %v1234_v42, %v1238_v39 }
 0x1a7   :  { %v5755_v0 = vpop.eup %5754  ;;  %v1176_v28 = vmul.f32 %v5753_v55, %v6046_v50  ;;  %v5209_v54 = vcombine.high %v1226_v51, %v1230_v53  ;;  %v1222_v55 = vld [vmem:[#allocation8 + $0xe8] sm:$0xff]  ;;  %v5208_v63 = vcombine.low %v1226_v51, %v1230_v53 }
 0x1a8   :  { %v5757_v6 = vpop.eup %5756  ;;  %4422 = vmatpush2.bf16.msra.mxu0 %v5502_v48  ;;  %v1181_v12 = vmul.f32 %v5755_v0, %v6049_v59  ;;  %v1242_v59 = vld [vmem:[#allocation8 + $0x188] sm:$0xff]  ;;  %v5344_v48 = vcombine.low %v1362_v29, %v1366_v37  ;;  %v5336_v0 = vcombine.low %v1354_v56, %v1358_v57 }
 0x1a9   :  { %v5759_v10 = vpop.eup %5758  ;;  %4465 = vmatpush2.bf16.msra.mxu1 %v5630_v60  ;;  %4423 = vmatprep.subr.bf16.mxu0 %v5495_v49  ;;  %v1183_v24 = vmul.f32 %v5757_v6, %v6052_v52  ;;  %v1374_v52 = vld [vmem:[#allocation8 + $0x5a8] sm:$0xff]  ;;  %v5224_v31 = vcombine.low %v1242_v59, %v1246_v32  ;;  %v5337_v60 = vcombine.high %v1354_v56, %v1358_v57 }
 0x1aa   :  { %v5761_v16 = vpop.eup %5760  ;;  %v1182_v25 = vmul.f32 %v5759_v10, %v6055_v2  ;;  %4466 = vmatprep.subr.bf16.mxu1 %v5623_v61  ;;  %v6072_v38 = vpack.c.bf16 %v1181_v12, %v1173_v27  ;;  %v5353_v58 = vcombine.high %v1370_v14, %v1374_v52  ;;  %v5352_v45 = vcombine.low %v1370_v14, %v1374_v52  ;;  %v1218_v49 = vld [vmem:[#allocation8 + $0xc8] sm:$0xff] }
 0x1ab   :  { %v1184_v30 = vmul.f32 %v5761_v16, %v6058_v7  ;;  %v6076_v50 = vpack.c.bf16 %v1183_v24, %v1175_v33  ;;  %v5225_v7 = vcombine.high %v1242_v59, %v1246_v32  ;;  %v1346_v61 = vld [vmem:[#allocation8 + $0x4c8] sm:$0xff]  ;;  %v5201_v3 = vcombine.high %v1218_v49, %v1222_v55 }
 0x1ac   :  { %v6070_v36 = vpack.c.bf16 %v1182_v25, %v1174_v17  ;;  %4424 = vmatpush2.bf16.msra.mxu0 %v5494_v9  ;;  %v1350_v62 = vld [vmem:[#allocation8 + $0x4e8] sm:$0xff] }
 0x1ad   :  { %v6074_v2 = vpack.c.bf16 %v1184_v30, %v1176_v28  ;;  %4467 = vmatpush2.bf16.msra.mxu1 %v5622_v13  ;;  %4479 = vmatprep.subr.bf16.mxu0 %v5233_v15  ;;  %v5329_v5 = vcombine.high %v1346_v61, %v1350_v62  ;;  %v1210_v6 = vld [vmem:[#allocation8 + $0x88] sm:$0xff]  ;;  %v5200_v13 = vcombine.low %v1218_v49, %v1222_v55 }
 0x1ae   :  { %4425 = vmatprep.mubr.bf16.mxu0 %v6070_v36  ;;  %4522 = vmatprep.subr.bf16.mxu1 %v5361_v26  ;;  %v1214_v9 = vld [vmem:[#allocation8 + $0xa8] sm:$0xff]  ;;  %v5328_v15 = vcombine.low %v1346_v61, %v1350_v62 }
 0x1af   :  { %4468 = vmatprep.mubr.bf16.mxu1 %v6074_v2  ;;  %4426 = vmatmul.mubr.bf16.vlgmr.msra.gmra.mxu0 %v6072_v38  ;;  %v1338_v10 = vld [vmem:[#allocation8 + $0x488] sm:$0xff]  ;;  %v5193_v16 = vcombine.high %v1210_v6, %v1214_v9  ;;  %v5192_v28 = vcombine.low %v1210_v6, %v1214_v9 }
 0x1b0   :  { %4469 = vmatmul.mubr.bf16.vlgmr.msra.gmra.mxu1 %v6076_v50  ;;  %4480 = vmatpush1.bf16.msra.mxu0 %v5232_v44  ;;  %v1342_v12 = vld [vmem:[#allocation8 + $0x4a8] sm:$0xff] }
 0x1b1   :  { %4523 = vmatpush1.bf16.msra.mxu1 %v5360_v35  ;;  %4511 = vmatprep.mubr.bf16.mxu0 %v6004_v40  ;;  %v5321_v17 = vcombine.high %v1338_v10, %v1342_v12  ;;  %v1202_v24 = vld [vmem:[#allocation8 + $0x48] sm:$0xff]  ;;  %v5320_v30 = vcombine.low %v1338_v10, %v1342_v12 }
 0x1b2   :  { %4554 = vmatprep.mubr.bf16.mxu1 %v6008_v43  ;;  %4481 = vmatprep.subr.bf16.mxu0 %v5225_v7  ;;  %v1206_v25 = vld [vmem:[#allocation8 + $0x68] sm:$0xff] }
 0x1b3   :  { %4524 = vmatprep.subr.bf16.mxu1 %v5353_v58  ;;  %v1330_v26 = vld [vmem:[#allocation8 + $0x448] sm:$0xff]  ;;  %v5185_v59 = vcombine.high %v1202_v24, %v1206_v25  ;;  %v5184_v35 = vcombine.low %v1202_v24, %v1206_v25 }
 0x1b4   :  { %4482 = vmatpush1.bf16.msra.mxu0 %v5224_v31  ;;  %v1334_v27 = vld [vmem:[#allocation8 + $0x468] sm:$0xff] }
 0x1b5   :  { %4525 = vmatpush1.bf16.msra.mxu1 %v5352_v45  ;;  %4483 = vmatprep.subr.bf16.mxu0 %v5217_v20  ;;  %v5313_v32 = vcombine.high %v1330_v26, %v1334_v27  ;;  %v1194_v33 = vld [vmem:[#allocation8 + $0x8] sm:$0xff]  ;;  %v5312_v7 = vcombine.low %v1330_v26, %v1334_v27 }
 0x1b6   :  { %4526 = vmatprep.subr.bf16.mxu1 %v5345_v46  ;;  %v1198_v44 = vld [vmem:[#allocation8 + $0x28] sm:$0xff] }
 0x1b7   :  { %v1322_v14 = vld [vmem:[#allocation8 + $0x408] sm:$0xff]  ;;  %v5177_v42 = vcombine.high %v1194_v33, %v1198_v44  ;;  %v5176_v45 = vcombine.low %v1194_v33, %v1198_v44 }
 0x1b8   :  { %4484 = vmatpush1.bf16.msra.mxu0 %v5216_v47  ;;  %v1326_v52 = vld [vmem:[#allocation8 + $0x428] sm:$0xff] }
 0x1b9   :  { %4527 = vmatpush1.bf16.msra.mxu1 %v5344_v48  ;;  %4485 = vmatprep.subr.bf16.mxu0 %v5209_v54  ;;  %v5305_v39 = vcombine.high %v1322_v14, %v1326_v52  ;;  %v1314_v58 = vld [vmem:[#allocation8 + $0x3c8] sm:$0xff]  ;;  %v5304_v20 = vcombine.low %v1322_v14, %v1326_v52 }
 0x1ba   :  { %4528 = vmatprep.subr.bf16.mxu1 %v5337_v60  ;;  %v1318_v29 = vld [vmem:[#allocation8 + $0x3e8] sm:$0xff] }
 0x1bb   :  { %v1442_v37 = vld [vmem:[#allocation8 + $0x7c8] sm:$0xff]  ;;  %v5297_v46 = vcombine.high %v1314_v58, %v1318_v29  ;;  %v5296_v48 = vcombine.low %v1314_v58, %v1318_v29 }
 0x1bc   :  { %4486 = vmatpush1.bf16.msra.mxu0 %v5208_v63  ;;  %v1446_v31 = vld [vmem:[#allocation8 + $0x7e8] sm:$0xff] }
 0x1bd   :  { %4529 = vmatpush1.bf16.msra.mxu1 %v5336_v0  ;;  %4487 = vmatprep.subr.bf16.mxu0 %v5201_v3  ;;  %v5425_v51 = vcombine.high %v1442_v37, %v1446_v31  ;;  %v1306_v53 = vld [vmem:[#allocation8 + $0x388] sm:$0xff]  ;;  %v5424_v54 = vcombine.low %v1442_v37, %v1446_v31 }
 0x1be   :  { %4530 = vmatprep.subr.bf16.mxu1 %v5329_v5  ;;  %v1310_v56 = vld [vmem:[#allocation8 + $0x3a8] sm:$0xff] }
 0x1bf   :  { %v1434_v57 = vld [vmem:[#allocation8 + $0x788] sm:$0xff]  ;;  %v5289_v60 = vcombine.high %v1306_v53, %v1310_v56  ;;  %v5288_v0 = vcombine.low %v1306_v53, %v1310_v56 }
 0x1c0   :  { %4488 = vmatpush1.bf16.msra.mxu0 %v5200_v13  ;;  %v1438_v47 = vld [vmem:[#allocation8 + $0x7a8] sm:$0xff] }
 0x1c1   :  { %4531 = vmatpush1.bf16.msra.mxu1 %v5328_v15  ;;  %4489 = vmatprep.subr.bf16.mxu0 %v5193_v16  ;;  %v5417_v49 = vcombine.high %v1434_v57, %v1438_v47  ;;  %v1298_v55 = vld [vmem:[#allocation8 + $0x348] sm:$0xff]  ;;  %v5416_v3 = vcombine.low %v1434_v57, %v1438_v47 }
 0x1c2   :  { %4532 = vmatprep.subr.bf16.mxu1 %v5321_v17  ;;  %v1302_v61 = vld [vmem:[#allocation8 + $0x368] sm:$0xff] }
 0x1c3   :  { %v1426_v62 = vld [vmem:[#allocation8 + $0x748] sm:$0xff]  ;;  %v5281_v5 = vcombine.high %v1298_v55, %v1302_v61  ;;  %v5280_v15 = vcombine.low %v1298_v55, %v1302_v61 }
 0x1c4   :  { %4490 = vmatpush1.bf16.msra.mxu0 %v5192_v28  ;;  %v1430_v63 = vld [vmem:[#allocation8 + $0x768] sm:$0xff] }
 0x1c5   :  { %4533 = vmatpush1.bf16.msra.mxu1 %v5320_v30  ;;  %4491 = vmatprep.subr.bf16.mxu0 %v5185_v59  ;;  %v5409_v6 = vcombine.high %v1426_v62, %v1430_v63  ;;  %v1290_v9 = vld [vmem:[#allocation8 + $0x308] sm:$0xff]  ;;  %v5408_v16 = vcombine.low %v1426_v62, %v1430_v63 }
 0x1c6   :  { %4534 = vmatprep.subr.bf16.mxu1 %v5313_v32  ;;  %v1294_v10 = vld [vmem:[#allocation8 + $0x328] sm:$0xff] }
 0x1c7   :  { %v1418_v12 = vld [vmem:[#allocation8 + $0x708] sm:$0xff]  ;;  %v5273_v17 = vcombine.high %v1290_v9, %v1294_v10  ;;  %v5272_v30 = vcombine.low %v1290_v9, %v1294_v10 }
 0x1c8   :  { %4492 = vmatpush1.bf16.msra.mxu0 %v5184_v35  ;;  %v1422_v13 = vld [vmem:[#allocation8 + $0x728] sm:$0xff] }
 0x1c9   :  { %4535 = vmatpush1.bf16.msra.mxu1 %v5312_v7  ;;  %4493 = vmatprep.subr.bf16.mxu0 %v5177_v42  ;;  %v5401_v24 = vcombine.high %v1418_v12, %v1422_v13  ;;  %v1282_v25 = vld [vmem:[#allocation8 + $0x2c8] sm:$0xff]  ;;  %v5400_v59 = vcombine.low %v1418_v12, %v1422_v13 }
 0x1ca   :  { %4536 = vmatprep.subr.bf16.mxu1 %v5305_v39  ;;  %v1286_v26 = vld [vmem:[#allocation8 + $0x2e8] sm:$0xff] }
 0x1cb   :  { %v1410_v27 = vld [vmem:[#allocation8 + $0x6c8] sm:$0xff]  ;;  %v5265_v32 = vcombine.high %v1282_v25, %v1286_v26  ;;  %v5264_v7 = vcombine.low %v1282_v25, %v1286_v26 }
 0x1cc   :  { %4494 = vmatpush1.bf16.msra.mxu0 %v5176_v45  ;;  %v1414_v28 = vld [vmem:[#allocation8 + $0x6e8] sm:$0xff] }
 0x1cd   :  { %4537 = vmatpush1.bf16.msra.mxu1 %v5304_v20  ;;  %4495 = vmatprep.subr.bf16.mxu0 %v5297_v46  ;;  %v5393_v33 = vcombine.high %v1410_v27, %v1414_v28  ;;  %v1274_v44 = vld [vmem:[#allocation8 + $0x288] sm:$0xff]  ;;  %v5392_v42 = vcombine.low %v1410_v27, %v1414_v28 }
 0x1ce   :  { %4538 = vmatprep.subr.bf16.mxu1 %v5425_v51  ;;  %v1278_v14 = vld [vmem:[#allocation8 + $0x2a8] sm:$0xff] }
 0x1cf   :  { %v1402_v52 = vld [vmem:[#allocation8 + $0x688] sm:$0xff]  ;;  %v5257_v39 = vcombine.high %v1274_v44, %v1278_v14  ;;  %v5256_v20 = vcombine.low %v1274_v44, %v1278_v14 }
 0x1d0   :  { %4496 = vmatpush2.bf16.msra.mxu0 %v5296_v48  ;;  %v1406_v35 = vld [vmem:[#allocation8 + $0x6a8] sm:$0xff] }
 0x1d1   :  { %4539 = vmatpush2.bf16.msra.mxu1 %v5424_v54  ;;  %4497 = vmatprep.subr.bf16.mxu0 %v5289_v60  ;;  %v5385_v58 = vcombine.high %v1402_v52, %v1406_v35  ;;  %v1266_v29 = vld [vmem:[#allocation8 + $0x248] sm:$0xff]  ;;  %v5384_v46 = vcombine.low %v1402_v52, %v1406_v35 }
 0x1d2   :  { %4540 = vmatprep.subr.bf16.mxu1 %v5417_v49  ;;  %v1270_v37 = vld [vmem:[#allocation8 + $0x268] sm:$0xff] }
 0x1d3   :  { %v1394_v31 = vld [vmem:[#allocation8 + $0x648] sm:$0xff]  ;;  %v5249_v51 = vcombine.high %v1266_v29, %v1270_v37  ;;  %v5248_v54 = vcombine.low %v1266_v29, %v1270_v37 }
 0x1d4   :  { %4498 = vmatpush2.bf16.msra.mxu0 %v5288_v0  ;;  %v1398_v45 = vld [vmem:[#allocation8 + $0x668] sm:$0xff] }
 0x1d5   :  { %4541 = vmatpush2.bf16.msra.mxu1 %v5416_v3  ;;  %4499 = vmatprep.subr.bf16.mxu0 %v5281_v5  ;;  %v5377_v53 = vcombine.high %v1394_v31, %v1398_v45  ;;  %v1258_v56 = vld [vmem:[#allocation8 + $0x208] sm:$0xff]  ;;  %v5376_v60 = vcombine.low %v1394_v31, %v1398_v45 }
 0x1d6   :  { %4542 = vmatprep.subr.bf16.mxu1 %v5409_v6  ;;  %v1262_v57 = vld [vmem:[#allocation8 + $0x228] sm:$0xff] }
 0x1d7   :  { %v1386_v47 = vld [vmem:[#allocation8 + $0x608] sm:$0xff]  ;;  %v5241_v49 = vcombine.high %v1258_v56, %v1262_v57  ;;  %v5240_v3 = vcombine.low %v1258_v56, %v1262_v57 }
 0x1d8   :  { %4500 = vmatpush2.bf16.msra.mxu0 %v5280_v15  ;;  %v1390_v48 = vld [vmem:[#allocation8 + $0x628] sm:$0xff] }
 0x1d9   :  { %4543 = vmatpush2.bf16.msra.mxu1 %v5408_v16  ;;  %4501 = vmatprep.subr.bf16.mxu0 %v5273_v17  ;;  %v5369_v55 = vcombine.high %v1386_v47, %v1390_v48  ;;  %v1506_v61 = vld [vmem:[#allocation8 + $0x9c8] sm:$0xff]  ;;  %v5368_v5 = vcombine.low %v1386_v47, %v1390_v48 }
 0x1da   :  { %4544 = vmatprep.subr.bf16.mxu1 %v5401_v24  ;;  %v1510_v62 = vld [vmem:[#allocation8 + $0x9e8] sm:$0xff] }
 0x1db   :  { %v1634_v63 = vld [vmem:[#allocation8 + $0xdc8] sm:$0xff]  ;;  %v5489_v6 = vcombine.high %v1506_v61, %v1510_v62  ;;  %v5488_v13 = vcombine.low %v1506_v61, %v1510_v62 }
 0x1dc   :  { %4502 = vmatpush2.bf16.msra.mxu0 %v5272_v30  ;;  %v1638_v0 = vld [vmem:[#allocation8 + $0xde8] sm:$0xff] }
 0x1dd   :  { %4545 = vmatpush2.bf16.msra.mxu1 %v5400_v59  ;;  %4503 = vmatprep.subr.bf16.mxu0 %v5265_v32  ;;  %v5617_v9 = vcombine.high %v1634_v63, %v1638_v0  ;;  %v1498_v10 = vld [vmem:[#allocation8 + $0x988] sm:$0xff]  ;;  %v5616_v17 = vcombine.low %v1634_v63, %v1638_v0 }
 0x1de   :  { %4546 = vmatprep.subr.bf16.mxu1 %v5393_v33  ;;  %v1502_v12 = vld [vmem:[#allocation8 + $0x9a8] sm:$0xff] }
 0x1df   :  { %v1626_v15 = vld [vmem:[#allocation8 + $0xd88] sm:$0xff]  ;;  %v5481_v24 = vcombine.high %v1498_v10, %v1502_v12  ;;  %v5480_v59 = vcombine.low %v1498_v10, %v1502_v12 }
 0x1e0   :  { %4504 = vmatpush2.bf16.msra.mxu0 %v5264_v7  ;;  %v1630_v16 = vld [vmem:[#allocation8 + $0xda8] sm:$0xff] }
 0x1e1   :  { %4547 = vmatpush2.bf16.msra.mxu1 %v5392_v42  ;;  %4505 = vmatprep.subr.bf16.mxu0 %v5257_v39  ;;  %v1490_v25 = vld [vmem:[#allocation8 + $0x948] sm:$0xff]  ;;  %v5609_v27 = vcombine.high %v1626_v15, %v1630_v16  ;;  %v5608_v32 = vcombine.low %v1626_v15, %v1630_v16 }
 0x1e2   :  { %4548 = vmatprep.subr.bf16.mxu1 %v5385_v58  ;;  %v1494_v26 = vld [vmem:[#allocation8 + $0x968] sm:$0xff] }
 0x1e3   :  { %v1618_v28 = vld [vmem:[#allocation8 + $0xd48] sm:$0xff]  ;;  %v5473_v33 = vcombine.high %v1490_v25, %v1494_v26  ;;  %v5472_v42 = vcombine.low %v1490_v25, %v1494_v26 }
 0x1e4   :  { %4506 = vmatpush2.bf16.msra.mxu0 %v5256_v20  ;;  %v1622_v30 = vld [vmem:[#allocation8 + $0xd68] sm:$0xff] }
 0x1e5   :  { %4549 = vmatpush2.bf16.msra.mxu1 %v5384_v46  ;;  %4507 = vmatprep.subr.bf16.mxu0 %v5249_v51  ;;  %v5601_v44 = vcombine.high %v1618_v28, %v1622_v30  ;;  %v1482_v14 = vld [vmem:[#allocation8 + $0x908] sm:$0xff]  ;;  %v5600_v39 = vcombine.low %v1618_v28, %v1622_v30 }
 0x1e6   :  { %4550 = vmatprep.subr.bf16.mxu1 %v5377_v53  ;;  %v1486_v52 = vld [vmem:[#allocation8 + $0x928] sm:$0xff] }
 0x1e7   :  { %v1610_v35 = vld [vmem:[#allocation8 + $0xd08] sm:$0xff]  ;;  %v5465_v58 = vcombine.high %v1482_v14, %v1486_v52  ;;  %v5464_v46 = vcombine.low %v1482_v14, %v1486_v52 }
 0x1e8   :  { %4508 = vmatpush2.bf16.msra.mxu0 %v5248_v54  ;;  %v1614_v7 = vld [vmem:[#allocation8 + $0xd28] sm:$0xff] }
 0x1e9   :  { %4551 = vmatpush2.bf16.msra.mxu1 %v5376_v60  ;;  %4509 = vmatprep.subr.bf16.mxu0 %v5241_v49  ;;  %v5593_v29 = vcombine.high %v1610_v35, %v1614_v7  ;;  %v1474_v37 = vld [vmem:[#allocation8 + $0x8c8] sm:$0xff]  ;;  %v5592_v51 = vcombine.low %v1610_v35, %v1614_v7 }
 0x1ea   :  { %4552 = vmatprep.subr.bf16.mxu1 %v5369_v55  ;;  %v1478_v31 = vld [vmem:[#allocation8 + $0x8e8] sm:$0xff] }
 0x1eb   :  { %v1602_v45 = vld [vmem:[#allocation8 + $0xcc8] sm:$0xff]  ;;  %v5457_v53 = vcombine.high %v1474_v37, %v1478_v31  ;;  %v5456_v60 = vcombine.low %v1474_v37, %v1478_v31 }
 0x1ec   :  { %4510 = vmatpush2.bf16.msra.mxu0 %v5240_v3  ;;  %v1606_v20 = vld [vmem:[#allocation8 + $0xce8] sm:$0xff] }
 0x1ed   :  { %4553 = vmatpush2.bf16.msra.mxu1 %v5368_v5  ;;  %4565 = vmatprep.subr.bf16.mxu0 %v5489_v6  ;;  %v5585_v56 = vcombine.high %v1602_v45, %v1606_v20  ;;  %v1466_v57 = vld [vmem:[#allocation8 + $0x888] sm:$0xff]  ;;  %v5584_v49 = vcombine.low %v1602_v45, %v1606_v20 }
 0x1ee   :  { %4608 = vmatprep.subr.bf16.mxu1 %v5617_v9  ;;  %v1470_v47 = vld [vmem:[#allocation8 + $0x8a8] sm:$0xff] }
 0x1ef   :  { %4512 = vmatmul.mubr.bf16.vlgmr.msra.gmra.mxu0 %v6006_v41  ;;  %v1594_v48 = vld [vmem:[#allocation8 + $0xc88] sm:$0xff]  ;;  %v5449_v55 = vcombine.high %v1466_v57, %v1470_v47  ;;  %v5448_v5 = vcombine.low %v1466_v57, %v1470_v47 }
 0x1f0   :  { %4555 = vmatmul.mubr.bf16.vlgmr.msra.gmra.mxu1 %v6010_v34  ;;  %4566 = vmatpush1.bf16.msra.mxu0 %v5488_v13  ;;  %v1598_v54 = vld [vmem:[#allocation8 + $0xca8] sm:$0xff] }
 0x1f1   :  { %4597 = vmatprep.mubr.bf16.mxu0 %v6070_v36  ;;  %4609 = vmatpush1.bf16.msra.mxu1 %v5616_v17  ;;  %v5577_v61 = vcombine.high %v1594_v48, %v1598_v54  ;;  %v1458_v62 = vld [vmem:[#allocation8 + $0x848] sm:$0xff]  ;;  %v5576_v6 = vcombine.low %v1594_v48, %v1598_v54 }
 0x1f2   :  { %4640 = vmatprep.mubr.bf16.mxu1 %v6074_v2  ;;  %4567 = vmatprep.subr.bf16.mxu0 %v5481_v24  ;;  %v1462_v63 = vld [vmem:[#allocation8 + $0x868] sm:$0xff] }
 0x1f3   :  { %4610 = vmatprep.subr.bf16.mxu1 %v5609_v27  ;;  %v1586_v0 = vld [vmem:[#allocation8 + $0xc48] sm:$0xff]  ;;  %v5441_v9 = vcombine.high %v1458_v62, %v1462_v63  ;;  %v5440_v17 = vcombine.low %v1458_v62, %v1462_v63 }
 0x1f4   :  { %4568 = vmatpush1.bf16.msra.mxu0 %v5480_v59  ;;  %v1590_v3 = vld [vmem:[#allocation8 + $0xc68] sm:$0xff] }
 0x1f5   :  { %4611 = vmatpush1.bf16.msra.mxu1 %v5608_v32  ;;  %4569 = vmatprep.subr.bf16.mxu0 %v5473_v33  ;;  %v5569_v10 = vcombine.high %v1586_v0, %v1590_v3  ;;  %v1450_v12 = vld [vmem:[#allocation8 + $0x808] sm:$0xff]  ;;  %v5568_v24 = vcombine.low %v1586_v0, %v1590_v3 }
 0x1f6   :  { %4612 = vmatprep.subr.bf16.mxu1 %v5601_v44  ;;  %v1454_v13 = vld [vmem:[#allocation8 + $0x828] sm:$0xff] }
 0x1f7   :  { %v1578_v15 = vld [vmem:[#allocation8 + $0xc08] sm:$0xff]  ;;  %v5433_v25 = vcombine.high %v1450_v12, %v1454_v13  ;;  %v5432_v32 = vcombine.low %v1450_v12, %v1454_v13 }
 0x1f8   :  { %4570 = vmatpush1.bf16.msra.mxu0 %v5472_v42  ;;  %v1582_v16 = vld [vmem:[#allocation8 + $0xc28] sm:$0xff] }
 0x1f9   :  { %4613 = vmatpush1.bf16.msra.mxu1 %v5600_v39  ;;  %4571 = vmatprep.subr.bf16.mxu0 %v5465_v58  ;;  %v5561_v26 = vcombine.high %v1578_v15, %v1582_v16  ;;  %v1570_v27 = vld [vmem:[#allocation8 + $0xbc8] sm:$0xff]  ;;  %v5560_v33 = vcombine.low %v1578_v15, %v1582_v16 }
 0x1fa   :  { %4614 = vmatprep.subr.bf16.mxu1 %v5593_v29  ;;  %v1574_v28 = vld [vmem:[#allocation8 + $0xbe8] sm:$0xff] }
 0x1fb   :  { %v1698_v30 = vld [vmem:[#allocation8 + $0xfc8] sm:$0xff]  ;;  %v5553_v44 = vcombine.high %v1570_v27, %v1574_v28  ;;  %v5552_v39 = vcombine.low %v1570_v27, %v1574_v28 }
 0x1fc   :  { %4572 = vmatpush1.bf16.msra.mxu0 %v5464_v46  ;;  %v1702_v59 = vld [vmem:[#allocation8 + $0xfe8] sm:$0xff] }
 0x1fd   :  { %4615 = vmatpush1.bf16.msra.mxu1 %v5592_v51  ;;  %4573 = vmatprep.subr.bf16.mxu0 %v5457_v53  ;;  %v5681_v14 = vcombine.high %v1698_v30, %v1702_v59  ;;  %v1562_v52 = vld [vmem:[#allocation8 + $0xb88] sm:$0xff]  ;;  %v5680_v58 = vcombine.low %v1698_v30, %v1702_v59 }
 0x1fe   :  { %4616 = vmatprep.subr.bf16.mxu1 %v5585_v56  ;;  %v1566_v35 = vld [vmem:[#allocation8 + $0xba8] sm:$0xff] }
 0x1ff   :  { %v1690_v7 = vld [vmem:[#allocation8 + $0xf88] sm:$0xff]  ;;  %v5545_v29 = vcombine.high %v1562_v52, %v1566_v35  ;;  %v5544_v51 = vcombine.low %v1562_v52, %v1566_v35 }
 0x200   :  { %4574 = vmatpush1.bf16.msra.mxu0 %v5456_v60  ;;  %v1694_v42 = vld [vmem:[#allocation8 + $0xfa8] sm:$0xff] }
 0x201   :  { %4617 = vmatpush1.bf16.msra.mxu1 %v5584_v49  ;;  %4575 = vmatprep.subr.bf16.mxu0 %v5449_v55  ;;  %v5673_v37 = vcombine.high %v1690_v7, %v1694_v42  ;;  %v1554_v31 = vld [vmem:[#allocation8 + $0xb48] sm:$0xff]  ;;  %v5672_v53 = vcombine.low %v1690_v7, %v1694_v42 }
 0x202   :  { %4618 = vmatprep.subr.bf16.mxu1 %v5577_v61  ;;  %v1558_v45 = vld [vmem:[#allocation8 + $0xb68] sm:$0xff] }
 0x203   :  { %v1682_v20 = vld [vmem:[#allocation8 + $0xf48] sm:$0xff]  ;;  %v5537_v56 = vcombine.high %v1554_v31, %v1558_v45  ;;  %v5536_v49 = vcombine.low %v1554_v31, %v1558_v45  ;;  %v1251_v45 = vld [vmem:[#allocation8 + $0x1d0] sm:$0xff] }
 0x204   :  { %4576 = vmatpush1.bf16.msra.mxu0 %v5448_v5  ;;  %v1686_v46 = vld [vmem:[#allocation8 + $0xf68] sm:$0xff] }
 0x205   :  { %4619 = vmatpush1.bf16.msra.mxu1 %v5576_v6  ;;  %4577 = vmatprep.subr.bf16.mxu0 %v5441_v9  ;;  %v5665_v57 = vcombine.high %v1682_v20, %v1686_v46  ;;  %v1546_v47 = vld [vmem:[#allocation8 + $0xb08] sm:$0xff]  ;;  %v5664_v55 = vcombine.low %v1682_v20, %v1686_v46  ;;  %v1255_v20 = vld [vmem:[#allocation8 + $0x1f0] sm:$0xff] }
 0x206   :  { %4620 = vmatprep.subr.bf16.mxu1 %v5569_v10  ;;  %v1550_v48 = vld [vmem:[#allocation8 + $0xb28] sm:$0xff]  ;;  %v1379_v46 = vld [vmem:[#allocation8 + $0x5d0] sm:$0xff] }
 0x207   :  { %v1674_v54 = vld [vmem:[#allocation8 + $0xf08] sm:$0xff]  ;;  %v5529_v61 = vcombine.high %v1546_v47, %v1550_v48  ;;  %v5528_v6 = vcombine.low %v1546_v47, %v1550_v48  ;;  %v1243_v48 = vld [vmem:[#allocation8 + $0x190] sm:$0xff] }
 0x208   :  { %4578 = vmatpush1.bf16.msra.mxu0 %v5440_v17  ;;  %v1678_v60 = vld [vmem:[#allocation8 + $0xf28] sm:$0xff] }
 0x209   :  { %4621 = vmatpush1.bf16.msra.mxu1 %v5568_v24  ;;  %4579 = vmatprep.subr.bf16.mxu0 %v5433_v25  ;;  %v5657_v62 = vcombine.high %v1674_v54, %v1678_v60  ;;  %v1538_v63 = vld [vmem:[#allocation8 + $0xac8] sm:$0xff]  ;;  %v5656_v9 = vcombine.low %v1674_v54, %v1678_v60  ;;  %v1247_v54 = vld [vmem:[#allocation8 + $0x1b0] sm:$0xff]  ;;  %v5234_v60 = vcombine.low %v1251_v45, %v1255_v20 }
 0x20a   :  { %4622 = vmatprep.subr.bf16.mxu1 %v5561_v26  ;;  %v1542_v0 = vld [vmem:[#allocation8 + $0xae8] sm:$0xff] }
 0x20b   :  { %v1666_v3 = vld [vmem:[#allocation8 + $0xec8] sm:$0xff]  ;;  %v5521_v10 = vcombine.high %v1538_v63, %v1542_v0  ;;  %v5520_v24 = vcombine.low %v1538_v63, %v1542_v0  ;;  %v1235_v63 = vld [vmem:[#allocation8 + $0x150] sm:$0xff] }
 0x20c   :  { %4580 = vmatpush1.bf16.msra.mxu0 %v5432_v32  ;;  %v1670_v5 = vld [vmem:[#allocation8 + $0xee8] sm:$0xff]  ;;  %v1239_v0 = vld [vmem:[#allocation8 + $0x170] sm:$0xff] }
 0x20d   :  { %4623 = vmatpush1.bf16.msra.mxu1 %v5560_v33  ;;  %4581 = vmatprep.subr.bf16.mxu0 %v5553_v44  ;;  %v5649_v12 = vcombine.high %v1666_v3, %v1670_v5  ;;  %v1530_v13 = vld [vmem:[#allocation8 + $0xa88] sm:$0xff]  ;;  %v5648_v25 = vcombine.low %v1666_v3, %v1670_v5  ;;  %v1363_v5 = vld [vmem:[#allocation8 + $0x550] sm:$0xff] }
 0x20e   :  { %4624 = vmatprep.subr.bf16.mxu1 %v5681_v14  ;;  %v1534_v15 = vld [vmem:[#allocation8 + $0xaa8] sm:$0xff] }
 0x20f   :  { %v1658_v16 = vld [vmem:[#allocation8 + $0xe88] sm:$0xff]  ;;  %v5513_v26 = vcombine.high %v1530_v13, %v1534_v15  ;;  %v5512_v33 = vcombine.low %v1530_v13, %v1534_v15  ;;  %v1227_v15 = vld [vmem:[#allocation8 + $0x110] sm:$0xff] }
 0x210   :  { %4582 = vmatpush2.bf16.msra.mxu0 %v5552_v39  ;;  %v1662_v17 = vld [vmem:[#allocation8 + $0xea8] sm:$0xff] }
 0x211   :  { %4625 = vmatpush2.bf16.msra.mxu1 %v5680_v58  ;;  %4583 = vmatprep.subr.bf16.mxu0 %v5545_v29  ;;  %v5641_v27 = vcombine.high %v1658_v16, %v1662_v17  ;;  %v1522_v28 = vld [vmem:[#allocation8 + $0xa48] sm:$0xff]  ;;  %v5640_v44 = vcombine.low %v1658_v16, %v1662_v17  ;;  %v1231_v16 = vld [vmem:[#allocation8 + $0x130] sm:$0xff] }
 0x212   :  { %4626 = vmatprep.subr.bf16.mxu1 %v5673_v37  ;;  %v1526_v30 = vld [vmem:[#allocation8 + $0xa68] sm:$0xff]  ;;  %v1355_v17 = vld [vmem:[#allocation8 + $0x510] sm:$0xff] }
 0x213   :  { %v1650_v59 = vld [vmem:[#allocation8 + $0xe48] sm:$0xff]  ;;  %v5505_v14 = vcombine.high %v1522_v28, %v1526_v30  ;;  %v5504_v58 = vcombine.low %v1522_v28, %v1526_v30  ;;  %v1219_v30 = vld [vmem:[#allocation8 + $0xd0] sm:$0xff] }
 0x214   :  { %4584 = vmatpush2.bf16.msra.mxu0 %v5544_v51  ;;  %v1654_v32 = vld [vmem:[#allocation8 + $0xe68] sm:$0xff]  ;;  %v1383_v51 = vld [vmem:[#allocation8 + $0x5f0] sm:$0xff] }
 0x215   :  { %4627 = vmatpush2.bf16.msra.mxu1 %v5672_v53  ;;  %4585 = vmatprep.subr.bf16.mxu0 %v5537_v56  ;;  %v5633_v52 = vcombine.high %v1650_v59, %v1654_v32  ;;  %v1514_v35 = vld [vmem:[#allocation8 + $0xa08] sm:$0xff]  ;;  %v5632_v29 = vcombine.low %v1650_v59, %v1654_v32  ;;  %v5363_v47 = vcombine.high %v1379_v46, %v1383_v51  ;;  %v1223_v59 = vld [vmem:[#allocation8 + $0xf0] sm:$0xff] }
 0x216   :  { %4628 = vmatprep.subr.bf16.mxu1 %v5665_v57  ;;  %v1518_v7 = vld [vmem:[#allocation8 + $0xa28] sm:$0xff]  ;;  %v5235_v57 = vcombine.high %v1251_v45, %v1255_v20  ;;  %v1347_v32 = vld [vmem:[#allocation8 + $0x4d0] sm:$0xff] }
 0x217   :  { %v1642_v42 = vld [vmem:[#allocation8 + $0xe08] sm:$0xff]  ;;  %v5497_v37 = vcombine.high %v1514_v35, %v1518_v7  ;;  %v5496_v53 = vcombine.low %v1514_v35, %v1518_v7  ;;  %v1211_v7 = vld [vmem:[#allocation8 + $0x90] sm:$0xff] }
 0x218   :  { %4586 = vmatpush2.bf16.msra.mxu0 %v5536_v49  ;;  %v1646_v39 = vld [vmem:[#allocation8 + $0xe28] sm:$0xff]  ;;  %v1371_v49 = vld [vmem:[#allocation8 + $0x590] sm:$0xff] }
 0x219   :  { %4629 = vmatpush2.bf16.msra.mxu1 %v5664_v55  ;;  %4587 = vmatprep.subr.bf16.mxu0 %v5529_v61  ;;  %v5625_v31 = vcombine.high %v1642_v42, %v1646_v39  ;;  %v5624_v56 = vcombine.low %v1642_v42, %v1646_v39  ;;  %v1375_v55 = vld [vmem:[#allocation8 + $0x5b0] sm:$0xff]  ;;  %v5362_v61 = vcombine.low %v1379_v46, %v1383_v51 }
 0x21a   :  { %4630 = vmatprep.subr.bf16.mxu1 %v5657_v62  ;;  %v5227_v62 = vcombine.high %v1243_v48, %v1247_v54  ;;  %v5355_v3 = vcombine.high %v1371_v49, %v1375_v55  ;;  %v1215_v42 = vld [vmem:[#allocation8 + $0xb0] sm:$0xff] }
 0x21b   :  { %v1339_v39 = vld [vmem:[#allocation8 + $0x490] sm:$0xff] }
 0x21c   :  { %4588 = vmatpush2.bf16.msra.mxu0 %v5528_v6  ;;  %v1367_v6 = vld [vmem:[#allocation8 + $0x570] sm:$0xff] }
 0x21d   :  { %4631 = vmatpush2.bf16.msra.mxu1 %v5656_v9  ;;  %4589 = vmatprep.subr.bf16.mxu0 %v5521_v10  ;;  %v5226_v9 = vcombine.low %v1243_v48, %v1247_v54  ;;  %v5354_v10 = vcombine.low %v1371_v49, %v1375_v55  ;;  %v5347_v13 = vcombine.high %v1363_v5, %v1367_v6  ;;  %v1203_v20 = vld [vmem:[#allocation8 + $0x50] sm:$0xff] }
 0x21e   :  { %4632 = vmatprep.subr.bf16.mxu1 %v5649_v12  ;;  %v5219_v12 = vcombine.high %v1235_v63, %v1239_v0  ;;  %v1207_v46 = vld [vmem:[#allocation8 + $0x70] sm:$0xff] }
 0x21f   :  { %v1331_v51 = vld [vmem:[#allocation8 + $0x450] sm:$0xff] }
 0x220   :  { %4590 = vmatpush2.bf16.msra.mxu0 %v5520_v24  ;;  %v1359_v24 = vld [vmem:[#allocation8 + $0x530] sm:$0xff] }
 0x221   :  { %4633 = vmatpush2.bf16.msra.mxu1 %v5648_v25  ;;  %4591 = vmatprep.subr.bf16.mxu0 %v5513_v26  ;;  %v5218_v25 = vcombine.low %v1235_v63, %v1239_v0  ;;  %v5346_v26 = vcombine.low %v1363_v5, %v1367_v6  ;;  %v5339_v28 = vcombine.high %v1355_v17, %v1359_v24  ;;  %v1195_v54 = vld [vmem:[#allocation8 + $0x10] sm:$0xff] }
 0x222   :  { %4634 = vmatprep.subr.bf16.mxu1 %v5641_v27  ;;  %v5211_v27 = vcombine.high %v1227_v15, %v1231_v16  ;;  %v1323_v49 = vld [vmem:[#allocation8 + $0x410] sm:$0xff] }
 0x223   :  { %v1327_v55 = vld [vmem:[#allocation8 + $0x430] sm:$0xff] }
 0x224   :  { %4592 = vmatpush2.bf16.msra.mxu0 %v5512_v33  ;;  %v1351_v33 = vld [vmem:[#allocation8 + $0x4f0] sm:$0xff]  ;;  %v5307_v0 = vcombine.high %v1323_v49, %v1327_v55 }
 0x225   :  { %4635 = vmatpush2.bf16.msra.mxu1 %v5640_v44  ;;  %4593 = vmatprep.subr.bf16.mxu0 %v5505_v14  ;;  %v5210_v44 = vcombine.low %v1227_v15, %v1231_v16  ;;  %v5338_v14 = vcombine.low %v1355_v17, %v1359_v24  ;;  %v5331_v35 = vcombine.high %v1347_v32, %v1351_v33  ;;  %v1319_v5 = vld [vmem:[#allocation8 + $0x3f0] sm:$0xff] }
 0x226   :  { %4636 = vmatprep.subr.bf16.mxu1 %v5633_v52  ;;  %v5203_v52 = vcombine.high %v1219_v30, %v1223_v59  ;;  %v1443_v6 = vld [vmem:[#allocation8 + $0x7d0] sm:$0xff] }
 0x227   :  { %v1307_v16 = vld [vmem:[#allocation8 + $0x390] sm:$0xff] }
 0x228   :  { %4594 = vmatpush2.bf16.msra.mxu0 %v5504_v58  ;;  %v1343_v58 = vld [vmem:[#allocation8 + $0x4b0] sm:$0xff] }
 0x229   :  { %4637 = vmatpush2.bf16.msra.mxu1 %v5632_v29  ;;  %4595 = vmatprep.subr.bf16.mxu0 %v5497_v37  ;;  %v5202_v29 = vcombine.low %v1219_v30, %v1223_v59  ;;  %v5330_v37 = vcombine.low %v1347_v32, %v1351_v33  ;;  %v5323_v45 = vcombine.high %v1339_v39, %v1343_v58  ;;  %v1311_v17 = vld [vmem:[#allocation8 + $0x3b0] sm:$0xff] }
 0x22a   :  { %4638 = vmatprep.subr.bf16.mxu1 %v5625_v31  ;;  %v5195_v31 = vcombine.high %v1211_v7, %v1215_v42  ;;  %v1435_v24 = vld [vmem:[#allocation8 + $0x790] sm:$0xff] }
 0x22b   :  { %v1299_v59 = vld [vmem:[#allocation8 + $0x350] sm:$0xff] }
 0x22c   :  { %4596 = vmatpush2.bf16.msra.mxu0 %v5496_v53  ;;  %v1335_v53 = vld [vmem:[#allocation8 + $0x470] sm:$0xff] }
 0x22d   :  { %4639 = vmatpush2.bf16.msra.mxu1 %v5624_v56  ;;  %4651 = vmatprep.subr.bf16.mxu0 %v5235_v57  ;;  %v5194_v56 = vcombine.low %v1211_v7, %v1215_v42  ;;  %v5322_v57 = vcombine.low %v1339_v39, %v1343_v58  ;;  %v5315_v48 = vcombine.high %v1331_v51, %v1335_v53  ;;  %v1303_v32 = vld [vmem:[#allocation8 + $0x370] sm:$0xff] }
 0x22e   :  { %4694 = vmatprep.subr.bf16.mxu1 %v5363_v47  ;;  %v5187_v47 = vcombine.high %v1203_v20, %v1207_v46  ;;  %v1427_v33 = vld [vmem:[#allocation8 + $0x750] sm:$0xff] }
 0x22f   :  { %4598 = vmatmul.mubr.bf16.vlgmr.msra.gmra.mxu0 %v6072_v38  ;;  %v1291_v42 = vld [vmem:[#allocation8 + $0x310] sm:$0xff] }
 0x230   :  { %4641 = vmatmul.mubr.bf16.vlgmr.msra.gmra.mxu1 %v6076_v50  ;;  %4652 = vmatpush1.bf16.msra.mxu0 %v5234_v60  ;;  %v1199_v60 = vld [vmem:[#allocation8 + $0x30] sm:$0xff] }
 0x231   :  { %4683 = vmatprep.mubr.bf16.mxu0 %v6004_v40  ;;  %4695 = vmatpush1.bf16.msra.mxu1 %v5362_v61  ;;  %v5186_v61 = vcombine.low %v1203_v20, %v1207_v46  ;;  %v5179_v63 = vcombine.high %v1195_v54, %v1199_v60  ;;  %v1295_v39 = vld [vmem:[#allocation8 + $0x330] sm:$0xff] }
 0x232   :  { %4726 = vmatprep.mubr.bf16.mxu1 %v6008_v43  ;;  %4653 = vmatprep.subr.bf16.mxu0 %v5227_v62  ;;  %v5314_v62 = vcombine.low %v1331_v51, %v1335_v53  ;;  %v1419_v58 = vld [vmem:[#allocation8 + $0x710] sm:$0xff] }
 0x233   :  { %4696 = vmatprep.subr.bf16.mxu1 %v5355_v3  ;;  %v1315_v3 = vld [vmem:[#allocation8 + $0x3d0] sm:$0xff] }
 0x234   :  { %4654 = vmatpush1.bf16.msra.mxu0 %v5226_v9  ;;  %v1447_v9 = vld [vmem:[#allocation8 + $0x7f0] sm:$0xff] }
 0x235   :  { %4697 = vmatpush1.bf16.msra.mxu1 %v5354_v10  ;;  %4655 = vmatprep.subr.bf16.mxu0 %v5219_v12  ;;  %v5178_v10 = vcombine.low %v1195_v54, %v1199_v60  ;;  %v5306_v12 = vcombine.low %v1323_v49, %v1327_v55  ;;  %v5427_v15 = vcombine.high %v1443_v6, %v1447_v9  ;;  %v1283_v46 = vld [vmem:[#allocation8 + $0x2d0] sm:$0xff] }
 0x236   :  { %4698 = vmatprep.subr.bf16.mxu1 %v5347_v13  ;;  %v5299_v13 = vcombine.high %v1315_v3, %v1319_v5  ;;  %v1287_v51 = vld [vmem:[#allocation8 + $0x2f0] sm:$0xff] }
 0x237   :  { %v1411_v53 = vld [vmem:[#allocation8 + $0x6d0] sm:$0xff] }
 0x238   :  { %4656 = vmatpush1.bf16.msra.mxu0 %v5218_v25  ;;  %v1439_v25 = vld [vmem:[#allocation8 + $0x7b0] sm:$0xff] }
 0x239   :  { %4699 = vmatpush1.bf16.msra.mxu1 %v5346_v26  ;;  %4657 = vmatprep.subr.bf16.mxu0 %v5211_v27  ;;  %v5298_v26 = vcombine.low %v1315_v3, %v1319_v5  ;;  %v5426_v27 = vcombine.low %v1443_v6, %v1447_v9  ;;  %v5419_v30 = vcombine.high %v1435_v24, %v1439_v25  ;;  %v1275_v60 = vld [vmem:[#allocation8 + $0x290] sm:$0xff] }
 0x23a   :  { %4700 = vmatprep.subr.bf16.mxu1 %v5339_v28  ;;  %v5291_v28 = vcombine.high %v1307_v16, %v1311_v17  ;;  %v1279_v49 = vld [vmem:[#allocation8 + $0x2b0] sm:$0xff] }
 0x23b   :  { %v1403_v55 = vld [vmem:[#allocation8 + $0x690] sm:$0xff] }
 0x23c   :  { %4658 = vmatpush1.bf16.msra.mxu0 %v5210_v44  ;;  %v1431_v44 = vld [vmem:[#allocation8 + $0x770] sm:$0xff] }
 0x23d   :  { %4701 = vmatpush1.bf16.msra.mxu1 %v5338_v14  ;;  %4659 = vmatprep.subr.bf16.mxu0 %v5203_v52  ;;  %v5290_v14 = vcombine.low %v1307_v16, %v1311_v17  ;;  %v5418_v52 = vcombine.low %v1435_v24, %v1439_v25  ;;  %v5411_v7 = vcombine.high %v1427_v33, %v1431_v44  ;;  %v1267_v5 = vld [vmem:[#allocation8 + $0x250] sm:$0xff]  ;;  %v4384_v17 = vpop.f32.mrf.mxu1 }
 0x23e   :  { %4702 = vmatprep.subr.bf16.mxu1 %v5331_v35  ;;  %v5283_v35 = vcombine.high %v1299_v59, %v1303_v32  ;;  %v1271_v6 = vld [vmem:[#allocation8 + $0x270] sm:$0xff] }
 0x23f   :  { %v1395_v9 = vld [vmem:[#allocation8 + $0x650] sm:$0xff]  ;;  %v5251_v16 = vcombine.high %v1267_v5, %v1271_v6 }
 0x240   :  { %4660 = vmatpush1.bf16.msra.mxu0 %v5202_v29  ;;  %v1423_v29 = vld [vmem:[#allocation8 + $0x730] sm:$0xff] }
 0x241   :  { %4703 = vmatpush1.bf16.msra.mxu1 %v5330_v37  ;;  %4661 = vmatprep.subr.bf16.mxu0 %v5195_v31  ;;  %v5282_v37 = vcombine.low %v1299_v59, %v1303_v32  ;;  %v5410_v31 = vcombine.low %v1427_v33, %v1431_v44  ;;  %v5403_v20 = vcombine.high %v1419_v58, %v1423_v29  ;;  %v1259_v25 = vld [vmem:[#allocation8 + $0x210] sm:$0xff] }
 0x242   :  { %4704 = vmatprep.subr.bf16.mxu1 %v5323_v45  ;;  %v5275_v45 = vcombine.high %v1291_v42, %v1295_v39  ;;  %v5250_v59 = vcombine.low %v1267_v5, %v1271_v6  ;;  %v1623_v5 = vld [vmem:[#allocation8 + $0xd70] sm:$0xff] }
 0x244   :  { %4662 = vmatpush1.bf16.msra.mxu0 %v5194_v56  ;;  %v1415_v56 = vld [vmem:[#allocation8 + $0x6f0] sm:$0xff] }
 0x245   :  { %4705 = vmatpush1.bf16.msra.mxu1 %v5322_v57  ;;  %4663 = vmatprep.subr.bf16.mxu0 %v5187_v47  ;;  %v5274_v57 = vcombine.low %v1291_v42, %v1295_v39  ;;  %v5402_v47 = vcombine.low %v1419_v58, %v1423_v29  ;;  %v5395_v54 = vcombine.high %v1411_v53, %v1415_v56  ;;  %v1511_v42 = vld [vmem:[#allocation8 + $0x9f0] sm:$0xff] }
 0x246   :  { %4706 = vmatprep.subr.bf16.mxu1 %v5315_v48  ;;  %v5267_v48 = vcombine.high %v1283_v46, %v1287_v51  ;;  %v1635_v39 = vld [vmem:[#allocation8 + $0xdd0] sm:$0xff] }
 0x247   :  { %v1639_v58 = vld [vmem:[#allocation8 + $0xdf0] sm:$0xff] }
 0x248   :  { %4664 = vmatpush1.bf16.msra.mxu0 %v5186_v61  ;;  %v1407_v61 = vld [vmem:[#allocation8 + $0x6b0] sm:$0xff] }
 0x249   :  { %4707 = vmatpush1.bf16.msra.mxu1 %v5314_v62  ;;  %4665 = vmatprep.subr.bf16.mxu0 %v5179_v63  ;;  %v5266_v62 = vcombine.low %v1283_v46, %v1287_v51  ;;  %v5394_v63 = vcombine.low %v1411_v53, %v1415_v56  ;;  %v5387_v3 = vcombine.high %v1403_v55, %v1407_v61  ;;  %v1499_v53 = vld [vmem:[#allocation8 + $0x990] sm:$0xff] }
 0x24a   :  { %4708 = vmatprep.subr.bf16.mxu1 %v5307_v0  ;;  %v5259_v0 = vcombine.high %v1275_v60, %v1279_v49  ;;  %v5619_v51 = vcombine.high %v1635_v39, %v1639_v58  ;;  %v1503_v56 = vld [vmem:[#allocation8 + $0x9b0] sm:$0xff] }
 0x24c   :  { %4666 = vmatpush1.bf16.msra.mxu0 %v5178_v10  ;;  %v1399_v10 = vld [vmem:[#allocation8 + $0x670] sm:$0xff] }
 0x24d   :  { %4709 = vmatpush1.bf16.msra.mxu1 %v5306_v12  ;;  %4667 = vmatprep.subr.bf16.mxu0 %v5299_v13  ;;  %v5258_v12 = vcombine.low %v1275_v60, %v1279_v49  ;;  %v4341_v13 = vpop.f32.mrf.mxu0  ;;  %v5379_v24 = vcombine.high %v1395_v9, %v1399_v10  ;;  %v5378_v33 = vcombine.low %v1395_v9, %v1399_v10  ;;  %v1491_v49 = vld [vmem:[#allocation8 + $0x950] sm:$0xff] }
 0x24e   :  { %4710 = vmatprep.subr.bf16.mxu1 %v5427_v15  ;;  %v5386_v15 = vcombine.low %v1403_v55, %v1407_v61  ;;  %v5482_v9 = vcombine.low %v1499_v53, %v1503_v56 }
 0x24f   :  { %v4343_v32 = vpop.f32.mrf.mxu0 }
 0x250   :  { %4668 = vmatpush2.bf16.msra.mxu0 %v5298_v26  ;;  %v1263_v26 = vld [vmem:[#allocation8 + $0x230] sm:$0xff] }
 0x251   :  { %4711 = vmatpush2.bf16.msra.mxu1 %v5426_v27  ;;  %4669 = vmatprep.subr.bf16.mxu0 %v5291_v28  ;;  %v6092_v27 = vld [vmem:[#allocation10] sm:$0xff]  ;;  %v1387_v28 = vld [vmem:[#allocation8 + $0x610] sm:$0xff]  ;;  %v5243_v44 = vcombine.high %v1259_v25, %v1263_v26 }
 0x252   :  { %4712 = vmatprep.subr.bf16.mxu1 %v5419_v30  ;;  %v1391_v30 = vld [vmem:[#allocation8 + $0x630] sm:$0xff]  ;;  %v1714_v29 = vrot.slane %v6092_v27, %v227_v22  ;;  %v5618_v22 = vcombine.low %v1635_v39, %v1639_v58 }
 0x254   :  { %4670 = vmatpush2.bf16.msra.mxu0 %v5290_v14  ;;  %v1710_v14 = vrot.slane %v6092_v27, %v223_v19 }
 0x255   :  { %4713 = vmatpush2.bf16.msra.mxu1 %v5418_v52  ;;  %4671 = vmatprep.subr.bf16.mxu0 %v5283_v35  ;;  %v4386_v52 = vpop.f32.mrf.mxu1  ;;  %v5371_v35 = vcombine.high %v1387_v28, %v1391_v30 }
 0x256   :  { %4714 = vmatprep.subr.bf16.mxu1 %v5411_v7  ;;  %v1507_v7 = vld [vmem:[#allocation8 + $0x9d0] sm:$0xff]  ;;  %v4342_v46 = vadd.f32 %v4341_v13, %v1710_v14 }
 0x257   :  { %v4388_v19 = vpop.f32.mrf.mxu1 }
 0x258   :  { %4672 = vmatpush2.bf16.msra.mxu0 %v5282_v37  ;;  %v5242_v37 = vcombine.low %v1259_v25, %v1263_v26  ;;  %v4385_v55 = vadd.f32 %v4384_v17, %v4342_v46 }
 0x259   :  { %4715 = vmatpush2.bf16.msra.mxu1 %v5410_v31  ;;  %4673 = vmatprep.subr.bf16.mxu0 %v5275_v45  ;;  %v4345_v31 = vpop.f32.mrf.mxu0  ;;  %v5370_v45 = vcombine.low %v1387_v28, %v1391_v30 }
 0x25a   :  { %4716 = vmatprep.subr.bf16.mxu1 %v5403_v20  ;;  %v5491_v20 = vcombine.high %v1507_v7, %v1511_v42  ;;  %v4346_v61 = vadd.f32 %v4345_v31, %v1710_v14 }
 0x25b   :  { %v4347_v60 = vpop.f32.mrf.mxu0 }
 0x25c   :  { %4674 = vmatpush2.bf16.msra.mxu0 %v5274_v57  ;;  %v4344_v57 = vadd.f32 %v4343_v32, %v1714_v29  ;;  %v4348_v13 = vadd.f32 %v4347_v60, %v1714_v29  ;;  %v4389_v28 = vadd.f32 %v4388_v19, %v4346_v61  ;;  %v1471_v61 = vld [vmem:[#allocation8 + $0x8b0] sm:$0xff] }
 0x25d   :  { %4717 = vmatpush2.bf16.msra.mxu1 %v5402_v47  ;;  %4675 = vmatprep.subr.bf16.mxu0 %v5267_v48  ;;  %v5490_v47 = vcombine.low %v1507_v7, %v1511_v42  ;;  %v1627_v48 = vld [vmem:[#allocation8 + $0xd90] sm:$0xff] }
 0x25e   :  { %4718 = vmatprep.subr.bf16.mxu1 %v5395_v54  ;;  %v1631_v54 = vld [vmem:[#allocation8 + $0xdb0] sm:$0xff] }
 0x25f   :  { %v5611_v10 = vcombine.high %v1627_v48, %v1631_v54 }
 0x260   :  { %4676 = vmatpush2.bf16.msra.mxu0 %v5266_v62  ;;  %v4390_v62 = vpop.f32.mrf.mxu1 }
 0x261   :  { %4719 = vmatpush2.bf16.msra.mxu1 %v5394_v63  ;;  %4677 = vmatprep.subr.bf16.mxu0 %v5259_v0  ;;  %v5483_v63 = vcombine.high %v1499_v53, %v1503_v56  ;;  %v1495_v0 = vld [vmem:[#allocation8 + $0x970] sm:$0xff]  ;;  %v4391_v7 = vadd.f32 %v4390_v62, %v4348_v13 }
 0x262   :  { %4720 = vmatprep.subr.bf16.mxu1 %v5387_v3  ;;  %v1619_v3 = vld [vmem:[#allocation8 + $0xd50] sm:$0xff]  ;;  %v5475_v25 = vcombine.high %v1491_v49, %v1495_v0  ;;  %v5474_v29 = vcombine.low %v1491_v49, %v1495_v0 }
 0x263   :  { %v5603_v26 = vcombine.high %v1619_v3, %v1623_v5  ;;  %v5602_v31 = vcombine.low %v1619_v3, %v1623_v5  ;;  %v1479_v53 = vld [vmem:[#allocation8 + $0x8f0] sm:$0xff] }
 0x264   :  { %4678 = vmatpush2.bf16.msra.mxu0 %v5258_v12  ;;  %v4387_v12 = vadd.f32 %v4386_v52, %v4344_v57  ;;  %v1611_v52 = vld [vmem:[#allocation8 + $0xd10] sm:$0xff] }
 0x265   :  { %4721 = vmatpush2.bf16.msra.mxu1 %v5386_v15  ;;  %4679 = vmatprep.subr.bf16.mxu0 %v5251_v16  ;;  %v1603_v57 = vld [vmem:[#allocation8 + $0xcd0] sm:$0xff] }
 0x266   :  { %4722 = vmatprep.subr.bf16.mxu1 %v5379_v24  ;;  %v5610_v24 = vcombine.low %v1627_v48, %v1631_v54  ;;  %v1595_v62 = vld [vmem:[#allocation8 + $0xc90] sm:$0xff] }
 0x267   :  { %v1591_v13 = vld [vmem:[#allocation8 + $0xc70] sm:$0xff] }
 0x268   :  { %4680 = vmatpush2.bf16.msra.mxu0 %v5250_v59 }
 0x269   :  { %4723 = vmatpush2.bf16.msra.mxu1 %v5378_v33  ;;  %4681 = vmatprep.subr.bf16.mxu0 %v5243_v44  ;;  %v1483_v33 = vld [vmem:[#allocation8 + $0x910] sm:$0xff] }
 0x26a   :  { %4724 = vmatprep.subr.bf16.mxu1 %v5371_v35  ;;  %v1487_v44 = vld [vmem:[#allocation8 + $0x930] sm:$0xff] }
 0x26b   :  { %v1615_v35 = vld [vmem:[#allocation8 + $0xd30] sm:$0xff]  ;;  %v5466_v54 = vcombine.low %v1483_v33, %v1487_v44 }
 0x26c   :  { %4682 = vmatpush2.bf16.msra.mxu0 %v5242_v37  ;;  %v5595_v19 = vcombine.high %v1611_v52, %v1615_v35  ;;  %v5594_v60 = vcombine.low %v1611_v52, %v1615_v35  ;;  %v1575_v52 = vld [vmem:[#allocation8 + $0xbf0] sm:$0xff] }
 0x26d   :  { %4725 = vmatpush2.bf16.msra.mxu1 %v5370_v45  ;;  %4737 = vmatprep.subr.bf16.mxu0 %v5491_v20  ;;  %v5467_v45 = vcombine.high %v1483_v33, %v1487_v44  ;;  %v1699_v35 = vld [vmem:[#allocation8 + $0xfd0] sm:$0xff] }
 0x26e   :  { %4780 = vmatprep.subr.bf16.mxu1 %v5619_v51  ;;  %v1475_v51 = vld [vmem:[#allocation8 + $0x8d0] sm:$0xff] }
 0x26f   :  { %4684 = vmatmul.mubr.bf16.vlgmr.msra.gmra.mxu0 %v6006_v41  ;;  %v4427_v6 = vpop.f32.mrf.mxu0  ;;  %v5458_v0 = vcombine.low %v1475_v51, %v1479_v53 }
 0x270   :  { %4727 = vmatmul.mubr.bf16.vlgmr.msra.gmra.mxu1 %v6010_v34  ;;  %v4428_v15 = vadd.f32 %v4427_v6, %v4385_v55  ;;  %v4470_v16 = vpop.f32.mrf.mxu1  ;;  %4738 = vmatpush1.bf16.msra.mxu0 %v5490_v47  ;;  %v1607_v47 = vld [vmem:[#allocation8 + $0xcf0] sm:$0xff] }
 0x271   :  { %4769 = vmatprep.mubr.bf16.mxu0 %v6070_v36  ;;  %4781 = vmatpush1.bf16.msra.mxu1 %v5618_v22  ;;  %v4429_v17 = vpop.f32.mrf.mxu0  ;;  %v5459_v22 = vcombine.high %v1475_v51, %v1479_v53  ;;  %v5587_v49 = vcombine.high %v1603_v57, %v1607_v47  ;;  %v1467_v55 = vld [vmem:[#allocation8 + $0x890] sm:$0xff]  ;;  %v5586_v3 = vcombine.low %v1603_v57, %v1607_v47 }
 0x272   :  { %v4471_v30 = vadd.f32 %v4470_v16, %v4428_v15  ;;  %4812 = vmatprep.mubr.bf16.mxu1 %v6074_v2  ;;  %v4430_v59 = vadd.f32 %v4429_v17, %v4387_v12  ;;  %v4472_v32 = vpop.f32.mrf.mxu1  ;;  %4739 = vmatprep.subr.bf16.mxu0 %v5483_v63  ;;  %v1599_v63 = vld [vmem:[#allocation8 + $0xcb0] sm:$0xff]  ;;  %v5451_v5 = vcombine.high %v1467_v55, %v1471_v61 }
 0x273   :  { %4782 = vmatprep.subr.bf16.mxu1 %v5611_v10  ;;  %v4431_v14 = vpop.f32.mrf.mxu0  ;;  %v5579_v6 = vcombine.high %v1595_v62, %v1599_v63  ;;  %v1463_v10 = vld [vmem:[#allocation8 + $0x870] sm:$0xff]  ;;  %v5450_v15 = vcombine.low %v1467_v55, %v1471_v61  ;;  %v5578_v16 = vcombine.low %v1595_v62, %v1599_v63 }
 0x274   :  { %4995 = vst [vmem:[#allocation11] sm:$0xff] %v4471_v30  ;;  %v4473_v42 = vadd.f32 %v4472_v32, %v4430_v59  ;;  %v4432_v39 = vadd.f32 %v4431_v14, %v4389_v28  ;;  %v4474_v58 = vpop.f32.mrf.mxu1  ;;  %4740 = vmatpush1.bf16.msra.mxu0 %v5482_v9  ;;  %v1459_v9 = vld [vmem:[#allocation8 + $0x850] sm:$0xff] }
 0x275   :  { %4783 = vmatpush1.bf16.msra.mxu1 %v5610_v24  ;;  %v4433_v37 = vpop.f32.mrf.mxu0  ;;  %4741 = vmatprep.subr.bf16.mxu0 %v5475_v25  ;;  %v1587_v12 = vld [vmem:[#allocation8 + $0xc50] sm:$0xff]  ;;  %v5443_v17 = vcombine.high %v1459_v9, %v1463_v10  ;;  %v5442_v59 = vcombine.low %v1459_v9, %v1463_v10 }
 0x276   :  { %4996 = vst [vmem:[#allocation11 + $0x8] sm:$0xff] %v4473_v42  ;;  %v4475_v20 = vadd.f32 %v4474_v58, %v4432_v39  ;;  %v4434_v46 = vadd.f32 %v4433_v37, %v4391_v7  ;;  %4784 = vmatprep.subr.bf16.mxu1 %v5603_v26  ;;  %v4476_v56 = vpop.f32.mrf.mxu1  ;;  %v5571_v24 = vcombine.high %v1587_v12, %v1591_v13  ;;  %v1451_v25 = vld [vmem:[#allocation8 + $0x810] sm:$0xff] }
 0x277   :  { %v1455_v26 = vld [vmem:[#allocation8 + $0x830] sm:$0xff]  ;;  %v5570_v32 = vcombine.low %v1587_v12, %v1591_v13 }
 0x278   :  { %5003 = vst [vmem:[#allocation11 + $0x40] sm:$0xff] %v4475_v20  ;;  %v4477_v48 = vadd.f32 %v4476_v56, %v4434_v46  ;;  %4742 = vmatpush1.bf16.msra.mxu0 %v5474_v29  ;;  %v1579_v28 = vld [vmem:[#allocation8 + $0xc10] sm:$0xff]  ;;  %v5435_v33 = vcombine.high %v1451_v25, %v1455_v26  ;;  %v5434_v42 = vcombine.low %v1451_v25, %v1455_v26 }
 0x279   :  { %4785 = vmatpush1.bf16.msra.mxu1 %v5602_v31  ;;  %4743 = vmatprep.subr.bf16.mxu0 %v5467_v45  ;;  %v1583_v30 = vld [vmem:[#allocation8 + $0xc30] sm:$0xff] }
 0x27a   :  { %5004 = vst [vmem:[#allocation11 + $0x48] sm:$0xff] %v4477_v48  ;;  %4786 = vmatprep.subr.bf16.mxu1 %v5595_v19  ;;  %v5563_v44 = vcombine.high %v1579_v28, %v1583_v30  ;;  %v1571_v14 = vld [vmem:[#allocation8 + $0xbd0] sm:$0xff]  ;;  %v5562_v39 = vcombine.low %v1579_v28, %v1583_v30 }
 0x27b   :  { %v1703_v7 = vld [vmem:[#allocation8 + $0xff0] sm:$0xff]  ;;  %v5555_v58 = vcombine.high %v1571_v14, %v1575_v52  ;;  %v5554_v46 = vcombine.low %v1571_v14, %v1575_v52 }
 0x27c   :  { %4744 = vmatpush1.bf16.msra.mxu0 %v5466_v54  ;;  %v5683_v29 = vcombine.high %v1699_v35, %v1703_v7  ;;  %v1563_v37 = vld [vmem:[#allocation8 + $0xb90] sm:$0xff]  ;;  %v5682_v19 = vcombine.low %v1699_v35, %v1703_v7 }
 0x27d   :  { %4787 = vmatpush1.bf16.msra.mxu1 %v5594_v60  ;;  %4745 = vmatprep.subr.bf16.mxu0 %v5459_v22  ;;  %v1567_v31 = vld [vmem:[#allocation8 + $0xbb0] sm:$0xff] }
 0x27e   :  { %4788 = vmatprep.subr.bf16.mxu1 %v5587_v49  ;;  %v1691_v45 = vld [vmem:[#allocation8 + $0xf90] sm:$0xff]  ;;  %v5547_v51 = vcombine.high %v1563_v37, %v1567_v31  ;;  %v5546_v54 = vcombine.low %v1563_v37, %v1567_v31 }
 0x27f   :  { %v1695_v20 = vld [vmem:[#allocation8 + $0xfb0] sm:$0xff] }
 0x280   :  { %4746 = vmatpush1.bf16.msra.mxu0 %v5458_v0  ;;  %v5675_v53 = vcombine.high %v1691_v45, %v1695_v20  ;;  %v1555_v56 = vld [vmem:[#allocation8 + $0xb50] sm:$0xff]  ;;  %v5674_v60 = vcombine.low %v1691_v45, %v1695_v20 }
 0x281   :  { %4789 = vmatpush1.bf16.msra.mxu1 %v5586_v3  ;;  %4747 = vmatprep.subr.bf16.mxu0 %v5451_v5  ;;  %v1559_v57 = vld [vmem:[#allocation8 + $0xb70] sm:$0xff] }
 0x282   :  { %4790 = vmatprep.subr.bf16.mxu1 %v5579_v6  ;;  %v1683_v47 = vld [vmem:[#allocation8 + $0xf50] sm:$0xff]  ;;  %v5539_v22 = vcombine.high %v1555_v56, %v1559_v57  ;;  %v5538_v0 = vcombine.low %v1555_v56, %v1559_v57  ;;  %v1252_v56 = vld [vmem:[#allocation8 + $0x1d8] sm:$0xff] }
 0x283   :  { %v1687_v48 = vld [vmem:[#allocation8 + $0xf70] sm:$0xff]  ;;  %v1256_v57 = vld [vmem:[#allocation8 + $0x1f8] sm:$0xff] }
 0x284   :  { %4748 = vmatpush1.bf16.msra.mxu0 %v5450_v15  ;;  %v5667_v49 = vcombine.high %v1683_v47, %v1687_v48  ;;  %v1547_v55 = vld [vmem:[#allocation8 + $0xb10] sm:$0xff]  ;;  %v5666_v3 = vcombine.low %v1683_v47, %v1687_v48  ;;  %v1380_v47 = vld [vmem:[#allocation8 + $0x5d8] sm:$0xff] }
 0x285   :  { %4791 = vmatpush1.bf16.msra.mxu1 %v5578_v16  ;;  %4749 = vmatprep.subr.bf16.mxu0 %v5443_v17  ;;  %v1551_v61 = vld [vmem:[#allocation8 + $0xb30] sm:$0xff]  ;;  %v1384_v48 = vld [vmem:[#allocation8 + $0x5f8] sm:$0xff] }
 0x286   :  { %4792 = vmatprep.subr.bf16.mxu1 %v5571_v24  ;;  %v1675_v62 = vld [vmem:[#allocation8 + $0xf10] sm:$0xff]  ;;  %v5531_v5 = vcombine.high %v1547_v55, %v1551_v61  ;;  %v5530_v15 = vcombine.low %v1547_v55, %v1551_v61  ;;  %v1244_v55 = vld [vmem:[#allocation8 + $0x198] sm:$0xff] }
 0x287   :  { %v1679_v63 = vld [vmem:[#allocation8 + $0xf30] sm:$0xff]  ;;  %v1248_v61 = vld [vmem:[#allocation8 + $0x1b8] sm:$0xff] }
 0x288   :  { %4750 = vmatpush1.bf16.msra.mxu0 %v5442_v59  ;;  %v5659_v6 = vcombine.high %v1675_v62, %v1679_v63  ;;  %v1539_v9 = vld [vmem:[#allocation8 + $0xad0] sm:$0xff]  ;;  %v5658_v16 = vcombine.low %v1675_v62, %v1679_v63  ;;  %v5236_v62 = vcombine.low %v1252_v56, %v1256_v57  ;;  %v1372_v63 = vld [vmem:[#allocation8 + $0x598] sm:$0xff] }
 0x289   :  { %4793 = vmatpush1.bf16.msra.mxu1 %v5570_v32  ;;  %4751 = vmatprep.subr.bf16.mxu0 %v5435_v33  ;;  %v1543_v10 = vld [vmem:[#allocation8 + $0xaf0] sm:$0xff] }
 0x28a   :  { %4794 = vmatprep.subr.bf16.mxu1 %v5563_v44  ;;  %v1667_v12 = vld [vmem:[#allocation8 + $0xed0] sm:$0xff]  ;;  %v5523_v17 = vcombine.high %v1539_v9, %v1543_v10  ;;  %v5522_v59 = vcombine.low %v1539_v9, %v1543_v10  ;;  %v1240_v9 = vld [vmem:[#allocation8 + $0x178] sm:$0xff] }
 0x28b   :  { %v1671_v13 = vld [vmem:[#allocation8 + $0xef0] sm:$0xff] }
 0x28c   :  { %4752 = vmatpush1.bf16.msra.mxu0 %v5434_v42  ;;  %v5651_v24 = vcombine.high %v1667_v12, %v1671_v13  ;;  %v1531_v25 = vld [vmem:[#allocation8 + $0xa90] sm:$0xff]  ;;  %v5650_v32 = vcombine.low %v1667_v12, %v1671_v13  ;;  %v1364_v12 = vld [vmem:[#allocation8 + $0x558] sm:$0xff] }
 0x28d   :  { %4795 = vmatpush1.bf16.msra.mxu1 %v5562_v39  ;;  %4753 = vmatprep.subr.bf16.mxu0 %v5555_v58  ;;  %v1535_v26 = vld [vmem:[#allocation8 + $0xab0] sm:$0xff]  ;;  %v1368_v13 = vld [vmem:[#allocation8 + $0x578] sm:$0xff] }
 0x28e   :  { %4796 = vmatprep.subr.bf16.mxu1 %v5683_v29  ;;  %v1659_v28 = vld [vmem:[#allocation8 + $0xe90] sm:$0xff]  ;;  %v5515_v33 = vcombine.high %v1531_v25, %v1535_v26  ;;  %v5514_v42 = vcombine.low %v1531_v25, %v1535_v26  ;;  %v1228_v25 = vld [vmem:[#allocation8 + $0x118] sm:$0xff] }
 0x28f   :  { %v1663_v30 = vld [vmem:[#allocation8 + $0xeb0] sm:$0xff]  ;;  %v1232_v26 = vld [vmem:[#allocation8 + $0x138] sm:$0xff] }
 0x290   :  { %4754 = vmatpush2.bf16.msra.mxu0 %v5554_v46  ;;  %v5643_v44 = vcombine.high %v1659_v28, %v1663_v30  ;;  %v1523_v14 = vld [vmem:[#allocation8 + $0xa50] sm:$0xff]  ;;  %v5642_v39 = vcombine.low %v1659_v28, %v1663_v30  ;;  %v1356_v28 = vld [vmem:[#allocation8 + $0x518] sm:$0xff] }
 0x291   :  { %4797 = vmatpush2.bf16.msra.mxu1 %v5682_v19  ;;  %4755 = vmatprep.subr.bf16.mxu0 %v5547_v51  ;;  %v1527_v52 = vld [vmem:[#allocation8 + $0xa70] sm:$0xff]  ;;  %v1360_v30 = vld [vmem:[#allocation8 + $0x538] sm:$0xff] }
 0x292   :  { %4798 = vmatprep.subr.bf16.mxu1 %v5675_v53  ;;  %v1651_v35 = vld [vmem:[#allocation8 + $0xe50] sm:$0xff]  ;;  %v5507_v58 = vcombine.high %v1523_v14, %v1527_v52  ;;  %v5506_v46 = vcombine.low %v1523_v14, %v1527_v52  ;;  %v1224_v14 = vld [vmem:[#allocation8 + $0xf8] sm:$0xff] }
 0x293   :  { %v1655_v7 = vld [vmem:[#allocation8 + $0xe70] sm:$0xff]  ;;  %v1348_v52 = vld [vmem:[#allocation8 + $0x4d8] sm:$0xff] }
 0x294   :  { %4756 = vmatpush2.bf16.msra.mxu0 %v5546_v54  ;;  %v5635_v29 = vcombine.high %v1651_v35, %v1655_v7  ;;  %v1515_v37 = vld [vmem:[#allocation8 + $0xa10] sm:$0xff]  ;;  %v5634_v19 = vcombine.low %v1651_v35, %v1655_v7  ;;  %v1352_v35 = vld [vmem:[#allocation8 + $0x4f8] sm:$0xff]  ;;  %v5340_v7 = vcombine.low %v1356_v28, %v1360_v30 }
 0x295   :  { %4799 = vmatpush2.bf16.msra.mxu1 %v5674_v60  ;;  %4757 = vmatprep.subr.bf16.mxu0 %v5539_v22  ;;  %v1519_v31 = vld [vmem:[#allocation8 + $0xa30] sm:$0xff]  ;;  %v5237_v22 = vcombine.high %v1252_v56, %v1256_v57  ;;  %v1332_v56 = vld [vmem:[#allocation8 + $0x458] sm:$0xff] }
 0x296   :  { %4800 = vmatprep.subr.bf16.mxu1 %v5667_v49  ;;  %v1643_v45 = vld [vmem:[#allocation8 + $0xe10] sm:$0xff]  ;;  %v5499_v51 = vcombine.high %v1515_v37, %v1519_v31  ;;  %v5498_v54 = vcombine.low %v1515_v37, %v1519_v31  ;;  %v5365_v49 = vcombine.high %v1380_v47, %v1384_v48  ;;  %v1340_v37 = vld [vmem:[#allocation8 + $0x498] sm:$0xff] }
 0x297   :  { %v1647_v20 = vld [vmem:[#allocation8 + $0xe30] sm:$0xff]  ;;  %v1344_v31 = vld [vmem:[#allocation8 + $0x4b8] sm:$0xff] }
 0x298   :  { %4758 = vmatpush2.bf16.msra.mxu0 %v5538_v0  ;;  %v5627_v53 = vcombine.high %v1643_v45, %v1647_v20  ;;  %v5626_v60 = vcombine.low %v1643_v45, %v1647_v20  ;;  %v1376_v0 = vld [vmem:[#allocation8 + $0x5b8] sm:$0xff]  ;;  %v5332_v20 = vcombine.low %v1348_v52, %v1352_v35 }
 0x299   :  { %4801 = vmatpush2.bf16.msra.mxu1 %v5666_v3  ;;  %4759 = vmatprep.subr.bf16.mxu0 %v5531_v5  ;;  %v5364_v3 = vcombine.low %v1380_v47, %v1384_v48  ;;  %v5229_v5 = vcombine.high %v1244_v55, %v1248_v61  ;;  %v5357_v10 = vcombine.high %v1372_v63, %v1376_v0  ;;  %v1336_v57 = vld [vmem:[#allocation8 + $0x478] sm:$0xff] }
 0x29a   :  { %4802 = vmatprep.subr.bf16.mxu1 %v5659_v6  ;;  %v1236_v6 = vld [vmem:[#allocation8 + $0x158] sm:$0xff]  ;;  %v5324_v48 = vcombine.low %v1340_v37, %v1344_v31 }
 0x29c   :  { %4760 = vmatpush2.bf16.msra.mxu0 %v5530_v15  ;;  %v5228_v15 = vcombine.low %v1244_v55, %v1248_v61  ;;  %v1324_v55 = vld [vmem:[#allocation8 + $0x418] sm:$0xff] }
 0x29d   :  { %4803 = vmatpush2.bf16.msra.mxu1 %v5658_v16  ;;  %4761 = vmatprep.subr.bf16.mxu0 %v5523_v17  ;;  %v5356_v16 = vcombine.low %v1372_v63, %v1376_v0  ;;  %v5221_v17 = vcombine.high %v1236_v6, %v1240_v9  ;;  %v1328_v61 = vld [vmem:[#allocation8 + $0x438] sm:$0xff]  ;;  %v5316_v63 = vcombine.low %v1332_v56, %v1336_v57 }
 0x29e   :  { %4804 = vmatprep.subr.bf16.mxu1 %v5651_v24  ;;  %v5349_v24 = vcombine.high %v1364_v12, %v1368_v13 }
 0x2a0   :  { %4762 = vmatpush2.bf16.msra.mxu0 %v5522_v59  ;;  %v5220_v59 = vcombine.low %v1236_v6, %v1240_v9  ;;  %v1320_v6 = vld [vmem:[#allocation8 + $0x3f8] sm:$0xff] }
 0x2a1   :  { %4805 = vmatpush2.bf16.msra.mxu1 %v5650_v32  ;;  %4763 = vmatprep.subr.bf16.mxu0 %v5515_v33  ;;  %v5348_v32 = vcombine.low %v1364_v12, %v1368_v13  ;;  %v5213_v33 = vcombine.high %v1228_v25, %v1232_v26  ;;  %v1444_v9 = vld [vmem:[#allocation8 + $0x7d8] sm:$0xff]  ;;  %v5308_v13 = vcombine.low %v1324_v55, %v1328_v61 }
 0x2a2   :  { %4806 = vmatprep.subr.bf16.mxu1 %v5643_v44  ;;  %v1220_v44 = vld [vmem:[#allocation8 + $0xd8] sm:$0xff] }
 0x2a3   :  { %v5204_v45 = vcombine.low %v1220_v44, %v1224_v14 }
 0x2a4   :  { %4764 = vmatpush2.bf16.msra.mxu0 %v5514_v42  ;;  %v5205_v42 = vcombine.high %v1220_v44, %v1224_v14  ;;  %v1428_v44 = vld [vmem:[#allocation8 + $0x758] sm:$0xff] }
 0x2a5   :  { %4807 = vmatpush2.bf16.msra.mxu1 %v5642_v39  ;;  %4765 = vmatprep.subr.bf16.mxu0 %v5507_v58  ;;  %v5333_v39 = vcombine.high %v1348_v52, %v1352_v35  ;;  %v1212_v58 = vld [vmem:[#allocation8 + $0x98] sm:$0xff] }
 0x2a6   :  { %4808 = vmatprep.subr.bf16.mxu1 %v5635_v29  ;;  %v1216_v29 = vld [vmem:[#allocation8 + $0xb8] sm:$0xff] }
 0x2a7   :  { %v5196_v47 = vcombine.low %v1212_v58, %v1216_v29  ;;  %v1432_v14 = vld [vmem:[#allocation8 + $0x778] sm:$0xff] }
 0x2a8   :  { %4766 = vmatpush2.bf16.msra.mxu0 %v5506_v46  ;;  %v5197_v46 = vcombine.high %v1212_v58, %v1216_v29  ;;  %v1420_v58 = vld [vmem:[#allocation8 + $0x718] sm:$0xff] }
 0x2a9   :  { %4809 = vmatpush2.bf16.msra.mxu1 %v5634_v19  ;;  %4767 = vmatprep.subr.bf16.mxu0 %v5499_v51  ;;  %v5325_v19 = vcombine.high %v1340_v37, %v1344_v31  ;;  %v1204_v51 = vld [vmem:[#allocation8 + $0x58] sm:$0xff]  ;;  %v5412_v31 = vcombine.low %v1428_v44, %v1432_v14 }
 0x2aa   :  { %4810 = vmatprep.subr.bf16.mxu1 %v5627_v53  ;;  %v1208_v53 = vld [vmem:[#allocation8 + $0x78] sm:$0xff] }
 0x2ab   :  { %v1424_v29 = vld [vmem:[#allocation8 + $0x738] sm:$0xff] }
 0x2ac   :  { %4768 = vmatpush2.bf16.msra.mxu0 %v5498_v54  ;;  %v5189_v54 = vcombine.high %v1204_v51, %v1208_v53 }
 0x2ad   :  { %4811 = vmatpush2.bf16.msra.mxu1 %v5626_v60  ;;  %4823 = vmatprep.subr.bf16.mxu0 %v5237_v22  ;;  %v5317_v60 = vcombine.high %v1332_v56, %v1336_v57  ;;  %v1196_v22 = vld [vmem:[#allocation8 + $0x18] sm:$0xff]  ;;  %v5404_v57 = vcombine.low %v1420_v58, %v1424_v29 }
 0x2ae   :  { %4866 = vmatprep.subr.bf16.mxu1 %v5365_v49  ;;  %v1200_v49 = vld [vmem:[#allocation8 + $0x38] sm:$0xff] }
 0x2af   :  { %4770 = vmatmul.mubr.bf16.vlgmr.msra.gmra.mxu0 %v6072_v38  ;;  %v5181_v0 = vcombine.high %v1196_v22, %v1200_v49  ;;  %v5180_v12 = vcombine.low %v1196_v22, %v1200_v49  ;;  %v1404_v22 = vld [vmem:[#allocation8 + $0x698] sm:$0xff] }
 0x2b0   :  { %4813 = vmatmul.mubr.bf16.vlgmr.msra.gmra.mxu1 %v6076_v50  ;;  %4824 = vmatpush1.bf16.msra.mxu0 %v5236_v62  ;;  %v5188_v62 = vcombine.low %v1204_v51, %v1208_v53  ;;  %v1412_v51 = vld [vmem:[#allocation8 + $0x6d8] sm:$0xff] }
 0x2b1   :  { %4855 = vmatprep.mubr.bf16.mxu0 %v6004_v40  ;;  %4867 = vmatpush1.bf16.msra.mxu1 %v5364_v3  ;;  %v5341_v40 = vcombine.high %v1356_v28, %v1360_v30  ;;  %v5309_v3 = vcombine.high %v1324_v55, %v1328_v61  ;;  %v1416_v53 = vld [vmem:[#allocation8 + $0x6f8] sm:$0xff] }
 0x2b2   :  { %4898 = vmatprep.mubr.bf16.mxu1 %v6008_v43  ;;  %4825 = vmatprep.subr.bf16.mxu0 %v5229_v5  ;;  %v5212_v43 = vcombine.low %v1228_v25, %v1232_v26  ;;  %v1316_v5 = vld [vmem:[#allocation8 + $0x3d8] sm:$0xff]  ;;  %v5396_v61 = vcombine.low %v1412_v51, %v1416_v53 }
 0x2b3   :  { %4868 = vmatprep.subr.bf16.mxu1 %v5357_v10  ;;  %v1448_v10 = vld [vmem:[#allocation8 + $0x7f8] sm:$0xff]  ;;  %v5300_v28 = vcombine.low %v1316_v5, %v1320_v6 }
 0x2b4   :  { %4826 = vmatpush1.bf16.msra.mxu0 %v5228_v15  ;;  %v5301_v15 = vcombine.high %v1316_v5, %v1320_v6  ;;  %v1436_v25 = vld [vmem:[#allocation8 + $0x798] sm:$0xff]  ;;  %v5428_v30 = vcombine.low %v1444_v9, %v1448_v10 }
 0x2b5   :  { %4869 = vmatpush1.bf16.msra.mxu1 %v5356_v16  ;;  %4827 = vmatprep.subr.bf16.mxu0 %v5221_v17  ;;  %v5429_v16 = vcombine.high %v1444_v9, %v1448_v10  ;;  %v1308_v17 = vld [vmem:[#allocation8 + $0x398] sm:$0xff]  ;;  %v4513_v10 = vpop.f32.mrf.mxu0 }
 0x2b6   :  { %4870 = vmatprep.subr.bf16.mxu1 %v5349_v24  ;;  %v1312_v24 = vld [vmem:[#allocation8 + $0x3b8] sm:$0xff] }
 0x2b7   :  { %v1440_v26 = vld [vmem:[#allocation8 + $0x7b8] sm:$0xff]  ;;  %v5292_v52 = vcombine.low %v1308_v17, %v1312_v24 }
 0x2b8   :  { %4828 = vmatpush1.bf16.msra.mxu0 %v5220_v59  ;;  %v5293_v59 = vcombine.high %v1308_v17, %v1312_v24  ;;  %v5420_v35 = vcombine.low %v1436_v25, %v1440_v26  ;;  %v1408_v49 = vld [vmem:[#allocation8 + $0x6b8] sm:$0xff] }
 0x2b9   :  { %4871 = vmatpush1.bf16.msra.mxu1 %v5348_v32  ;;  %4829 = vmatprep.subr.bf16.mxu0 %v5213_v33  ;;  %v5421_v32 = vcombine.high %v1436_v25, %v1440_v26  ;;  %v1300_v33 = vld [vmem:[#allocation8 + $0x358] sm:$0xff] }
 0x2ba   :  { %4872 = vmatprep.subr.bf16.mxu1 %v5341_v40  ;;  %v1304_v40 = vld [vmem:[#allocation8 + $0x378] sm:$0xff] }
 0x2bb   :  { %v5284_v37 = vcombine.low %v1300_v33, %v1304_v40  ;;  %v1396_v5 = vld [vmem:[#allocation8 + $0x658] sm:$0xff] }
 0x2bc   :  { %4830 = vmatpush1.bf16.msra.mxu0 %v5212_v43  ;;  %v5285_v43 = vcombine.high %v1300_v33, %v1304_v40  ;;  %v1400_v6 = vld [vmem:[#allocation8 + $0x678] sm:$0xff]  ;;  %v1718_v33 = vrot.slane %v6092_v27, %v231_v21 }
 0x2bd   :  { %4873 = vmatpush1.bf16.msra.mxu1 %v5340_v7  ;;  %4831 = vmatprep.subr.bf16.mxu0 %v5205_v42  ;;  %v5413_v7 = vcombine.high %v1428_v44, %v1432_v14  ;;  %v1292_v42 = vld [vmem:[#allocation8 + $0x318] sm:$0xff] }
 0x2be   :  { %4874 = vmatprep.subr.bf16.mxu1 %v5333_v39  ;;  %v1296_v39 = vld [vmem:[#allocation8 + $0x338] sm:$0xff] }
 0x2bf   :  { %v5276_v56 = vcombine.low %v1292_v42, %v1296_v39  ;;  %v1260_v17 = vld [vmem:[#allocation8 + $0x218] sm:$0xff] }
 0x2c0   :  { %4832 = vmatpush1.bf16.msra.mxu0 %v5204_v45  ;;  %v5277_v45 = vcombine.high %v1292_v42, %v1296_v39  ;;  %v1264_v24 = vld [vmem:[#allocation8 + $0x238] sm:$0xff] }
 0x2c1   :  { %4875 = vmatpush1.bf16.msra.mxu1 %v5332_v20  ;;  %4833 = vmatprep.subr.bf16.mxu0 %v5197_v46  ;;  %v5405_v20 = vcombine.high %v1420_v58, %v1424_v29  ;;  %v1284_v46 = vld [vmem:[#allocation8 + $0x2d8] sm:$0xff]  ;;  %v5244_v42 = vcombine.low %v1260_v17, %v1264_v24 }
 0x2c2   :  { %4876 = vmatprep.subr.bf16.mxu1 %v5325_v19  ;;  %v1288_v19 = vld [vmem:[#allocation8 + $0x2f8] sm:$0xff] }
 0x2c3   :  { %v5268_v55 = vcombine.low %v1284_v46, %v1288_v19  ;;  %v1388_v25 = vld [vmem:[#allocation8 + $0x618] sm:$0xff] }
 0x2c4   :  { %4834 = vmatpush1.bf16.msra.mxu0 %v5196_v47  ;;  %v5269_v47 = vcombine.high %v1284_v46, %v1288_v19  ;;  %v1392_v26 = vld [vmem:[#allocation8 + $0x638] sm:$0xff] }
 0x2c5   :  { %4877 = vmatpush1.bf16.msra.mxu1 %v5324_v48  ;;  %4835 = vmatprep.subr.bf16.mxu0 %v5189_v54  ;;  %v5397_v48 = vcombine.high %v1412_v51, %v1416_v53  ;;  %v1276_v54 = vld [vmem:[#allocation8 + $0x298] sm:$0xff]  ;;  %v5373_v44 = vcombine.high %v1388_v25, %v1392_v26  ;;  %v5372_v58 = vcombine.low %v1388_v25, %v1392_v26 }
 0x2c6   :  { %4878 = vmatprep.subr.bf16.mxu1 %v5317_v60  ;;  %v1280_v60 = vld [vmem:[#allocation8 + $0x2b8] sm:$0xff] }
 0x2c7   :  { %v5260_v9 = vcombine.low %v1276_v54, %v1280_v60  ;;  %v1508_v14 = vld [vmem:[#allocation8 + $0x9d8] sm:$0xff] }
 0x2c8   :  { %4836 = vmatpush1.bf16.msra.mxu0 %v5188_v62  ;;  %v5261_v62 = vcombine.high %v1276_v54, %v1280_v60  ;;  %v1628_v51 = vld [vmem:[#allocation8 + $0xd98] sm:$0xff] }
 0x2c9   :  { %4879 = vmatpush1.bf16.msra.mxu1 %v5316_v63  ;;  %4837 = vmatprep.subr.bf16.mxu0 %v5181_v0  ;;  %v5389_v63 = vcombine.high %v1404_v22, %v1408_v49  ;;  %v1268_v0 = vld [vmem:[#allocation8 + $0x258] sm:$0xff] }
 0x2ca   :  { %4880 = vmatprep.subr.bf16.mxu1 %v5309_v3  ;;  %v1272_v3 = vld [vmem:[#allocation8 + $0x278] sm:$0xff] }
 0x2cb   :  { %v1632_v53 = vld [vmem:[#allocation8 + $0xdb8] sm:$0xff] }
 0x2cc   :  { %4838 = vmatpush1.bf16.msra.mxu0 %v5180_v12  ;;  %v5388_v12 = vcombine.low %v1404_v22, %v1408_v49  ;;  %v1496_v60 = vld [vmem:[#allocation8 + $0x978] sm:$0xff] }
 0x2cd   :  { %4881 = vmatpush1.bf16.msra.mxu1 %v5308_v13  ;;  %4839 = vmatprep.subr.bf16.mxu0 %v5301_v15  ;;  %v5253_v13 = vcombine.high %v1268_v0, %v1272_v3  ;;  %v4556_v15 = vpop.f32.mrf.mxu1  ;;  %v1620_v22 = vld [vmem:[#allocation8 + $0xd58] sm:$0xff] }
 0x2ce   :  { %4882 = vmatprep.subr.bf16.mxu1 %v5429_v16  ;;  %v5381_v16 = vcombine.high %v1396_v5, %v1400_v6  ;;  %v1624_v49 = vld [vmem:[#allocation8 + $0xd78] sm:$0xff] }
 0x2cf   :  { %v4558_v40 = vpop.f32.mrf.mxu1  ;;  %v1616_v26 = vld [vmem:[#allocation8 + $0xd38] sm:$0xff] }
 0x2d0   :  { %4840 = vmatpush2.bf16.msra.mxu0 %v5300_v28  ;;  %v5252_v28 = vcombine.low %v1268_v0, %v1272_v3 }
 0x2d1   :  { %4883 = vmatpush2.bf16.msra.mxu1 %v5428_v30  ;;  %4841 = vmatprep.subr.bf16.mxu0 %v5293_v59  ;;  %v4515_v30 = vpop.f32.mrf.mxu0  ;;  %v5380_v59 = vcombine.low %v1396_v5, %v1400_v6  ;;  %v4560_v21 = vpop.f32.mrf.mxu1 }
 0x2d2   :  { %4884 = vmatprep.subr.bf16.mxu1 %v5421_v32  ;;  %v5245_v32 = vcombine.high %v1260_v17, %v1264_v24  ;;  %v1484_v17 = vld [vmem:[#allocation8 + $0x918] sm:$0xff] }
 0x2d3   :  { %v4517_v39 = vpop.f32.mrf.mxu0  ;;  %v1488_v24 = vld [vmem:[#allocation8 + $0x938] sm:$0xff] }
 0x2d4   :  { %4842 = vmatpush2.bf16.msra.mxu0 %v5292_v52  ;;  %v1512_v52 = vld [vmem:[#allocation8 + $0x9f8] sm:$0xff] }
 0x2d5   :  { %4885 = vmatpush2.bf16.msra.mxu1 %v5420_v35  ;;  %4843 = vmatprep.subr.bf16.mxu0 %v5285_v43  ;;  %v1636_v35 = vld [vmem:[#allocation8 + $0xdd8] sm:$0xff]  ;;  %v5493_v29 = vcombine.high %v1508_v14, %v1512_v52  ;;  %v5492_v19 = vcombine.low %v1508_v14, %v1512_v52 }
 0x2d6   :  { %4886 = vmatprep.subr.bf16.mxu1 %v5413_v7  ;;  %v1640_v43 = vld [vmem:[#allocation8 + $0xdf8] sm:$0xff]  ;;  %v1722_v7 = vrot.slane %v6092_v27, %v235_v23 }
 0x2d7   :  { %v5620_v23 = vcombine.low %v1636_v35, %v1640_v43  ;;  %v1492_v27 = vld [vmem:[#allocation8 + $0x958] sm:$0xff] }
 0x2d8   :  { %4844 = vmatpush2.bf16.msra.mxu0 %v5284_v37  ;;  %v4514_v37 = vadd.f32 %v4513_v10, %v1718_v33  ;;  %v4516_v46 = vadd.f32 %v4515_v30, %v1722_v7  ;;  %v5477_v10 = vcombine.high %v1492_v27, %v1496_v60 }
 0x2d9   :  { %4887 = vmatpush2.bf16.msra.mxu1 %v5412_v31  ;;  %4845 = vmatprep.subr.bf16.mxu0 %v5277_v45  ;;  %v5621_v31 = vcombine.high %v1636_v35, %v1640_v43  ;;  %v1500_v45 = vld [vmem:[#allocation8 + $0x998] sm:$0xff] }
 0x2da   :  { %4888 = vmatprep.subr.bf16.mxu1 %v5405_v20  ;;  %v1504_v20 = vld [vmem:[#allocation8 + $0x9b8] sm:$0xff] }
 0x2db   :  { %v5485_v54 = vcombine.high %v1500_v45, %v1504_v20  ;;  %v1476_v35 = vld [vmem:[#allocation8 + $0x8d8] sm:$0xff] }
 0x2dc   :  { %4846 = vmatpush2.bf16.msra.mxu0 %v5276_v56  ;;  %v4519_v56 = vpop.f32.mrf.mxu0  ;;  %v1480_v43 = vld [vmem:[#allocation8 + $0x8f8] sm:$0xff] }
 0x2dd   :  { %4889 = vmatpush2.bf16.msra.mxu1 %v5404_v57  ;;  %4847 = vmatprep.subr.bf16.mxu0 %v5269_v47  ;;  %v4557_v57 = vadd.f32 %v4556_v15, %v4514_v37  ;;  %v4518_v47 = vadd.f32 %v4517_v39, %v1718_v33  ;;  %v4520_v0 = vadd.f32 %v4519_v56, %v1722_v7  ;;  %v1608_v39 = vld [vmem:[#allocation8 + $0xcf8] sm:$0xff] }
 0x2de   :  { %4890 = vmatprep.subr.bf16.mxu1 %v5397_v48  ;;  %v4562_v48 = vpop.f32.mrf.mxu1 }
 0x2e0   :  { %4848 = vmatpush2.bf16.msra.mxu0 %v5268_v55 }
 0x2e1   :  { %4891 = vmatpush2.bf16.msra.mxu1 %v5396_v61  ;;  %4849 = vmatprep.subr.bf16.mxu0 %v5261_v62  ;;  %v5484_v61 = vcombine.low %v1500_v45, %v1504_v20  ;;  %v5613_v62 = vcombine.high %v1628_v51, %v1632_v53  ;;  %v1468_v45 = vld [vmem:[#allocation8 + $0x898] sm:$0xff] }
 0x2e2   :  { %4892 = vmatprep.subr.bf16.mxu1 %v5389_v63  ;;  %v4559_v63 = vadd.f32 %v4558_v40, %v4516_v46  ;;  %v5469_v40 = vcombine.high %v1484_v17, %v1488_v24  ;;  %v1472_v20 = vld [vmem:[#allocation8 + $0x8b8] sm:$0xff] }
 0x2e3   :  { %v1596_v46 = vld [vmem:[#allocation8 + $0xc98] sm:$0xff]  ;;  %v5453_v56 = vcombine.high %v1468_v45, %v1472_v20 }
 0x2e4   :  { %4850 = vmatpush2.bf16.msra.mxu0 %v5260_v9  ;;  %v5612_v9 = vcombine.low %v1628_v51, %v1632_v53  ;;  %v5460_v51 = vcombine.low %v1476_v35, %v1480_v43 }
 0x2e5   :  { %4893 = vmatpush2.bf16.msra.mxu1 %v5388_v12  ;;  %4851 = vmatprep.subr.bf16.mxu0 %v5253_v13  ;;  %v5605_v12 = vcombine.high %v1620_v22, %v1624_v49  ;;  %v4561_v13 = vadd.f32 %v4560_v21, %v4518_v47  ;;  %v5461_v21 = vcombine.high %v1476_v35, %v1480_v43  ;;  %v1588_v47 = vld [vmem:[#allocation8 + $0xc58] sm:$0xff] }
 0x2e6   :  { %4894 = vmatprep.subr.bf16.mxu1 %v5381_v16  ;;  %v1548_v43 = vld [vmem:[#allocation8 + $0xb18] sm:$0xff] }
 0x2e8   :  { %4852 = vmatpush2.bf16.msra.mxu0 %v5252_v28  ;;  %v4563_v28 = vadd.f32 %v4562_v48, %v4520_v0  ;;  %v1592_v48 = vld [vmem:[#allocation8 + $0xc78] sm:$0xff] }
 0x2e9   :  { %4895 = vmatpush2.bf16.msra.mxu1 %v5380_v59  ;;  %4853 = vmatprep.subr.bf16.mxu0 %v5245_v32  ;;  %v5476_v32 = vcombine.low %v1492_v27, %v1496_v60  ;;  %v1460_v27 = vld [vmem:[#allocation8 + $0x858] sm:$0xff] }
 0x2ea   :  { %4896 = vmatprep.subr.bf16.mxu1 %v5373_v44 }
 0x2ec   :  { %4854 = vmatpush2.bf16.msra.mxu0 %v5244_v42  ;;  %v1604_v42 = vld [vmem:[#allocation8 + $0xcd8] sm:$0xff] }
 0x2ed   :  { %4897 = vmatpush2.bf16.msra.mxu1 %v5372_v58  ;;  %4909 = vmatprep.subr.bf16.mxu0 %v5493_v29  ;;  %v5468_v29 = vcombine.low %v1484_v17, %v1488_v24  ;;  %v5588_v53 = vcombine.low %v1604_v42, %v1608_v39  ;;  %v1564_v24 = vld [vmem:[#allocation8 + $0xb98] sm:$0xff] }
 0x2ee   :  { %4952 = vmatprep.subr.bf16.mxu1 %v5621_v31  ;;  %v5589_v31 = vcombine.high %v1604_v42, %v1608_v39  ;;  %v1676_v42 = vld [vmem:[#allocation8 + $0xf18] sm:$0xff] }
 0x2ef   :  { %v4599_v55 = vpop.f32.mrf.mxu0  ;;  %4856 = vmatmul.mubr.bf16.vlgmr.msra.gmra.mxu0 %v6006_v41  ;;  %v1680_v39 = vld [vmem:[#allocation8 + $0xf38] sm:$0xff] }
 0x2f0   :  { %v4600_v3 = vadd.f32 %v4599_v55, %v4557_v57  ;;  %v4642_v5 = vpop.f32.mrf.mxu1  ;;  %4899 = vmatmul.mubr.bf16.vlgmr.msra.gmra.mxu1 %v6010_v34  ;;  %4910 = vmatpush1.bf16.msra.mxu0 %v5492_v19  ;;  %v1612_v34 = vld [vmem:[#allocation8 + $0xd18] sm:$0xff] }
 0x2f1   :  { %4941 = vmatprep.mubr.bf16.mxu0 %v6070_v36  ;;  %4953 = vmatpush1.bf16.msra.mxu1 %v5620_v23  ;;  %v4601_v6 = vpop.f32.mrf.mxu0  ;;  %v5597_v52 = vcombine.high %v1612_v34, %v1616_v26  ;;  %v5596_v37 = vcombine.low %v1612_v34, %v1616_v26  ;;  %v1600_v19 = vld [vmem:[#allocation8 + $0xcb8] sm:$0xff] }
 0x2f2   :  { %v4643_v15 = vadd.f32 %v4642_v5, %v4600_v3  ;;  %4984 = vmatprep.mubr.bf16.mxu1 %v6074_v2  ;;  %v4602_v41 = vadd.f32 %v4601_v6, %v4559_v63  ;;  %v4644_v16 = vpop.f32.mrf.mxu1  ;;  %4911 = vmatprep.subr.bf16.mxu0 %v5485_v54  ;;  %v5604_v2 = vcombine.low %v1620_v22, %v1624_v49  ;;  %v1464_v57 = vld [vmem:[#allocation8 + $0x878] sm:$0xff] }
 0x2f3   :  { %v4603_v25 = vpop.f32.mrf.mxu0  ;;  %4954 = vmatprep.subr.bf16.mxu1 %v5613_v62  ;;  %v5581_v23 = vcombine.high %v1596_v46, %v1600_v19  ;;  %v5452_v54 = vcombine.low %v1468_v45, %v1472_v20  ;;  %v5580_v60 = vcombine.low %v1596_v46, %v1600_v19  ;;  %v5445_v22 = vcombine.high %v1460_v27, %v1464_v57  ;;  %v1452_v55 = vld [vmem:[#allocation8 + $0x818] sm:$0xff] }
 0x2f4   :  { %4997 = vst [vmem:[#allocation11 + $0x10] sm:$0xff] %v4643_v15  ;;  %v4645_v36 = vadd.f32 %v4644_v16, %v4602_v41  ;;  %v4604_v30 = vadd.f32 %v4603_v25, %v4561_v13  ;;  %v4646_v59 = vpop.f32.mrf.mxu1  ;;  %4912 = vmatpush1.bf16.msra.mxu0 %v5484_v61  ;;  %v5573_v49 = vcombine.high %v1588_v47, %v1592_v48  ;;  %v1456_v61 = vld [vmem:[#allocation8 + $0x838] sm:$0xff] }
 0x2f5   :  { %4955 = vmatpush1.bf16.msra.mxu1 %v5612_v9  ;;  %v4605_v33 = vpop.f32.mrf.mxu0  ;;  %4913 = vmatprep.subr.bf16.mxu0 %v5477_v10  ;;  %v1580_v62 = vld [vmem:[#allocation8 + $0xc18] sm:$0xff]  ;;  %v5444_v0 = vcombine.low %v1460_v27, %v1464_v57  ;;  %v5572_v3 = vcombine.low %v1588_v47, %v1592_v48  ;;  %v5437_v5 = vcombine.high %v1452_v55, %v1456_v61 }
 0x2f6   :  { %4998 = vst [vmem:[#allocation11 + $0x18] sm:$0xff] %v4645_v36  ;;  %v4647_v44 = vadd.f32 %v4646_v59, %v4604_v30  ;;  %v4606_v14 = vadd.f32 %v4605_v33, %v4563_v28  ;;  %4956 = vmatprep.subr.bf16.mxu1 %v5605_v12  ;;  %v4648_v7 = vpop.f32.mrf.mxu1  ;;  %v1584_v63 = vld [vmem:[#allocation8 + $0xc38] sm:$0xff]  ;;  %v5436_v15 = vcombine.low %v1452_v55, %v1456_v61 }
 0x2f7   :  { %v5565_v6 = vcombine.high %v1580_v62, %v1584_v63  ;;  %v1572_v9 = vld [vmem:[#allocation8 + $0xbd8] sm:$0xff]  ;;  %v5564_v41 = vcombine.low %v1580_v62, %v1584_v63 }
 0x2f8   :  { %5005 = vst [vmem:[#allocation11 + $0x50] sm:$0xff] %v4647_v44  ;;  %v4649_v58 = vadd.f32 %v4648_v7, %v4606_v14  ;;  %4914 = vmatpush1.bf16.msra.mxu0 %v5476_v32  ;;  %v1576_v10 = vld [vmem:[#allocation8 + $0xbf8] sm:$0xff] }
 0x2f9   :  { %4957 = vmatpush1.bf16.msra.mxu1 %v5604_v2  ;;  %4915 = vmatprep.subr.bf16.mxu0 %v5469_v40  ;;  %v1700_v12 = vld [vmem:[#allocation8 + $0xfd8] sm:$0xff]  ;;  %v5557_v16 = vcombine.high %v1572_v9, %v1576_v10  ;;  %v5556_v28 = vcombine.low %v1572_v9, %v1576_v10 }
 0x2fa   :  { %5006 = vst [vmem:[#allocation11 + $0x58] sm:$0xff] %v4649_v58  ;;  %4958 = vmatprep.subr.bf16.mxu1 %v5597_v52  ;;  %v1704_v13 = vld [vmem:[#allocation8 + $0xff8] sm:$0xff] }
 0x2fb   :  { %v5685_v17 = vcombine.high %v1700_v12, %v1704_v13  ;;  %v1568_v25 = vld [vmem:[#allocation8 + $0xbb8] sm:$0xff]  ;;  %v5684_v36 = vcombine.low %v1700_v12, %v1704_v13 }
 0x2fc   :  { %4916 = vmatpush1.bf16.msra.mxu0 %v5468_v29  ;;  %v1692_v34 = vld [vmem:[#allocation8 + $0xf98] sm:$0xff]  ;;  %v5549_v30 = vcombine.high %v1564_v24, %v1568_v25  ;;  %v5548_v44 = vcombine.low %v1564_v24, %v1568_v25 }
 0x2fd   :  { %4959 = vmatpush1.bf16.msra.mxu1 %v5596_v37  ;;  %4917 = vmatprep.subr.bf16.mxu0 %v5461_v21  ;;  %v1696_v26 = vld [vmem:[#allocation8 + $0xfb8] sm:$0xff]  ;;  %v5661_v21 = vcombine.high %v1676_v42, %v1680_v39 }
 0x2fe   :  { %4960 = vmatprep.subr.bf16.mxu1 %v5589_v31  ;;  %v5677_v59 = vcombine.high %v1692_v34, %v1696_v26  ;;  %v1556_v32 = vld [vmem:[#allocation8 + $0xb58] sm:$0xff]  ;;  %v5676_v14 = vcombine.low %v1692_v34, %v1696_v26 }
 0x2ff   :  { %v1560_v33 = vld [vmem:[#allocation8 + $0xb78] sm:$0xff] }
 0x300   :  { %4918 = vmatpush1.bf16.msra.mxu0 %v5460_v51  ;;  %v1684_v2 = vld [vmem:[#allocation8 + $0xf58] sm:$0xff]  ;;  %v5541_v52 = vcombine.high %v1556_v32, %v1560_v33  ;;  %v5540_v58 = vcombine.low %v1556_v32, %v1560_v33  ;;  %v5660_v51 = vcombine.low %v1676_v42, %v1680_v39 }
 0x301   :  { %4961 = vmatpush1.bf16.msra.mxu1 %v5588_v53  ;;  %4919 = vmatprep.subr.bf16.mxu0 %v5453_v56  ;;  %v1688_v40 = vld [vmem:[#allocation8 + $0xf78] sm:$0xff] }
 0x302   :  { %4962 = vmatprep.subr.bf16.mxu1 %v5581_v23  ;;  %v5669_v35 = vcombine.high %v1684_v2, %v1688_v40  ;;  %v1552_v7 = vld [vmem:[#allocation8 + $0xb38] sm:$0xff]  ;;  %v5668_v29 = vcombine.low %v1684_v2, %v1688_v40 }
 0x303   :  { %v5533_v37 = vcombine.high %v1548_v43, %v1552_v7  ;;  %v1540_v31 = vld [vmem:[#allocation8 + $0xad8] sm:$0xff]  ;;  %v5532_v19 = vcombine.low %v1548_v43, %v1552_v7 }
 0x304   :  { %4920 = vmatpush1.bf16.msra.mxu0 %v5452_v54  ;;  %v1544_v45 = vld [vmem:[#allocation8 + $0xaf8] sm:$0xff] }
 0x305   :  { %4963 = vmatpush1.bf16.msra.mxu1 %v5580_v60  ;;  %4921 = vmatprep.subr.bf16.mxu0 %v5445_v22  ;;  %v1668_v20 = vld [vmem:[#allocation8 + $0xed8] sm:$0xff]  ;;  %v5525_v53 = vcombine.high %v1540_v31, %v1544_v45  ;;  %v5524_v48 = vcombine.low %v1540_v31, %v1544_v45 }
 0x306   :  { %4964 = vmatprep.subr.bf16.mxu1 %v5573_v49  ;;  %v1672_v46 = vld [vmem:[#allocation8 + $0xef8] sm:$0xff] }
 0x307   :  { %v5653_v56 = vcombine.high %v1668_v20, %v1672_v46  ;;  %v1532_v23 = vld [vmem:[#allocation8 + $0xa98] sm:$0xff]  ;;  %v5652_v54 = vcombine.low %v1668_v20, %v1672_v46 }
 0x308   :  { %4922 = vmatpush1.bf16.msra.mxu0 %v5444_v0  ;;  %v1536_v27 = vld [vmem:[#allocation8 + $0xab8] sm:$0xff] }
 0x309   :  { %4965 = vmatpush1.bf16.msra.mxu1 %v5572_v3  ;;  %4923 = vmatprep.subr.bf16.mxu0 %v5437_v5  ;;  %v1660_v57 = vld [vmem:[#allocation8 + $0xe98] sm:$0xff]  ;;  %v5517_v60 = vcombine.high %v1532_v23, %v1536_v27  ;;  %v5516_v63 = vcombine.low %v1532_v23, %v1536_v27 }
 0x30a   :  { %4966 = vmatprep.subr.bf16.mxu1 %v5565_v6  ;;  %v1664_v47 = vld [vmem:[#allocation8 + $0xeb8] sm:$0xff] }
 0x30b   :  { %v5645_v22 = vcombine.high %v1660_v57, %v1664_v47  ;;  %v1524_v49 = vld [vmem:[#allocation8 + $0xa58] sm:$0xff]  ;;  %v5644_v0 = vcombine.low %v1660_v57, %v1664_v47 }
 0x30c   :  { %4924 = vmatpush1.bf16.msra.mxu0 %v5436_v15  ;;  %v1528_v55 = vld [vmem:[#allocation8 + $0xa78] sm:$0xff] }
 0x30d   :  { %4967 = vmatpush1.bf16.msra.mxu1 %v5564_v41  ;;  %4925 = vmatprep.subr.bf16.mxu0 %v5557_v16  ;;  %v1652_v61 = vld [vmem:[#allocation8 + $0xe58] sm:$0xff]  ;;  %v5509_v3 = vcombine.high %v1524_v49, %v1528_v55  ;;  %v5508_v13 = vcombine.low %v1524_v49, %v1528_v55 }
 0x30e   :  { %4968 = vmatprep.subr.bf16.mxu1 %v5685_v17  ;;  %v1656_v62 = vld [vmem:[#allocation8 + $0xe78] sm:$0xff] }
 0x30f   :  { %v5637_v5 = vcombine.high %v1652_v61, %v1656_v62  ;;  %v1516_v6 = vld [vmem:[#allocation8 + $0xa18] sm:$0xff]  ;;  %v5636_v15 = vcombine.low %v1652_v61, %v1656_v62 }
 0x310   :  { %4926 = vmatpush2.bf16.msra.mxu0 %v5556_v28  ;;  %v1520_v9 = vld [vmem:[#allocation8 + $0xa38] sm:$0xff]  ;;  %v5762_v28 = vld [vmem:[#allocation10] sm:$0xff] }
 0x311   :  { %4969 = vmatpush2.bf16.msra.mxu1 %v5684_v36  ;;  %4927 = vmatprep.subr.bf16.mxu0 %v5549_v30  ;;  %v1644_v10 = vld [vmem:[#allocation8 + $0xe18] sm:$0xff]  ;;  %v5501_v41 = vcombine.high %v1516_v6, %v1520_v9  ;;  %v5500_v17 = vcombine.low %v1516_v6, %v1520_v9  ;;  %v1726_v36 = vrot.slane %v5762_v28, %v239_v1 }
 0x312   :  { %4970 = vmatprep.subr.bf16.mxu1 %v5677_v59  ;;  %v1648_v12 = vld [vmem:[#allocation8 + $0xe38] sm:$0xff]  ;;  %v1730_v59 = vrot.slane %v5762_v28, %v243_v8  ;;  %v1734_v47 = vrot.slane %v5762_v28, %v247_v4 }
 0x313   :  { %v5629_v16 = vcombine.high %v1644_v10, %v1648_v12  ;;  %v5628_v24 = vcombine.low %v1644_v10, %v1648_v12 }
 0x314   :  { %4928 = vmatpush2.bf16.msra.mxu0 %v5548_v44 }
 0x315   :  { %4971 = vmatpush2.bf16.msra.mxu1 %v5676_v14  ;;  %4929 = vmatprep.subr.bf16.mxu0 %v5541_v52 }
 0x316   :  { %4972 = vmatprep.subr.bf16.mxu1 %v5669_v35 }
 0x318   :  { %4930 = vmatpush2.bf16.msra.mxu0 %v5540_v58 }
 0x319   :  { %4973 = vmatpush2.bf16.msra.mxu1 %v5668_v29  ;;  %4931 = vmatprep.subr.bf16.mxu0 %v5533_v37 }
 0x31a   :  { %4974 = vmatprep.subr.bf16.mxu1 %v5661_v21 }
 0x31c   :  { %4932 = vmatpush2.bf16.msra.mxu0 %v5532_v19 }
 0x31d   :  { %4975 = vmatpush2.bf16.msra.mxu1 %v5660_v51  ;;  %4933 = vmatprep.subr.bf16.mxu0 %v5525_v53 }
 0x31e   :  { %4976 = vmatprep.subr.bf16.mxu1 %v5653_v56 }
 0x320   :  { %4934 = vmatpush2.bf16.msra.mxu0 %v5524_v48 }
 0x321   :  { %4977 = vmatpush2.bf16.msra.mxu1 %v5652_v54  ;;  %4935 = vmatprep.subr.bf16.mxu0 %v5517_v60  ;;  %v1738_v54 = vrot.slane %v5762_v28, %v251_v11 }
 0x322   :  { %4978 = vmatprep.subr.bf16.mxu1 %v5645_v22 }
 0x324   :  { %4936 = vmatpush2.bf16.msra.mxu0 %v5516_v63 }
 0x325   :  { %4979 = vmatpush2.bf16.msra.mxu1 %v5644_v0  ;;  %4937 = vmatprep.subr.bf16.mxu0 %v5509_v3 }
 0x326   :  { %4980 = vmatprep.subr.bf16.mxu1 %v5637_v5 }
 0x328   :  { %4938 = vmatpush2.bf16.msra.mxu0 %v5508_v13 }
 0x329   :  { %4981 = vmatpush2.bf16.msra.mxu1 %v5636_v15  ;;  %4939 = vmatprep.subr.bf16.mxu0 %v5501_v41 }
 0x32a   :  { %4982 = vmatprep.subr.bf16.mxu1 %v5629_v16 }
 0x32c   :  { %4940 = vmatpush2.bf16.msra.mxu0 %v5500_v17 }
 0x32d   :  { %4983 = vmatpush2.bf16.msra.mxu1 %v5628_v24 }
 0x32f   :  { %4942 = vmatmul.mubr.bf16.vlgmr.msra.gmra.mxu0 %v6072_v38  ;;  %v4685_v25 = vpop.f32.mrf.mxu0 }
 0x330   :  { %4985 = vmatmul.mubr.bf16.vlgmr.msra.gmra.mxu1 %v6076_v50  ;;  %v4728_v34 = vpop.f32.mrf.mxu1  ;;  %v4686_v33 = vadd.f32 %v4685_v25, %v1726_v36 }
 0x331   :  { %v4687_v26 = vpop.f32.mrf.mxu0 }
 0x332   :  { %v4730_v30 = vpop.f32.mrf.mxu1  ;;  %v4688_v40 = vadd.f32 %v4687_v26, %v1730_v59  ;;  %v4729_v14 = vadd.f32 %v4728_v34, %v4686_v33 }
 0x333   :  { %v4689_v32 = vpop.f32.mrf.mxu0 }
 0x334   :  { %v4732_v2 = vpop.f32.mrf.mxu1  ;;  %v4690_v38 = vadd.f32 %v4689_v32, %v1726_v36  ;;  %v4731_v35 = vadd.f32 %v4730_v30, %v4688_v40 }
 0x335   :  { %v4691_v44 = vpop.f32.mrf.mxu0 }
 0x336   :  { %v4734_v52 = vpop.f32.mrf.mxu1  ;;  %v4692_v43 = vadd.f32 %v4691_v44, %v1730_v59  ;;  %v4733_v58 = vadd.f32 %v4732_v2, %v4690_v38 }
 0x338   :  { %v4735_v8 = vadd.f32 %v4734_v52, %v4692_v43 }
 0x36f   :  { %v4771_v50 = vpop.f32.mrf.mxu0 }
 0x370   :  { %v4772_v7 = vadd.f32 %v4771_v50, %v4729_v14  ;;  %v4814_v42 = vpop.f32.mrf.mxu1 }
 0x371   :  { %v4773_v39 = vpop.f32.mrf.mxu0 }
 0x372   :  { %v4815_v1 = vadd.f32 %v4814_v42, %v4772_v7  ;;  %v4774_v29 = vadd.f32 %v4773_v39, %v4731_v35  ;;  %v4816_v37 = vpop.f32.mrf.mxu1 }
 0x373   :  { %v4775_v21 = vpop.f32.mrf.mxu0 }
 0x374   :  { %4999 = vst [vmem:[#allocation11 + $0x20] sm:$0xff] %v4815_v1  ;;  %v4817_v31 = vadd.f32 %v4816_v37, %v4774_v29  ;;  %v4776_v45 = vadd.f32 %v4775_v21, %v4733_v58  ;;  %v4818_v20 = vpop.f32.mrf.mxu1 }
 0x375   :  { %v4777_v46 = vpop.f32.mrf.mxu0 }
 0x376   :  { %5000 = vst [vmem:[#allocation11 + $0x28] sm:$0xff] %v4817_v31  ;;  %v4819_v19 = vadd.f32 %v4818_v20, %v4776_v45  ;;  %v4778_v51 = vadd.f32 %v4777_v46, %v4735_v8  ;;  %v4820_v53 = vpop.f32.mrf.mxu1 }
 0x378   :  { %5007 = vst [vmem:[#allocation11 + $0x60] sm:$0xff] %v4819_v19  ;;  %v4821_v56 = vadd.f32 %v4820_v53, %v4778_v51 }
 0x37a   :  { %5008 = vst [vmem:[#allocation11 + $0x68] sm:$0xff] %v4821_v56 }
 0x3af   :  { %v4857_v23 = vpop.f32.mrf.mxu0 }
 0x3b0   :  { %v4900_v27 = vpop.f32.mrf.mxu1  ;;  %v4858_v22 = vadd.f32 %v4857_v23, %v1734_v47 }
 0x3b1   :  { %v4859_v57 = vpop.f32.mrf.mxu0 }
 0x3b2   :  { %v4902_v48 = vpop.f32.mrf.mxu1  ;;  %v4860_v55 = vadd.f32 %v4859_v57, %v1738_v54  ;;  %v4901_v62 = vadd.f32 %v4900_v27, %v4858_v22 }
 0x3b3   :  { %v4861_v60 = vpop.f32.mrf.mxu0 }
 0x3b4   :  { %v4904_v49 = vpop.f32.mrf.mxu1  ;;  %v4862_v63 = vadd.f32 %v4861_v60, %v1734_v47  ;;  %v4903_v5 = vadd.f32 %v4902_v48, %v4860_v55 }
 0x3b5   :  { %v4863_v61 = vpop.f32.mrf.mxu0 }
 0x3b6   :  { %v4906_v0 = vpop.f32.mrf.mxu1  ;;  %v4864_v6 = vadd.f32 %v4863_v61, %v1738_v54  ;;  %v4905_v13 = vadd.f32 %v4904_v49, %v4862_v63 }
 0x3b8   :  { %v4907_v11 = vadd.f32 %v4906_v0, %v4864_v6 }
 0x3ef   :  { %v4943_v3 = vpop.f32.mrf.mxu0 }
 0x3f0   :  { %v4944_v9 = vadd.f32 %v4943_v3, %v4901_v62  ;;  %v4986_v10 = vpop.f32.mrf.mxu1 }
 0x3f1   :  { %v4945_v12 = vpop.f32.mrf.mxu0 }
 0x3f2   :  { %v4987_v4 = vadd.f32 %v4986_v10, %v4944_v9  ;;  %v4946_v15 = vadd.f32 %v4945_v12, %v4903_v5  ;;  %v4988_v41 = vpop.f32.mrf.mxu1 }
 0x3f3   :  { %v4947_v18 = vpop.f32.mrf.mxu0 }
 0x3f4   :  { %5001 = vst [vmem:[#allocation11 + $0x30] sm:$0xff] %v4987_v4  ;;  %v4989_v16 = vadd.f32 %v4988_v41, %v4946_v15  ;;  %v4948_v17 = vadd.f32 %v4947_v18, %v4905_v13  ;;  %v4990_v24 = vpop.f32.mrf.mxu1 }
 0x3f5   :  { %v4949_v25 = vpop.f32.mrf.mxu0 }
 0x3f6   :  { %5002 = vst [vmem:[#allocation11 + $0x38] sm:$0xff] %v4989_v16  ;;  %v4991_v34 = vadd.f32 %v4990_v24, %v4948_v17  ;;  %v4950_v26 = vadd.f32 %v4949_v25, %v4907_v11  ;;  %v4992_v28 = vpop.f32.mrf.mxu1 }
 0x3f8   :  { %5009 = vst [vmem:[#allocation11 + $0x70] sm:$0xff] %v4991_v34  ;;  %v4993_v36 = vadd.f32 %v4992_v28, %v4950_v26 }
 0x3fa   :  { %5010 = vst [vmem:[#allocation11 + $0x78] sm:$0xff] %v4993_v36 }
 0x3fb   :  { %5874 = shalt.err (!%p5871_p1)
}
 0x3fc   :  { %s5901_s20 = smov 1024   ;;  %s5902_s21 = smov 64  }
 0x3fd   :  { %5022 = dma.vmem_to_hbm [thread:$0]  %s5017_s4, 2048, %s6136_s5, [#allocation4], %s5901_s20, %s5901_s20, %s5902_s21  }
 0x3fe   :  { %5889 = dma.done.wait [#allocation4], 2048  }
 0x3ff   :  { %5890 = vsyncadd [#allocation4], 4294965248 }
 0x400   :  { %5026 = vsyncpa [#allocation3], 1 }
 0x401   :  { %5027 = vsyncpa [#allocation6], 1 }
 0x402   :  { %5028 = vsyncpa [#allocation9], 1 }
 0x403   :  { %5029 = vsyncpa [#allocation4], 1 }

</bundles_post_ra>
